<compile_context>
chip_gen: v5e
topology: v5e:2x2
jax: 0.10.0
libtpu: 0.0.40
codegen_flags: <defaults>
</compile_context>

<pallas_src>
import functools
import math

import jax
import jax.numpy as jnp
from jax import lax
from jax.experimental import pallas as pl
from jax.experimental.pallas import tpu as pltpu


_VMEM_LIMIT = 48 * 1024 * 1024  # fits v7x's 64 MiB with headroom; OK on v5e/v6e


def _pick_tile(dim, target, align):
    """Largest tile <= target that divides `dim` and is a multiple of `align`;
    falls back to the full dim (single block) when no such tile exists."""
    if dim <= target:
        return dim
    t = (target // align) * align
    while t >= align:
        if dim % t == 0:
            return t
        t -= align
    return dim


# ---------------------------------------------------------------------------
# Kernel 1: parameter factoring  out[rows] = W[rows, F] @ factor[F]  (torch.mv)
# ---------------------------------------------------------------------------
def _factor_mv_kernel(w_ref, f_ref, o_ref):
    # w: (tr, F) f32, f: (1, F) f32 -> o: (tr, 1)
    o_ref[...] = lax.dot_general(
        w_ref[...], f_ref[...], (((1,), (1,)), ((), ())),
        preferred_element_type=jnp.float32,
    ).astype(o_ref.dtype)


def factor_mv(w_fac, factor, out_dtype=jnp.float32, tr=1024):
    rows, F = w_fac.shape
    tr = _pick_tile(rows, tr, 8)
    out = pl.pallas_call(
        _factor_mv_kernel,
        grid=(rows // tr,),
        in_specs=[
            pl.BlockSpec((tr, F), lambda i: (i, 0)),
            pl.BlockSpec((1, F), lambda i: (0, 0)),
        ],
        out_specs=pl.BlockSpec((tr, 1), lambda i: (i, 0)),
        out_shape=jax.ShapeDtypeStruct((rows, 1), out_dtype),
        compiler_params=pltpu.CompilerParams(
            dimension_semantics=("parallel",),
            vmem_limit_bytes=_VMEM_LIMIT,
        ),
    )(w_fac, factor.reshape(1, F))
    return out.reshape(rows)


# ---------------------------------------------------------------------------
# Kernel 2: tiled  Y = X @ W + b   (W in (K, N) layout, bf16 operands on the
#           MXU, f32 VMEM accumulator, init/finalize via pl.when).
# ---------------------------------------------------------------------------
def _matmul_bias_kernel(x_ref, w_ref, b_ref, o_ref, acc_ref):
    @pl.when(pl.program_id(2) == 0)
    def _init():
        acc_ref[...] = jnp.zeros_like(acc_ref)

    acc_ref[...] += jnp.dot(x_ref[...].astype(jnp.bfloat16), w_ref[...],
                            preferred_element_type=jnp.float32)

    @pl.when(pl.program_id(2) == pl.num_programs(2) - 1)
    def _finalize():
        o_ref[...] = (acc_ref[...] + b_ref[...]).astype(o_ref.dtype)


def matmul_bias(x, w_kn, b, out_dtype=jnp.float32, tm=512, tn=512, tk=512):
    """x: (M, K), w_kn: (K, N) bf16, b: (N,) -> (M, N) = x @ w_kn + b."""
    M, K = x.shape
    K2, N = w_kn.shape
    assert K == K2
    tm = _pick_tile(M, tm, 16)
    tn = _pick_tile(N, tn, 128)
    tk = _pick_tile(K, tk, 128)
    return pl.pallas_call(
        _matmul_bias_kernel,
        grid=(M // tm, N // tn, K // tk),
        in_specs=[
            pl.BlockSpec((tm, tk), lambda i, j, k: (i, k)),
            pl.BlockSpec((tk, tn), lambda i, j, k: (k, j)),
            pl.BlockSpec((1, tn), lambda i, j, k: (0, j)),
        ],
        out_specs=pl.BlockSpec((tm, tn), lambda i, j, k: (i, j)),
        out_shape=jax.ShapeDtypeStruct((M, N), out_dtype),
        scratch_shapes=[pltpu.VMEM((tm, tn), jnp.float32)],
        compiler_params=pltpu.CompilerParams(
            dimension_semantics=("parallel", "parallel", "arbitrary"),
            vmem_limit_bytes=_VMEM_LIMIT,
        ),
    )(x, w_kn.astype(jnp.bfloat16), b.reshape(1, N).astype(jnp.float32))


# ---------------------------------------------------------------------------
# Kernel 3: fused relative attention per (batch, head):
#   ac = (q+r_w_bias) @ k^T ; bd = (q+r_r_bias) @ r^T ; rel-shift(bd) in
#   registers ; scale ; softmax ; attn @ V.   (AC/BD never touch HBM.)
# ---------------------------------------------------------------------------
def _fused_rel_attn_kernel(scale, with_cov, q_ref, k_ref, v_ref, r_ref,
                           rwb_ref, rrb_ref, out_ref, *rest):
    cov_ref = rest[0] if with_cov else None

    q = q_ref[0]          # (T, D) bf16
    k = k_ref[0]
    v = v_ref[0]
    r = r_ref[0]          # (T, D) bf16   (len_r == len_q)
    rwb = rwb_ref[0]      # (1, D) bf16
    rrb = rrb_ref[0]
    T = q.shape[0]

    nt = (((1,), (1,)), ((), ()))  # contract head_dim of both operands
    ac = lax.dot_general(q + rwb, k, nt, preferred_element_type=jnp.float32)
    bd = lax.dot_general(q + rrb, r, nt, preferred_element_type=jnp.float32)

    # ---- Transformer-XL relative shift (== zero-pad / reshape trick):
    #   shifted[i, j] = bd[i, T-1-i+j]   for j <= i
    #                 = 0                for j == i+1
    #                 = bd[i+1, j-i-2]   for j >= i+2
    # Step 1: left-rotate row i by (T-1-i) with ceil(log2 T) conditional
    #         rotates on register values (static slices + concat, no scratch).
    row = lax.broadcasted_iota(jnp.int32, (T, T), 0)
    col = lax.broadcasted_iota(jnp.int32, (T, T), 1)
    amount = (T - 1) - row
    m = bd
    step = 1
    while step < T:                              # statically unrolled
        rolled = jnp.concatenate([m[:, step:], m[:, :step]], axis=1)
        m = jnp.where((amount & step) != 0, rolled, m)
        step *= 2
    # Step 2: the j >= i+2 region reads the *next* query row.
    m_up = jnp.concatenate([m[1:, :], m[:1, :]], axis=0)
    bd_shift = jnp.where(col <= row, m,
                         jnp.where(col == row + 1, 0.0, m_up))

    # ---- scale once, softmax (f32, exact), attn @ V
    scores = (ac + bd_shift) * scale
    smax = jnp.max(scores, axis=-1, keepdims=True)
    e = jnp.exp(scores - smax)
    p = e / jnp.sum(e, axis=-1, keepdims=True)
    if with_cov:
        cov_ref[0] = p
    out_ref[0] = jnp.dot(p.astype(v.dtype), v,
                         preferred_element_type=jnp.float32).astype(out_ref.dtype)


def fused_rel_attention(q, k, v, r, rwb, rrb, num_heads, scale,
                        return_coverage=False):
    """q/k/v/r: (B*H, T, D) bf16;  rwb/rrb: (H, 1, D) bf16."""
    BH, T, D = q.shape
    R = r.shape[1]
    H = num_heads
    B = BH // H
    assert R == T, "fused kernel assumes len_r == len_k == len_q (no mems)"

    kernel = functools.partial(_fused_rel_attn_kernel, scale, return_coverage)
    bh_map = lambda b, h: (b * H + h, 0, 0)
    head_map = lambda b, h: (h, 0, 0)

    out_shape = [jax.ShapeDtypeStruct((BH, T, D), jnp.bfloat16)]
    out_specs = [pl.BlockSpec((1, T, D), bh_map)]
    if return_coverage:
        out_shape.append(jax.ShapeDtypeStruct((BH, T, T), jnp.float32))
        out_specs.append(pl.BlockSpec((1, T, T), bh_map))

    outs = pl.pallas_call(
        kernel,
        grid=(B, H),
        in_specs=[
            pl.BlockSpec((1, T, D), bh_map),    # q
            pl.BlockSpec((1, T, D), bh_map),    # k
            pl.BlockSpec((1, T, D), bh_map),    # v
            pl.BlockSpec((1, R, D), bh_map),    # r (positional projection)
            pl.BlockSpec((1, 1, D), head_map),  # r_w_bias
            pl.BlockSpec((1, 1, D), head_map),  # r_r_bias
        ],
        out_specs=out_specs,
        out_shape=out_shape,
        compiler_params=pltpu.CompilerParams(
            dimension_semantics=("parallel", "parallel"),
            vmem_limit_bytes=_VMEM_LIMIT,
        ),
    )(q, k, v, r, rwb, rrb)
    if return_coverage:
        return outs[0], outs[1]
    return outs[0], None


# ---------------------------------------------------------------------------
# Forward pass (mask=None, dropout=0, incremental=False)
# ---------------------------------------------------------------------------
def mp_relative_self_attn_forward(params, x, pos, factor, num_heads,
                                  return_coverage=True):
    T, B, E = x.shape
    R = pos.shape[0]
    H = num_heads
    D = E // H
    BH = B * H
    scale = float(D) ** -0.5

    # --- factor the partitioned parameters (torch.mv), single f32 read each.
    in_w = factor_mv(params["in_proj_weight"], factor, jnp.bfloat16).reshape(3 * E, E)
    pos_w = factor_mv(params["pos_proj_weight"], factor, jnp.bfloat16).reshape(E, E)
    out_w = factor_mv(params["out_proj_weight"], factor, jnp.bfloat16).reshape(E, E)
    in_b = factor_mv(params["in_proj_bias"], factor, jnp.float32)
    pos_b = factor_mv(params["pos_proj_bias"], factor, jnp.float32)
    out_b = factor_mv(params["out_proj_bias"], factor, jnp.float32)
    r_w_bias = factor_mv(params["r_w_bias"], factor, jnp.float32)
    r_r_bias = factor_mv(params["r_r_bias"], factor, jnp.float32)

    # --- input / position projections (tiled bf16 GEMMs, weights transposed
    #     once -- a few MB -- into MXU-friendly (K, N) layout).
    in_lin = matmul_bias(x.reshape(T * B, E), in_w.T, in_b, jnp.bfloat16)
    pos_lin = matmul_bias(pos.reshape(R * B, E), pos_w.T, pos_b, jnp.bfloat16)

    # --- batch-head-major layout for the fused attention kernel.
    qkv = jnp.transpose(in_lin.reshape(T, B, H, 3, D), (3, 1, 2, 0, 4))
    q_bh = qkv[0].reshape(BH, T, D)
    k_bh = qkv[1].reshape(BH, T, D)
    v_bh = qkv[2].reshape(BH, T, D)
    r_bh = jnp.transpose(pos_lin.reshape(R, B, H, D), (1, 2, 0, 3)).reshape(BH, R, D)
    rwb = r_w_bias.reshape(H, 1, D).astype(jnp.bfloat16)
    rrb = r_r_bias.reshape(H, 1, D).astype(jnp.bfloat16)

    # --- fused scores + rel-shift + softmax + attn@V
    attn_out, coverage = fused_rel_attention(q_bh, k_bh, v_bh, r_bh, rwb, rrb,
                                             H, scale, return_coverage)

    # --- output projection
    ctx = jnp.transpose(attn_out, (1, 0, 2)).reshape(T * B, E)   # (T*B, E) bf16
    out = matmul_bias(ctx, out_w.T, out_b, jnp.float32)
    return out.reshape(T, B, E), coverage


# ---------------------------------------------------------------------------
# Pure-JAX reference (mirrors the kernel's bf16-operand / f32-accumulate
# precision scheme so the comparison validates the kernel logic tightly).
# ---------------------------------------------------------------------------
def relative_shift(x):
    B, Q, R = x.shape
    zero_pad = jnp.zeros((B, Q, 1), dtype=x.dtype)
    x_padded = jnp.concatenate([zero_pad, x], axis=2)
    x_view = x_padded.reshape(B, R + 1, Q)
    return x_view[:, 1:, :].reshape(B, Q, R)


def reference_forward(params, x, pos, factor, H):
    T, B, E = x.shape
    R = pos.shape[0]
    D = E // H
    scale = float(D) ** -0.5
    bf, f32 = jnp.bfloat16, jnp.float32

    def mv(w, out_dtype):
        return lax.dot_general(
            w, factor.reshape(1, -1), (((1,), (1,)), ((), ())),
            preferred_element_type=f32,
        ).reshape(-1).astype(out_dtype)

    in_w = mv(params["in_proj_weight"], bf).reshape(3 * E, E)
    pos_w = mv(params["pos_proj_weight"], bf).reshape(E, E)
    out_w = mv(params["out_proj_weight"], bf).reshape(E, E)
    in_b = mv(params["in_proj_bias"], f32)
    pos_b = mv(params["pos_proj_bias"], f32)
    out_b = mv(params["out_proj_bias"], f32)
    rwb = mv(params["r_w_bias"], f32).reshape(H, D).astype(bf)
    rrb = mv(params["r_r_bias"], f32).reshape(H, D).astype(bf)

    def proj(a, w_nk, bias, out_dtype):
        y = lax.dot_general(a.astype(bf), w_nk, (((1,), (1,)), ((), ())),
                            preferred_element_type=f32) + bias
        return y.astype(out_dtype)

    lin = proj(x.reshape(T * B, E), in_w, in_b, bf).reshape(T, B * H, 3, D)
    q, k, v = lin[:, :, 0], lin[:, :, 1], lin[:, :, 2]
    r = proj(pos.reshape(R * B, E), pos_w, pos_b, bf).reshape(R, B * H, D)
    qrw = (q.reshape(T, B, H, D) + rwb).reshape(T, B * H, D)
    qrr = (q.reshape(T, B, H, D) + rrb).reshape(T, B * H, D)
    ac = scale * jnp.einsum("qbd,kbd->bqk", qrw, k, preferred_element_type=f32)
    bd = scale * jnp.einsum("qbd,rbd->bqr", qrr, r, preferred_element_type=f32)
    bd = relative_shift(bd)[:, :, :T]
    p = jax.nn.softmax(ac + bd, axis=-1)
    ctx = jnp.einsum("bqk,kbd->qbd", p.astype(bf), v,
                     preferred_element_type=f32).astype(bf).reshape(T, B, E)
    out = proj(ctx.reshape(T * B, E), out_w, out_b, f32)
    return out.reshape(T, B, E), p


# ---------------------------------------------------------------------------
if __name__ == "__main__":
    key = jax.random.PRNGKey(0)
    E, H, F = 64, 4, 8          # embed_dim, num_heads, factor_size
    D = E // H
    T, B = 16, 2                # len_q, bsz
    R = T                       # len_r == len_k (no mems)

    keys = jax.random.split(key, 11)
    std = math.sqrt(2.0 / (E + E))
    # Note: the module's factor_to_rank Linear is unused in forward -> skipped.
    params = {
        "in_proj_weight": std * jax.random.normal(keys[0], (E * 3 * E, F), jnp.float32),
        "out_proj_weight": std * jax.random.normal(keys[1], (E * E, F), jnp.float32),
        "pos_proj_weight": std * jax.random.normal(keys[2], (E * E, F), jnp.float32),
        "in_proj_bias": 0.02 * jax.random.normal(keys[3], (3 * E, F), jnp.float32),
        "out_proj_bias": 0.02 * jax.random.normal(keys[4], (E, F), jnp.float32),
        "pos_proj_bias": 0.02 * jax.random.normal(keys[5], (E, F), jnp.float32),
        "r_w_bias": 0.02 * jax.random.normal(keys[6], (H * D, F), jnp.float32),
        "r_r_bias": 0.02 * jax.random.normal(keys[7], (H * D, F), jnp.float32),
    }
    x = jax.random.normal(keys[8], (T, B, E), jnp.float32)
    pos = jax.random.normal(keys[9], (R, B, E), jnp.float32)
    factor = 0.5 * jax.random.normal(keys[10], (F,), jnp.float32)

    fwd = jax.jit(functools.partial(mp_relative_self_attn_forward, num_heads=H))
    out, cov = fwd(params, x, pos, factor)
    out, cov = jax.block_until_ready((out, cov))

    ref_out, ref_cov = reference_forward(params, x, pos, factor, H)
    assert out.shape == (T, B, E) and cov.shape == (B * H, T, T)
    out_err = float(jnp.max(jnp.abs(out - ref_out)))
    cov_err = float(jnp.max(jnp.abs(cov - ref_cov)))
    assert jnp.allclose(out, ref_out, rtol=2e-2, atol=2e-2), (
        f"output mismatch vs reference (max abs diff {out_err})")
    assert jnp.allclose(cov, ref_cov, rtol=2e-2, atol=2e-2), (
        f"coverage mismatch vs reference (max abs diff {cov_err})")
    print("KERNEL_OK")
</pallas_src>

<mosaic_0001>
module attributes {stable_mosaic.version = 11 : i64} {
  func.func @_factor_mv_kernel(%arg0: i32, %arg1: memref<1024x8xf32, #tpu.memory_space<vmem>>, %arg2: memref<1x8xf32, #tpu.memory_space<vmem>>, %arg3: memref<1024x1xbf16, #tpu.memory_space<vmem>>) attributes {dimension_semantics = [#tpu.dimension_semantics<parallel>], iteration_bounds = array<i64: 12>, scalar_prefetch = 0 : i64, scratch_operands = 0 : i64, tpu.core_type = #tpu.core_type<tc>, window_params = [{transform_indices = @transform_0, window_bounds = array<i64: 1024, 8>}, {pipeline_mode = #tpu.pipeline_mode<synchronous>, transform_indices = @transform_1, window_bounds = array<i64: 1, 8>}, {transform_indices = @transform_2, window_bounds = array<i64: 1024, 1>}]} {
    %c0 = arith.constant 0 : index
    %c0_0 = arith.constant 0 : index
    %0 = vector.load %arg1[%c0, %c0_0] : memref<1024x8xf32, #tpu.memory_space<vmem>>, vector<1024x8xf32>
    %c0_1 = arith.constant 0 : index
    %c0_2 = arith.constant 0 : index
    %1 = vector.load %arg2[%c0_1, %c0_2] : memref<1x8xf32, #tpu.memory_space<vmem>>, vector<1x8xf32>
    %cst = arith.constant dense<0.000000e+00> : vector<1024x1xf32>
    %2 = tpu.matmul %0, %1, %cst {dimension_numbers = #tpu.dot_dimension_numbers<[1], [1], [0], [0], [0, 0, 1, 0], [], []>} : vector<1024x8xf32>, vector<1x8xf32>, vector<1024x1xf32> -> vector<1024x1xf32>
    %3 = arith.truncf %2 : vector<1024x1xf32> to vector<1024x1xbf16>
    %c0_3 = arith.constant 0 : index
    %c0_4 = arith.constant 0 : index
    %4 = vector.load %arg3[%c0_3, %c0_4] : memref<1024x1xbf16, #tpu.memory_space<vmem>>, vector<1024x1xbf16>
    tpu.vector_store %arg3[%c0_3, %c0_4], %3 {strides = array<i32>} : memref<1024x1xbf16, #tpu.memory_space<vmem>>, vector<1024x1xbf16>,
    return
  }
  func.func @transform_0(%arg0: i32) -> (i32, i32) {
    %c0_i32 = arith.constant 0 : i32
    %c0_i32_0 = arith.constant 0 : i32
    return %arg0, %c0_i32 : i32, i32
  }
  func.func @transform_1(%arg0: i32) -> (i32, i32) {
    %c0_i32 = arith.constant 0 : i32
    %c0_i32_0 = arith.constant 0 : i32
    %c0_i32_1 = arith.constant 0 : i32
    return %c0_i32, %c0_i32_0 : i32, i32
  }
  func.func @transform_2(%arg0: i32) -> (i32, i32) {
    %c0_i32 = arith.constant 0 : i32
    %c0_i32_0 = arith.constant 0 : i32
    return %arg0, %c0_i32 : i32, i32
  }
}

module attributes {stable_mosaic.version = 11 : i64} {
  func.func @_matmul_bias_kernel(%arg0: i32, %arg1: i32, %arg2: i32, %arg3: memref<32x64xf32, #tpu.memory_space<vmem>>, %arg4: memref<64x192xbf16, #tpu.memory_space<vmem>>, %arg5: memref<1x192xf32, #tpu.memory_space<vmem>>, %arg6: memref<32x192xbf16, #tpu.memory_space<vmem>>, %arg7: memref<32x192xf32, #tpu.memory_space<vmem>>) attributes {dimension_semantics = [#tpu.dimension_semantics<parallel>, #tpu.dimension_semantics<parallel>, #tpu.dimension_semantics<arbitrary>], iteration_bounds = array<i64: 1, 1, 1>, scalar_prefetch = 0 : i64, scratch_operands = 1 : i64, tpu.core_type = #tpu.core_type<tc>, window_params = [{transform_indices = @transform_0, window_bounds = array<i64: 32, 64>}, {transform_indices = @transform_1, window_bounds = array<i64: 64, 192>}, {transform_indices = @transform_2, window_bounds = array<i64: 1, 192>}, {transform_indices = @transform_3, window_bounds = array<i64: 32, 192>}]} {
    %c0_i32 = arith.constant 0 : i32
    %0 = arith.cmpi eq, %arg2, %c0_i32 : i32
    %1 = arith.extui %0 : i1 to i32
    %c0_i32_0 = arith.constant 0 : i32
    %2 = arith.cmpi ne, %1, %c0_i32_0 : i32
    scf.if %2 {
      %cst_10 = arith.constant 0.000000e+00 : f32
      %13 = vector.broadcast %cst_10 : f32 to vector<32x192xf32>
      %c0_11 = arith.constant 0 : index
      %c0_12 = arith.constant 0 : index
      %14 = vector.load %arg7[%c0_11, %c0_12] : memref<32x192xf32, #tpu.memory_space<vmem>>, vector<32x192xf32>
      tpu.vector_store %arg7[%c0_11, %c0_12], %13 {strides = array<i32>} : memref<32x192xf32, #tpu.memory_space<vmem>>, vector<32x192xf32>,
    } else {
    }
    %c0 = arith.constant 0 : index
    %c0_1 = arith.constant 0 : index
    %3 = vector.load %arg7[%c0, %c0_1] : memref<32x192xf32, #tpu.memory_space<vmem>>, vector<32x192xf32>
    %c0_2 = arith.constant 0 : index
    %c0_3 = arith.constant 0 : index
    %4 = vector.load %arg3[%c0_2, %c0_3] : memref<32x64xf32, #tpu.memory_space<vmem>>, vector<32x64xf32>
    %5 = arith.truncf %4 : vector<32x64xf32> to vector<32x64xbf16>
    %c0_4 = arith.constant 0 : index
    %c0_5 = arith.constant 0 : index
    %6 = vector.load %arg4[%c0_4, %c0_5] : memref<64x192xbf16, #tpu.memory_space<vmem>>, vector<64x192xbf16>
    %cst = arith.constant dense<0.000000e+00> : vector<32x192xf32>
    %7 = tpu.matmul %5, %6, %cst {dimension_numbers = #tpu.dot_dimension_numbers<[1], [0], [0], [1], [0, 0, 1, 1], [], []>} : vector<32x64xbf16>, vector<64x192xbf16>, vector<32x192xf32> -> vector<32x192xf32>
    %8 = arith.addf %3, %7 : vector<32x192xf32>
    %c0_6 = arith.constant 0 : index
    %c0_7 = arith.constant 0 : index
    %9 = vector.load %arg7[%c0_6, %c0_7] : memref<32x192xf32, #tpu.memory_space<vmem>>, vector<32x192xf32>
    tpu.vector_store %arg7[%c0_6, %c0_7], %8 {strides = array<i32>} : memref<32x192xf32, #tpu.memory_space<vmem>>, vector<32x192xf32>,
    %c0_i32_8 = arith.constant 0 : i32
    %10 = arith.cmpi eq, %arg2, %c0_i32_8 : i32
    %11 = arith.extui %10 : i1 to i32
    %c0_i32_9 = arith.constant 0 : i32
    %12 = arith.cmpi ne, %11, %c0_i32_9 : i32
    scf.if %12 {
      %c0_10 = arith.constant 0 : index
      %c0_11 = arith.constant 0 : index
      %13 = vector.load %arg7[%c0_10, %c0_11] : memref<32x192xf32, #tpu.memory_space<vmem>>, vector<32x192xf32>
      %c0_12 = arith.constant 0 : index
      %c0_13 = arith.constant 0 : index
      %14 = vector.load %arg5[%c0_12, %c0_13] : memref<1x192xf32, #tpu.memory_space<vmem>>, vector<1x192xf32>
      %15 = vector.broadcast %14 : vector<1x192xf32> to vector<32x192xf32>
      %16 = arith.addf %13, %15 : vector<32x192xf32>
      %17 = arith.truncf %16 : vector<32x192xf32> to vector<32x192xbf16>
      %c0_14 = arith.constant 0 : index
      %c0_15 = arith.constant 0 : index
      %18 = vector.load %arg6[%c0_14, %c0_15] : memref<32x192xbf16, #tpu.memory_space<vmem>>, vector<32x192xbf16>
      tpu.vector_store %arg6[%c0_14, %c0_15], %17 {strides = array<i32>} : memref<32x192xbf16, #tpu.memory_space<vmem>>, vector<32x192xbf16>,
    } else {
    }
    return
  }
  func.func @transform_0(%arg0: i32, %arg1: i32, %arg2: i32) -> (i32, i32) {
    %c0_i32 = arith.constant 0 : i32
    return %arg0, %arg2 : i32, i32
  }
  func.func @transform_1(%arg0: i32, %arg1: i32, %arg2: i32) -> (i32, i32) {
    %c0_i32 = arith.constant 0 : i32
    return %arg2, %arg1 : i32, i32
  }
  func.func @transform_2(%arg0: i32, %arg1: i32, %arg2: i32) -> (i32, i32) {
    %c0_i32 = arith.constant 0 : i32
    %c0_i32_0 = arith.constant 0 : i32
    return %c0_i32, %arg1 : i32, i32
  }
  func.func @transform_3(%arg0: i32, %arg1: i32, %arg2: i32) -> (i32, i32) {
    %c0_i32 = arith.constant 0 : i32
    return %arg0, %arg1 : i32, i32
  }
}

module attributes {stable_mosaic.version = 11 : i64} {
  func.func @_factor_mv_kernel(%arg0: i32, %arg1: memref<192x8xf32, #tpu.memory_space<vmem>>, %arg2: memref<1x8xf32, #tpu.memory_space<vmem>>, %arg3: memref<192x1xf32, #tpu.memory_space<vmem>>) attributes {dimension_semantics = [#tpu.dimension_semantics<parallel>], iteration_bounds = array<i64: 1>, scalar_prefetch = 0 : i64, scratch_operands = 0 : i64, tpu.core_type = #tpu.core_type<tc>, window_params = [{transform_indices = @transform_0, window_bounds = array<i64: 192, 8>}, {pipeline_mode = #tpu.pipeline_mode<synchronous>, transform_indices = @transform_1, window_bounds = array<i64: 1, 8>}, {transform_indices = @transform_2, window_bounds = array<i64: 192, 1>}]} {
    %c0 = arith.constant 0 : index
    %c0_0 = arith.constant 0 : index
    %0 = vector.load %arg1[%c0, %c0_0] : memref<192x8xf32, #tpu.memory_space<vmem>>, vector<192x8xf32>
    %c0_1 = arith.constant 0 : index
    %c0_2 = arith.constant 0 : index
    %1 = vector.load %arg2[%c0_1, %c0_2] : memref<1x8xf32, #tpu.memory_space<vmem>>, vector<1x8xf32>
    %cst = arith.constant dense<0.000000e+00> : vector<192x1xf32>
    %2 = tpu.matmul %0, %1, %cst {dimension_numbers = #tpu.dot_dimension_numbers<[1], [1], [0], [0], [0, 0, 1, 0], [], []>} : vector<192x8xf32>, vector<1x8xf32>, vector<192x1xf32> -> vector<192x1xf32>
    %c0_3 = arith.constant 0 : index
    %c0_4 = arith.constant 0 : index
    %3 = vector.load %arg3[%c0_3, %c0_4] : memref<192x1xf32, #tpu.memory_space<vmem>>, vector<192x1xf32>
    tpu.vector_store %arg3[%c0_3, %c0_4], %2 {strides = array<i32>} : memref<192x1xf32, #tpu.memory_space<vmem>>, vector<192x1xf32>,
    return
  }
  func.func @transform_0(%arg0: i32) -> (i32, i32) {
    %c0_i32 = arith.constant 0 : i32
    %c0_i32_0 = arith.constant 0 : i32
    return %arg0, %c0_i32 : i32, i32
  }
  func.func @transform_1(%arg0: i32) -> (i32, i32) {
    %c0_i32 = arith.constant 0 : i32
    %c0_i32_0 = arith.constant 0 : i32
    %c0_i32_1 = arith.constant 0 : i32
    return %c0_i32, %c0_i32_0 : i32, i32
  }
  func.func @transform_2(%arg0: i32) -> (i32, i32) {
    %c0_i32 = arith.constant 0 : i32
    %c0_i32_0 = arith.constant 0 : i32
    return %arg0, %c0_i32 : i32, i32
  }
}

module attributes {stable_mosaic.version = 11 : i64} {
  func.func @_factor_mv_kernel(%arg0: i32, %arg1: memref<1024x8xf32, #tpu.memory_space<vmem>>, %arg2: memref<1x8xf32, #tpu.memory_space<vmem>>, %arg3: memref<1024x1xbf16, #tpu.memory_space<vmem>>) attributes {dimension_semantics = [#tpu.dimension_semantics<parallel>], iteration_bounds = array<i64: 4>, scalar_prefetch = 0 : i64, scratch_operands = 0 : i64, tpu.core_type = #tpu.core_type<tc>, window_params = [{transform_indices = @transform_0, window_bounds = array<i64: 1024, 8>}, {pipeline_mode = #tpu.pipeline_mode<synchronous>, transform_indices = @transform_1, window_bounds = array<i64: 1, 8>}, {transform_indices = @transform_2, window_bounds = array<i64: 1024, 1>}]} {
    %c0 = arith.constant 0 : index
    %c0_0 = arith.constant 0 : index
    %0 = vector.load %arg1[%c0, %c0_0] : memref<1024x8xf32, #tpu.memory_space<vmem>>, vector<1024x8xf32>
    %c0_1 = arith.constant 0 : index
    %c0_2 = arith.constant 0 : index
    %1 = vector.load %arg2[%c0_1, %c0_2] : memref<1x8xf32, #tpu.memory_space<vmem>>, vector<1x8xf32>
    %cst = arith.constant dense<0.000000e+00> : vector<1024x1xf32>
    %2 = tpu.matmul %0, %1, %cst {dimension_numbers = #tpu.dot_dimension_numbers<[1], [1], [0], [0], [0, 0, 1, 0], [], []>} : vector<1024x8xf32>, vector<1x8xf32>, vector<1024x1xf32> -> vector<1024x1xf32>
    %3 = arith.truncf %2 : vector<1024x1xf32> to vector<1024x1xbf16>
    %c0_3 = arith.constant 0 : index
    %c0_4 = arith.constant 0 : index
    %4 = vector.load %arg3[%c0_3, %c0_4] : memref<1024x1xbf16, #tpu.memory_space<vmem>>, vector<1024x1xbf16>
    tpu.vector_store %arg3[%c0_3, %c0_4], %3 {strides = array<i32>} : memref<1024x1xbf16, #tpu.memory_space<vmem>>, vector<1024x1xbf16>,
    return
  }
  func.func @transform_0(%arg0: i32) -> (i32, i32) {
    %c0_i32 = arith.constant 0 : i32
    %c0_i32_0 = arith.constant 0 : i32
    return %arg0, %c0_i32 : i32, i32
  }
  func.func @transform_1(%arg0: i32) -> (i32, i32) {
    %c0_i32 = arith.constant 0 : i32
    %c0_i32_0 = arith.constant 0 : i32
    %c0_i32_1 = arith.constant 0 : i32
    return %c0_i32, %c0_i32_0 : i32, i32
  }
  func.func @transform_2(%arg0: i32) -> (i32, i32) {
    %c0_i32 = arith.constant 0 : i32
    %c0_i32_0 = arith.constant 0 : i32
    return %arg0, %c0_i32 : i32, i32
  }
}

module attributes {stable_mosaic.version = 11 : i64} {
  func.func @_factor_mv_kernel(%arg0: i32, %arg1: memref<64x8xf32, #tpu.memory_space<vmem>>, %arg2: memref<1x8xf32, #tpu.memory_space<vmem>>, %arg3: memref<64x1xf32, #tpu.memory_space<vmem>>) attributes {dimension_semantics = [#tpu.dimension_semantics<parallel>], iteration_bounds = array<i64: 1>, scalar_prefetch = 0 : i64, scratch_operands = 0 : i64, tpu.core_type = #tpu.core_type<tc>, window_params = [{transform_indices = @transform_0, window_bounds = array<i64: 64, 8>}, {pipeline_mode = #tpu.pipeline_mode<synchronous>, transform_indices = @transform_1, window_bounds = array<i64: 1, 8>}, {transform_indices = @transform_2, window_bounds = array<i64: 64, 1>}]} {
    %c0 = arith.constant 0 : index
    %c0_0 = arith.constant 0 : index
    %0 = vector.load %arg1[%c0, %c0_0] : memref<64x8xf32, #tpu.memory_space<vmem>>, vector<64x8xf32>
    %c0_1 = arith.constant 0 : index
    %c0_2 = arith.constant 0 : index
    %1 = vector.load %arg2[%c0_1, %c0_2] : memref<1x8xf32, #tpu.memory_space<vmem>>, vector<1x8xf32>
    %cst = arith.constant dense<0.000000e+00> : vector<64x1xf32>
    %2 = tpu.matmul %0, %1, %cst {dimension_numbers = #tpu.dot_dimension_numbers<[1], [1], [0], [0], [0, 0, 1, 0], [], []>} : vector<64x8xf32>, vector<1x8xf32>, vector<64x1xf32> -> vector<64x1xf32>
    %c0_3 = arith.constant 0 : index
    %c0_4 = arith.constant 0 : index
    %3 = vector.load %arg3[%c0_3, %c0_4] : memref<64x1xf32, #tpu.memory_space<vmem>>, vector<64x1xf32>
    tpu.vector_store %arg3[%c0_3, %c0_4], %2 {strides = array<i32>} : memref<64x1xf32, #tpu.memory_space<vmem>>, vector<64x1xf32>,
    return
  }
  func.func @transform_0(%arg0: i32) -> (i32, i32) {
    %c0_i32 = arith.constant 0 : i32
    %c0_i32_0 = arith.constant 0 : i32
    return %arg0, %c0_i32 : i32, i32
  }
  func.func @transform_1(%arg0: i32) -> (i32, i32) {
    %c0_i32 = arith.constant 0 : i32
    %c0_i32_0 = arith.constant 0 : i32
    %c0_i32_1 = arith.constant 0 : i32
    return %c0_i32, %c0_i32_0 : i32, i32
  }
  func.func @transform_2(%arg0: i32) -> (i32, i32) {
    %c0_i32 = arith.constant 0 : i32
    %c0_i32_0 = arith.constant 0 : i32
    return %arg0, %c0_i32 : i32, i32
  }
}

module attributes {stable_mosaic.version = 11 : i64} {
  func.func @_matmul_bias_kernel(%arg0: i32, %arg1: i32, %arg2: i32, %arg3: memref<32x64xf32, #tpu.memory_space<vmem>>, %arg4: memref<64x64xbf16, #tpu.memory_space<vmem>>, %arg5: memref<1x64xf32, #tpu.memory_space<vmem>>, %arg6: memref<32x64xbf16, #tpu.memory_space<vmem>>, %arg7: memref<32x64xf32, #tpu.memory_space<vmem>>) attributes {dimension_semantics = [#tpu.dimension_semantics<parallel>, #tpu.dimension_semantics<parallel>, #tpu.dimension_semantics<arbitrary>], iteration_bounds = array<i64: 1, 1, 1>, scalar_prefetch = 0 : i64, scratch_operands = 1 : i64, tpu.core_type = #tpu.core_type<tc>, window_params = [{transform_indices = @transform_0, window_bounds = array<i64: 32, 64>}, {transform_indices = @transform_1, window_bounds = array<i64: 64, 64>}, {transform_indices = @transform_2, window_bounds = array<i64: 1, 64>}, {transform_indices = @transform_3, window_bounds = array<i64: 32, 64>}]} {
    %c0_i32 = arith.constant 0 : i32
    %0 = arith.cmpi eq, %arg2, %c0_i32 : i32
    %1 = arith.extui %0 : i1 to i32
    %c0_i32_0 = arith.constant 0 : i32
    %2 = arith.cmpi ne, %1, %c0_i32_0 : i32
    scf.if %2 {
      %cst_10 = arith.constant 0.000000e+00 : f32
      %13 = vector.broadcast %cst_10 : f32 to vector<32x64xf32>
      %c0_11 = arith.constant 0 : index
      %c0_12 = arith.constant 0 : index
      %14 = vector.load %arg7[%c0_11, %c0_12] : memref<32x64xf32, #tpu.memory_space<vmem>>, vector<32x64xf32>
      tpu.vector_store %arg7[%c0_11, %c0_12], %13 {strides = array<i32>} : memref<32x64xf32, #tpu.memory_space<vmem>>, vector<32x64xf32>,
    } else {
    }
    %c0 = arith.constant 0 : index
    %c0_1 = arith.constant 0 : index
    %3 = vector.load %arg7[%c0, %c0_1] : memref<32x64xf32, #tpu.memory_space<vmem>>, vector<32x64xf32>
    %c0_2 = arith.constant 0 : index
    %c0_3 = arith.constant 0 : index
    %4 = vector.load %arg3[%c0_2, %c0_3] : memref<32x64xf32, #tpu.memory_space<vmem>>, vector<32x64xf32>
    %5 = arith.truncf %4 : vector<32x64xf32> to vector<32x64xbf16>
    %c0_4 = arith.constant 0 : index
    %c0_5 = arith.constant 0 : index
    %6 = vector.load %arg4[%c0_4, %c0_5] : memref<64x64xbf16, #tpu.memory_space<vmem>>, vector<64x64xbf16>
    %cst = arith.constant dense<0.000000e+00> : vector<32x64xf32>
    %7 = tpu.matmul %5, %6, %cst {dimension_numbers = #tpu.dot_dimension_numbers<[1], [0], [0], [1], [0, 0, 1, 1], [], []>} : vector<32x64xbf16>, vector<64x64xbf16>, vector<32x64xf32> -> vector<32x64xf32>
    %8 = arith.addf %3, %7 : vector<32x64xf32>
    %c0_6 = arith.constant 0 : index
    %c0_7 = arith.constant 0 : index
    %9 = vector.load %arg7[%c0_6, %c0_7] : memref<32x64xf32, #tpu.memory_space<vmem>>, vector<32x64xf32>
    tpu.vector_store %arg7[%c0_6, %c0_7], %8 {strides = array<i32>} : memref<32x64xf32, #tpu.memory_space<vmem>>, vector<32x64xf32>,
    %c0_i32_8 = arith.constant 0 : i32
    %10 = arith.cmpi eq, %arg2, %c0_i32_8 : i32
    %11 = arith.extui %10 : i1 to i32
    %c0_i32_9 = arith.constant 0 : i32
    %12 = arith.cmpi ne, %11, %c0_i32_9 : i32
    scf.if %12 {
      %c0_10 = arith.constant 0 : index
      %c0_11 = arith.constant 0 : index
      %13 = vector.load %arg7[%c0_10, %c0_11] : memref<32x64xf32, #tpu.memory_space<vmem>>, vector<32x64xf32>
      %c0_12 = arith.constant 0 : index
      %c0_13 = arith.constant 0 : index
      %14 = vector.load %arg5[%c0_12, %c0_13] : memref<1x64xf32, #tpu.memory_space<vmem>>, vector<1x64xf32>
      %15 = vector.broadcast %14 : vector<1x64xf32> to vector<32x64xf32>
      %16 = arith.addf %13, %15 : vector<32x64xf32>
      %17 = arith.truncf %16 : vector<32x64xf32> to vector<32x64xbf16>
      %c0_14 = arith.constant 0 : index
      %c0_15 = arith.constant 0 : index
      %18 = vector.load %arg6[%c0_14, %c0_15] : memref<32x64xbf16, #tpu.memory_space<vmem>>, vector<32x64xbf16>
      tpu.vector_store %arg6[%c0_14, %c0_15], %17 {strides = array<i32>} : memref<32x64xbf16, #tpu.memory_space<vmem>>, vector<32x64xbf16>,
    } else {
    }
    return
  }
  func.func @transform_0(%arg0: i32, %arg1: i32, %arg2: i32) -> (i32, i32) {
    %c0_i32 = arith.constant 0 : i32
    return %arg0, %arg2 : i32, i32
  }
  func.func @transform_1(%arg0: i32, %arg1: i32, %arg2: i32) -> (i32, i32) {
    %c0_i32 = arith.constant 0 : i32
    return %arg2, %arg1 : i32, i32
  }
  func.func @transform_2(%arg0: i32, %arg1: i32, %arg2: i32) -> (i32, i32) {
    %c0_i32 = arith.constant 0 : i32
    %c0_i32_0 = arith.constant 0 : i32
    return %c0_i32, %arg1 : i32, i32
  }
  func.func @transform_3(%arg0: i32, %arg1: i32, %arg2: i32) -> (i32, i32) {
    %c0_i32 = arith.constant 0 : i32
    return %arg0, %arg1 : i32, i32
  }
}

module attributes {stable_mosaic.version = 11 : i64} {
  func.func @_fused_rel_attn_kernel(%arg0: i32, %arg1: i32, %arg2: memref<1x16x16xbf16, #tpu.memory_space<vmem>>, %arg3: memref<1x16x16xbf16, #tpu.memory_space<vmem>>, %arg4: memref<1x16x16xbf16, #tpu.memory_space<vmem>>, %arg5: memref<1x16x16xbf16, #tpu.memory_space<vmem>>, %arg6: memref<1x1x16xbf16, #tpu.memory_space<vmem>>, %arg7: memref<1x1x16xbf16, #tpu.memory_space<vmem>>, %arg8: memref<1x16x16xbf16, #tpu.memory_space<vmem>>, %arg9: memref<1x16x16xf32, #tpu.memory_space<vmem>>) attributes {dimension_semantics = [#tpu.dimension_semantics<parallel>, #tpu.dimension_semantics<parallel>], iteration_bounds = array<i64: 2, 4>, scalar_prefetch = 0 : i64, scratch_operands = 0 : i64, tpu.core_type = #tpu.core_type<tc>, window_params = [{transform_indices = @transform_0, window_bounds = array<i64: 1, 16, 16>}, {transform_indices = @transform_1, window_bounds = array<i64: 1, 16, 16>}, {transform_indices = @transform_2, window_bounds = array<i64: 1, 16, 16>}, {transform_indices = @transform_3, window_bounds = array<i64: 1, 16, 16>}, {transform_indices = @transform_4, window_bounds = array<i64: 1, 1, 16>}, {transform_indices = @transform_5, window_bounds = array<i64: 1, 1, 16>}, {transform_indices = @transform_6, window_bounds = array<i64: 1, 16, 16>}, {transform_indices = @transform_7, window_bounds = array<i64: 1, 16, 16>}]} {
    %c0 = arith.constant 0 : index
    %c0_0 = arith.constant 0 : index
    %c0_1 = arith.constant 0 : index
    %0 = vector.load %arg2[%c0, %c0_0, %c0_1] : memref<1x16x16xbf16, #tpu.memory_space<vmem>>, vector<1x16x16xbf16>
    %1 = vector.shape_cast %0 : vector<1x16x16xbf16> to vector<16x16xbf16>
    %c0_2 = arith.constant 0 : index
    %c0_3 = arith.constant 0 : index
    %c0_4 = arith.constant 0 : index
    %2 = vector.load %arg3[%c0_2, %c0_3, %c0_4] : memref<1x16x16xbf16, #tpu.memory_space<vmem>>, vector<1x16x16xbf16>
    %3 = vector.shape_cast %2 : vector<1x16x16xbf16> to vector<16x16xbf16>
    %c0_5 = arith.constant 0 : index
    %c0_6 = arith.constant 0 : index
    %c0_7 = arith.constant 0 : index
    %4 = vector.load %arg4[%c0_5, %c0_6, %c0_7] : memref<1x16x16xbf16, #tpu.memory_space<vmem>>, vector<1x16x16xbf16>
    %5 = vector.shape_cast %4 : vector<1x16x16xbf16> to vector<16x16xbf16>
    %c0_8 = arith.constant 0 : index
    %c0_9 = arith.constant 0 : index
    %c0_10 = arith.constant 0 : index
    %6 = vector.load %arg5[%c0_8, %c0_9, %c0_10] : memref<1x16x16xbf16, #tpu.memory_space<vmem>>, vector<1x16x16xbf16>
    %7 = vector.shape_cast %6 : vector<1x16x16xbf16> to vector<16x16xbf16>
    %c0_11 = arith.constant 0 : index
    %c0_12 = arith.constant 0 : index
    %c0_13 = arith.constant 0 : index
    %8 = vector.load %arg6[%c0_11, %c0_12, %c0_13] : memref<1x1x16xbf16, #tpu.memory_space<vmem>>, vector<1x1x16xbf16>
    %9 = vector.shape_cast %8 : vector<1x1x16xbf16> to vector<1x16xbf16>
    %c0_14 = arith.constant 0 : index
    %c0_15 = arith.constant 0 : index
    %c0_16 = arith.constant 0 : index
    %10 = vector.load %arg7[%c0_14, %c0_15, %c0_16] : memref<1x1x16xbf16, #tpu.memory_space<vmem>>, vector<1x1x16xbf16>
    %11 = vector.shape_cast %10 : vector<1x1x16xbf16> to vector<1x16xbf16>
    %12 = vector.broadcast %9 : vector<1x16xbf16> to vector<16x16xbf16>
    %13 = arith.addf %1, %12 : vector<16x16xbf16>
    %cst = arith.constant dense<0.000000e+00> : vector<16x16xf32>
    %14 = tpu.matmul %13, %3, %cst {dimension_numbers = #tpu.dot_dimension_numbers<[1], [1], [0], [0], [0, 0, 1, 0], [], []>} : vector<16x16xbf16>, vector<16x16xbf16>, vector<16x16xf32> -> vector<16x16xf32>
    %15 = vector.broadcast %11 : vector<1x16xbf16> to vector<16x16xbf16>
    %16 = arith.addf %1, %15 : vector<16x16xbf16>
    %cst_17 = arith.constant dense<0.000000e+00> : vector<16x16xf32>
    %17 = tpu.matmul %16, %7, %cst_17 {dimension_numbers = #tpu.dot_dimension_numbers<[1], [1], [0], [0], [0, 0, 1, 0], [], []>} : vector<16x16xbf16>, vector<16x16xbf16>, vector<16x16xf32> -> vector<16x16xf32>
    %18 = tpu.iota {dimensions = array<i32: 0>} : vector<16x16xi32>
    %19 = tpu.iota {dimensions = array<i32: 1>} : vector<16x16xi32>
    %c15_i32 = arith.constant 15 : i32
    %20 = vector.broadcast %c15_i32 : i32 to vector<16x16xi32>
    %21 = arith.subi %20, %18 : vector<16x16xi32>
    %22 = vector.extract_strided_slice %17 {offsets = [0, 1], sizes = [16, 15], strides = [1, 1]} : vector<16x16xf32> to vector<16x15xf32>
    %23 = vector.extract_strided_slice %17 {offsets = [0, 0], sizes = [16, 1], strides = [1, 1]} : vector<16x16xf32> to vector<16x1xf32>
    %24 = tpu.concatenate %22, %23 in 1 : vector<16x15xf32>, vector<16x1xf32> -> vector<16x16xf32>
    %c1_i32 = arith.constant 1 : i32
    %25 = vector.broadcast %c1_i32 : i32 to vector<16x16xi32>
    %26 = arith.andi %21, %25 : vector<16x16xi32>
    %c0_i32 = arith.constant 0 : i32
    %27 = vector.broadcast %c0_i32 : i32 to vector<16x16xi32>
    %28 = arith.cmpi ne, %26, %27 : vector<16x16xi32>
    %29 = arith.select %28, %24, %17 : vector<16x16xi1>, vector<16x16xf32>
    %30 = vector.extract_strided_slice %29 {offsets = [0, 2], sizes = [16, 14], strides = [1, 1]} : vector<16x16xf32> to vector<16x14xf32>
    %31 = vector.extract_strided_slice %29 {offsets = [0, 0], sizes = [16, 2], strides = [1, 1]} : vector<16x16xf32> to vector<16x2xf32>
    %32 = tpu.concatenate %30, %31 in 1 : vector<16x14xf32>, vector<16x2xf32> -> vector<16x16xf32>
    %c2_i32 = arith.constant 2 : i32
    %33 = vector.broadcast %c2_i32 : i32 to vector<16x16xi32>
    %34 = arith.andi %21, %33 : vector<16x16xi32>
    %c0_i32_18 = arith.constant 0 : i32
    %35 = vector.broadcast %c0_i32_18 : i32 to vector<16x16xi32>
    %36 = arith.cmpi ne, %34, %35 : vector<16x16xi32>
    %37 = arith.select %36, %32, %29 : vector<16x16xi1>, vector<16x16xf32>
    %38 = vector.extract_strided_slice %37 {offsets = [0, 4], sizes = [16, 12], strides = [1, 1]} : vector<16x16xf32> to vector<16x12xf32>
    %39 = vector.extract_strided_slice %37 {offsets = [0, 0], sizes = [16, 4], strides = [1, 1]} : vector<16x16xf32> to vector<16x4xf32>
    %40 = tpu.concatenate %38, %39 in 1 : vector<16x12xf32>, vector<16x4xf32> -> vector<16x16xf32>
    %c4_i32 = arith.constant 4 : i32
    %41 = vector.broadcast %c4_i32 : i32 to vector<16x16xi32>
    %42 = arith.andi %21, %41 : vector<16x16xi32>
    %c0_i32_19 = arith.constant 0 : i32
    %43 = vector.broadcast %c0_i32_19 : i32 to vector<16x16xi32>
    %44 = arith.cmpi ne, %42, %43 : vector<16x16xi32>
    %45 = arith.select %44, %40, %37 : vector<16x16xi1>, vector<16x16xf32>
    %46 = vector.extract_strided_slice %45 {offsets = [0, 8], sizes = [16, 8], strides = [1, 1]} : vector<16x16xf32> to vector<16x8xf32>
    %47 = vector.extract_strided_slice %45 {offsets = [0, 0], sizes = [16, 8], strides = [1, 1]} : vector<16x16xf32> to vector<16x8xf32>
    %48 = tpu.concatenate %46, %47 in 1 : vector<16x8xf32>, vector<16x8xf32> -> vector<16x16xf32>
    %c8_i32 = arith.constant 8 : i32
    %49 = vector.broadcast %c8_i32 : i32 to vector<16x16xi32>
    %50 = arith.andi %21, %49 : vector<16x16xi32>
    %c0_i32_20 = arith.constant 0 : i32
    %51 = vector.broadcast %c0_i32_20 : i32 to vector<16x16xi32>
    %52 = arith.cmpi ne, %50, %51 : vector<16x16xi32>
    %53 = arith.select %52, %48, %45 : vector<16x16xi1>, vector<16x16xf32>
    %54 = vector.extract_strided_slice %53 {offsets = [1, 0], sizes = [15, 16], strides = [1, 1]} : vector<16x16xf32> to vector<15x16xf32>
    %55 = vector.extract_strided_slice %53 {offsets = [0, 0], sizes = [1, 16], strides = [1, 1]} : vector<16x16xf32> to vector<1x16xf32>
    %56 = tpu.concatenate %54, %55 in 0 : vector<15x16xf32>, vector<1x16xf32> -> vector<16x16xf32>
    %57 = arith.cmpi sle, %19, %18 : vector<16x16xi32>
    %c1_i32_21 = arith.constant 1 : i32
    %58 = vector.broadcast %c1_i32_21 : i32 to vector<16x16xi32>
    %59 = arith.addi %18, %58 : vector<16x16xi32>
    %60 = arith.cmpi eq, %19, %59 : vector<16x16xi32>
    %cst_22 = arith.constant 0.000000e+00 : f32
    %61 = vector.broadcast %cst_22 : f32 to vector<16x16xf32>
    %62 = arith.select %60, %61, %56 : vector<16x16xi1>, vector<16x16xf32>
    %63 = arith.select %57, %53, %62 : vector<16x16xi1>, vector<16x16xf32>
    %64 = arith.addf %14, %63 : vector<16x16xf32>
    %cst_23 = arith.constant 2.500000e-01 : f32
    %65 = vector.broadcast %cst_23 : f32 to vector<16x16xf32>
    %66 = arith.mulf %64, %65 : vector<16x16xf32>
    %cst_24 = arith.constant dense<0xFF800000> : vector<16xf32>
    %67 = vector.multi_reduction <maximumf>, %66, %cst_24 [1] : vector<16x16xf32> to vector<16xf32>
    %68 = vector.shape_cast %67 : vector<16xf32> to vector<16x1xf32>
    %69 = vector.broadcast %68 : vector<16x1xf32> to vector<16x16xf32>
    %70 = arith.subf %66, %69 : vector<16x16xf32>
    %71 = math.exp %70 : vector<16x16xf32>
    %cst_25 = arith.constant dense<0.000000e+00> : vector<16xf32>
    %72 = vector.multi_reduction <add>, %71, %cst_25 [1] : vector<16x16xf32> to vector<16xf32>
    %73 = vector.shape_cast %72 : vector<16xf32> to vector<16x1xf32>
    %74 = vector.broadcast %73 : vector<16x1xf32> to vector<16x16xf32>
    %75 = arith.divf %71, %74 : vector<16x16xf32>
    %c0_26 = arith.constant 0 : index
    %c0_27 = arith.constant 0 : index
    %c0_28 = arith.constant 0 : index
    %76 = vector.load %arg9[%c0_26, %c0_27, %c0_28] : memref<1x16x16xf32, #tpu.memory_space<vmem>>, vector<1x16x16xf32>
    %77 = vector.shape_cast %76 : vector<1x16x16xf32> to vector<16x16xf32>
    %78 = vector.shape_cast %75 : vector<16x16xf32> to vector<1x16x16xf32>
    tpu.vector_store %arg9[%c0_26, %c0_27, %c0_28], %78 {strides = array<i32>} : memref<1x16x16xf32, #tpu.memory_space<vmem>>, vector<1x16x16xf32>,
    %79 = arith.truncf %75 : vector<16x16xf32> to vector<16x16xbf16>
    %cst_29 = arith.constant dense<0.000000e+00> : vector<16x16xf32>
    %80 = tpu.matmul %79, %5, %cst_29 {dimension_numbers = #tpu.dot_dimension_numbers<[1], [0], [0], [1], [0, 0, 1, 1], [], []>} : vector<16x16xbf16>, vector<16x16xbf16>, vector<16x16xf32> -> vector<16x16xf32>
    %81 = arith.truncf %80 : vector<16x16xf32> to vector<16x16xbf16>
    %c0_30 = arith.constant 0 : index
    %c0_31 = arith.constant 0 : index
    %c0_32 = arith.constant 0 : index
    %82 = vector.load %arg8[%c0_30, %c0_31, %c0_32] : memref<1x16x16xbf16, #tpu.memory_space<vmem>>, vector<1x16x16xbf16>
    %83 = vector.shape_cast %82 : vector<1x16x16xbf16> to vector<16x16xbf16>
    %84 = vector.shape_cast %81 : vector<16x16xbf16> to vector<1x16x16xbf16>
    tpu.vector_store %arg8[%c0_30, %c0_31, %c0_32], %84 {strides = array<i32>} : memref<1x16x16xbf16, #tpu.memory_space<vmem>>, vector<1x16x16xbf16>,
    return
  }
  func.func @transform_0(%arg0: i32, %arg1: i32) -> (i32, i32, i32) {
    %c4_i32 = arith.constant 4 : i32
    %0 = arith.muli %arg0, %c4_i32 : i32
    %1 = arith.addi %0, %arg1 : i32
    %c0_i32 = arith.constant 0 : i32
    %c0_i32_0 = arith.constant 0 : i32
    %c0_i32_1 = arith.constant 0 : i32
    return %1, %c0_i32, %c0_i32_0 : i32, i32, i32
  }
  func.func @transform_1(%arg0: i32, %arg1: i32) -> (i32, i32, i32) {
    %c4_i32 = arith.constant 4 : i32
    %0 = arith.muli %arg0, %c4_i32 : i32
    %1 = arith.addi %0, %arg1 : i32
    %c0_i32 = arith.constant 0 : i32
    %c0_i32_0 = arith.constant 0 : i32
    %c0_i32_1 = arith.constant 0 : i32
    return %1, %c0_i32, %c0_i32_0 : i32, i32, i32
  }
  func.func @transform_2(%arg0: i32, %arg1: i32) -> (i32, i32, i32) {
    %c4_i32 = arith.constant 4 : i32
    %0 = arith.muli %arg0, %c4_i32 : i32
    %1 = arith.addi %0, %arg1 : i32
    %c0_i32 = arith.constant 0 : i32
    %c0_i32_0 = arith.constant 0 : i32
    %c0_i32_1 = arith.constant 0 : i32
    return %1, %c0_i32, %c0_i32_0 : i32, i32, i32
  }
  func.func @transform_3(%arg0: i32, %arg1: i32) -> (i32, i32, i32) {
    %c4_i32 = arith.constant 4 : i32
    %0 = arith.muli %arg0, %c4_i32 : i32
    %1 = arith.addi %0, %arg1 : i32
    %c0_i32 = arith.constant 0 : i32
    %c0_i32_0 = arith.constant 0 : i32
    %c0_i32_1 = arith.constant 0 : i32
    return %1, %c0_i32, %c0_i32_0 : i32, i32, i32
  }
  func.func @transform_4(%arg0: i32, %arg1: i32) -> (i32, i32, i32) {
    %c0_i32 = arith.constant 0 : i32
    %c0_i32_0 = arith.constant 0 : i32
    %c0_i32_1 = arith.constant 0 : i32
    return %arg1, %c0_i32, %c0_i32_0 : i32, i32, i32
  }
  func.func @transform_5(%arg0: i32, %arg1: i32) -> (i32, i32, i32) {
    %c0_i32 = arith.constant 0 : i32
    %c0_i32_0 = arith.constant 0 : i32
    %c0_i32_1 = arith.constant 0 : i32
    return %arg1, %c0_i32, %c0_i32_0 : i32, i32, i32
  }
  func.func @transform_6(%arg0: i32, %arg1: i32) -> (i32, i32, i32) {
    %c4_i32 = arith.constant 4 : i32
    %0 = arith.muli %arg0, %c4_i32 : i32
    %1 = arith.addi %0, %arg1 : i32
    %c0_i32 = arith.constant 0 : i32
    %c0_i32_0 = arith.constant 0 : i32
    %c0_i32_1 = arith.constant 0 : i32
    return %1, %c0_i32, %c0_i32_0 : i32, i32, i32
  }
  func.func @transform_7(%arg0: i32, %arg1: i32) -> (i32, i32, i32) {
    %c4_i32 = arith.constant 4 : i32
    %0 = arith.muli %arg0, %c4_i32 : i32
    %1 = arith.addi %0, %arg1 : i32
    %c0_i32 = arith.constant 0 : i32
    %c0_i32_0 = arith.constant 0 : i32
    %c0_i32_1 = arith.constant 0 : i32
    return %1, %c0_i32, %c0_i32_0 : i32, i32, i32
  }
}

module attributes {stable_mosaic.version = 11 : i64} {
  func.func @_matmul_bias_kernel(%arg0: i32, %arg1: i32, %arg2: i32, %arg3: memref<32x64xbf16, #tpu.memory_space<vmem>>, %arg4: memref<64x64xbf16, #tpu.memory_space<vmem>>, %arg5: memref<1x64xf32, #tpu.memory_space<vmem>>, %arg6: memref<32x64xf32, #tpu.memory_space<vmem>>, %arg7: memref<32x64xf32, #tpu.memory_space<vmem>>) attributes {dimension_semantics = [#tpu.dimension_semantics<parallel>, #tpu.dimension_semantics<parallel>, #tpu.dimension_semantics<arbitrary>], iteration_bounds = array<i64: 1, 1, 1>, scalar_prefetch = 0 : i64, scratch_operands = 1 : i64, tpu.core_type = #tpu.core_type<tc>, window_params = [{transform_indices = @transform_0, window_bounds = array<i64: 32, 64>}, {transform_indices = @transform_1, window_bounds = array<i64: 64, 64>}, {transform_indices = @transform_2, window_bounds = array<i64: 1, 64>}, {transform_indices = @transform_3, window_bounds = array<i64: 32, 64>}]} {
    %c0_i32 = arith.constant 0 : i32
    %0 = arith.cmpi eq, %arg2, %c0_i32 : i32
    %1 = arith.extui %0 : i1 to i32
    %c0_i32_0 = arith.constant 0 : i32
    %2 = arith.cmpi ne, %1, %c0_i32_0 : i32
    scf.if %2 {
      %cst_10 = arith.constant 0.000000e+00 : f32
      %12 = vector.broadcast %cst_10 : f32 to vector<32x64xf32>
      %c0_11 = arith.constant 0 : index
      %c0_12 = arith.constant 0 : index
      %13 = vector.load %arg7[%c0_11, %c0_12] : memref<32x64xf32, #tpu.memory_space<vmem>>, vector<32x64xf32>
      tpu.vector_store %arg7[%c0_11, %c0_12], %12 {strides = array<i32>} : memref<32x64xf32, #tpu.memory_space<vmem>>, vector<32x64xf32>,
    } else {
    }
    %c0 = arith.constant 0 : index
    %c0_1 = arith.constant 0 : index
    %3 = vector.load %arg7[%c0, %c0_1] : memref<32x64xf32, #tpu.memory_space<vmem>>, vector<32x64xf32>
    %c0_2 = arith.constant 0 : index
    %c0_3 = arith.constant 0 : index
    %4 = vector.load %arg3[%c0_2, %c0_3] : memref<32x64xbf16, #tpu.memory_space<vmem>>, vector<32x64xbf16>
    %c0_4 = arith.constant 0 : index
    %c0_5 = arith.constant 0 : index
    %5 = vector.load %arg4[%c0_4, %c0_5] : memref<64x64xbf16, #tpu.memory_space<vmem>>, vector<64x64xbf16>
    %cst = arith.constant dense<0.000000e+00> : vector<32x64xf32>
    %6 = tpu.matmul %4, %5, %cst {dimension_numbers = #tpu.dot_dimension_numbers<[1], [0], [0], [1], [0, 0, 1, 1], [], []>} : vector<32x64xbf16>, vector<64x64xbf16>, vector<32x64xf32> -> vector<32x64xf32>
    %7 = arith.addf %3, %6 : vector<32x64xf32>
    %c0_6 = arith.constant 0 : index
    %c0_7 = arith.constant 0 : index
    %8 = vector.load %arg7[%c0_6, %c0_7] : memref<32x64xf32, #tpu.memory_space<vmem>>, vector<32x64xf32>
    tpu.vector_store %arg7[%c0_6, %c0_7], %7 {strides = array<i32>} : memref<32x64xf32, #tpu.memory_space<vmem>>, vector<32x64xf32>,
    %c0_i32_8 = arith.constant 0 : i32
    %9 = arith.cmpi eq, %arg2, %c0_i32_8 : i32
    %10 = arith.extui %9 : i1 to i32
    %c0_i32_9 = arith.constant 0 : i32
    %11 = arith.cmpi ne, %10, %c0_i32_9 : i32
    scf.if %11 {
      %c0_10 = arith.constant 0 : index
      %c0_11 = arith.constant 0 : index
      %12 = vector.load %arg7[%c0_10, %c0_11] : memref<32x64xf32, #tpu.memory_space<vmem>>, vector<32x64xf32>
      %c0_12 = arith.constant 0 : index
      %c0_13 = arith.constant 0 : index
      %13 = vector.load %arg5[%c0_12, %c0_13] : memref<1x64xf32, #tpu.memory_space<vmem>>, vector<1x64xf32>
      %14 = vector.broadcast %13 : vector<1x64xf32> to vector<32x64xf32>
      %15 = arith.addf %12, %14 : vector<32x64xf32>
      %c0_14 = arith.constant 0 : index
      %c0_15 = arith.constant 0 : index
      %16 = vector.load %arg6[%c0_14, %c0_15] : memref<32x64xf32, #tpu.memory_space<vmem>>, vector<32x64xf32>
      tpu.vector_store %arg6[%c0_14, %c0_15], %15 {strides = array<i32>} : memref<32x64xf32, #tpu.memory_space<vmem>>, vector<32x64xf32>,
    } else {
    }
    return
  }
  func.func @transform_0(%arg0: i32, %arg1: i32, %arg2: i32) -> (i32, i32) {
    %c0_i32 = arith.constant 0 : i32
    return %arg0, %arg2 : i32, i32
  }
  func.func @transform_1(%arg0: i32, %arg1: i32, %arg2: i32) -> (i32, i32) {
    %c0_i32 = arith.constant 0 : i32
    return %arg2, %arg1 : i32, i32
  }
  func.func @transform_2(%arg0: i32, %arg1: i32, %arg2: i32) -> (i32, i32) {
    %c0_i32 = arith.constant 0 : i32
    %c0_i32_0 = arith.constant 0 : i32
    return %c0_i32, %arg1 : i32, i32
  }
  func.func @transform_3(%arg0: i32, %arg1: i32, %arg2: i32) -> (i32, i32) {
    %c0_i32 = arith.constant 0 : i32
    return %arg0, %arg1 : i32, i32
  }
}

</mosaic_0001>

<bundles_post_ra>
// kernel: mp_relative_self_attn_forward.20
= control target key start
LH: loop header
LB: loop body
LE: loop exit
PB: predicated region body
PF: predicated region fallthrough
CT: control target
= control target key end

     0   :  { %vm20_vm0 = vcmask 523264   ;;  %v244_v16 = vmov 0.0   ;;  %vm180_vm1 = vcmask 1043456   ;;  %vm181_vm2 = vcmask 523268   ;;  %s364_s1 = inlined_call_operand.vmem [shape: bf16[64,192], index: 1, kind: input, shape index: {}]   ;;  %s365_s0 = inlined_call_operand.vmem [shape: f32[32,64], index: 0, kind: input, shape index: {}]   ;;  %s366_s2 = inlined_call_operand.vmem [shape: f32[1,192], index: 2, kind: input, shape index: {}]   ;;  %s367_s3 = inlined_call_operand.vmem [shape: bf16[32,192], index: 3, kind: output, shape index: {}]  }
   0x1   :  { %v217_v0 = vld [vmem:[%s364_s1 + $0x30] sm:$0xf]  ;;  %v234_v1 = vld [vmem:[%s364_s1 + $0x34] sm:$0xf0]  ;;  %v233_v2 = vld [vmem:[%s364_s1 + $0x34] sm:$0xf] }
   0x2   :  { %v218_v3 = vor.u32 %v234_v1, %v217_v0  ;;  %v219_v4 = vld [vmem:[%s364_s1 + $0x38] sm:$0xf0]  ;;  %v209_v5 = vld [vmem:[%s364_s1 + $0x20] sm:$0xf]  ;;  %v232_v6 = vld [vmem:[%s364_s1 + $0x24] sm:$0xf0] }
   0x3   :  { %v222_v7 = vor.u32 %v233_v2, %v219_v4  ;;  %v231_v8 = vld [vmem:[%s364_s1 + $0x24] sm:$0xf]  ;;  %v211_v9 = vld [vmem:[%s364_s1 + $0x28] sm:$0xf0]  ;;  %v210_v10 = vor.u32 %v232_v6, %v209_v5  ;;  %v201_v12 = vld [vmem:[%s364_s1 + $0x10] sm:$0xf] }
   0x4   :  { %101 = vmatpush.bf16.msra.mxu0 %v218_v3  ;;  %235 = vmatpush.bf16.msra.mxu2 %v218_v3  ;;  %v214_v11 = vor.u32 %v231_v8, %v211_v9  ;;  %v230_v13 = vld [vmem:[%s364_s1 + $0x14] sm:$0xf0]  ;;  %v229_v14 = vld [vmem:[%s364_s1 + $0x14] sm:$0xf]  ;;  %v203_v15 = vld [vmem:[%s364_s1 + $0x18] sm:$0xf0] }
   0x5   :  { %120 = vmatpush.bf16.msra.mxu1 %v222_v7  ;;  %239 = vmatpush.bf16.msra.mxu3 %v222_v7  ;;  %21 = vst.msk [vmem:[#allocation2 + $0x8] sm:$0xff] %vm20_vm0, %v244_v16  ;;  %v202_v17 = vor.u32 %v230_v13, %v201_v12  ;;  %v206_v18 = vor.u32 %v229_v14, %v203_v15  ;;  %v193_v19 = vld [vmem:[%s364_s1] sm:$0xf]  ;;  %v228_v20 = vld [vmem:[%s364_s1 + $0x4] sm:$0xf0]  ;;  %v38_v24 = vld [vmem:[%s365_s0 + $0x10] sm:$0xff] }
   0x6   :  { %23 = vst.msk [vmem:[#allocation2 + $0x18] sm:$0xff] %vm20_vm0, %v244_v16  ;;  %v227_v21 = vld [vmem:[%s364_s1 + $0x4] sm:$0xf]  ;;  %v195_v22 = vld [vmem:[%s364_s1 + $0x8] sm:$0xf0]  ;;  %v194_v23 = vor.u32 %v228_v20, %v193_v19  ;;  %v39_v25 = vld [vmem:[%s365_s0 + $0x18] sm:$0xff] }
   0x7   :  { %25 = vst.msk [vmem:[#allocation2 + $0x28] sm:$0xff] %vm20_vm0, %v244_v16  ;;  %v198_v26 = vor.u32 %v227_v21, %v195_v22  ;;  %v36_v27 = vld [vmem:[%s365_s0] sm:$0xff]  ;;  %v37_v28 = vld [vmem:[%s365_s0 + $0x8] sm:$0xff]  ;;  %v41_v29 = vpack.c.bf16 %v39_v25, %v38_v24  ;;  %vm339_vm3 = vmor %vm181_vm2, %vm180_vm1 }
   0x8   :  { %102 = vmatpush.bf16.msra.mxu0 %v210_v10  ;;  %236 = vmatpush.bf16.msra.mxu2 %v210_v10  ;;  %27 = vst.msk [vmem:[#allocation2 + $0x38] sm:$0xff] %vm20_vm0, %v244_v16  ;;  %v40_v30 = vpack.c.bf16 %v37_v28, %v36_v27  ;;  %v162_v35 = vld [vmem:[%s366_s2] sm:$0x3] }
   0x9   :  { %121 = vmatpush.bf16.msra.mxu1 %v214_v11  ;;  %240 = vmatpush.bf16.msra.mxu3 %v214_v11  ;;  %v164_v37 = vperm.slane %v162_v35, 0  ;;  %v165_v41 = vperm.slane %v162_v35, 1 }
   0xc   :  { %103 = vmatpush.bf16.msra.mxu0 %v202_v17  ;;  %237 = vmatpush.bf16.msra.mxu2 %v202_v17  ;;  %v29_v31 = vld [vmem:[#allocation2 + $0x8] sm:$0xff] }
   0xd   :  { %122 = vmatpush.bf16.msra.mxu1 %v206_v18  ;;  %241 = vmatpush.bf16.msra.mxu3 %v206_v18  ;;  %v31_v40 = vld [vmem:[#allocation2 + $0x18] sm:$0xff] }
   0xe   :  { %v33_v36 = vld [vmem:[#allocation2 + $0x28] sm:$0xff] }
   0xf   :  { %v35_v50 = vld [vmem:[#allocation2 + $0x38] sm:$0xff] }
  0x10   :  { %104 = vmatpush.bf16.msra.mxu0 %v194_v23  ;;  %238 = vmatpush.bf16.msra.mxu2 %v194_v23 }
  0x11   :  { %123 = vmatpush.bf16.msra.mxu1 %v198_v26  ;;  %242 = vmatpush.bf16.msra.mxu3 %v198_v26 }
  0x13   :  { %223 = vmatmul.msk.bf16.vlgmr.msra.gmra.mxu0 %vm20_vm0, %v40_v30  ;;  %224 = vmatmul.msk.bf16.vlgmr.msra.gmra.mxu2 %vm20_vm0, %v41_v29 }
  0x14   :  { %225 = vmatmul.msk.bf16.vlgmr.msra.gmra.mxu1 %vm20_vm0, %v40_v30  ;;  %226 = vmatmul.msk.bf16.vlgmr.msra.gmra.mxu3 %vm20_vm0, %v41_v29 }
  0x90   :  { %v106_v32 = vpop.f32.mrf.mxu0 }
  0x91   :  { %v125_v33 = vpop.f32.mrf.mxu1  ;;  %v168_v45 = vadd.f32 %v164_v37, %v106_v32 }
  0x92   :  { %v136_v34 = vadd.f32 %v125_v33, %v29_v31 }
  0x94   :  { %144 = vst.msk [vmem:[#allocation2 + $0x8] sm:$0xff] %vm20_vm0, %v136_v34 }
  0x96   :  { %v111_v38 = vpop.f32.mrf.mxu2 }
  0x97   :  { %v130_v39 = vpop.f32.mrf.mxu3  ;;  %v172_v54 = vadd.f32 %v164_v37, %v111_v38 }
  0x98   :  { %v140_v42 = vadd.f32 %v130_v39, %v33_v36  ;;  %v108_v43 = vpop.f32.mrf.mxu0 }
  0x99   :  { %v127_v44 = vpop.f32.mrf.mxu1  ;;  %v170_v60 = vadd.f32 %v164_v37, %v108_v43 }
  0x9a   :  { %148 = vst.msk [vmem:[#allocation2 + $0x28] sm:$0xff] %vm20_vm0, %v140_v42  ;;  %v138_v46 = vadd.f32 %v127_v44, %v31_v40 }
  0x9b   :  { %v155_v47 = vld [vmem:[#allocation2 + $0x8] sm:$0xff] }
  0x9c   :  { %v169_v48 = vadd.f32 %v165_v41, %v155_v47  ;;  %146 = vst.msk [vmem:[#allocation2 + $0x18] sm:$0xff] %vm20_vm0, %v138_v46 }
  0x9e   :  { %v176_v51 = vpack.c.bf16 %v169_v48, %v168_v45  ;;  %v113_v52 = vpop.f32.mrf.mxu2 }
  0x9f   :  { %v132_v53 = vpop.f32.mrf.mxu3  ;;  %v174_v0 = vadd.f32 %v164_v37, %v113_v52 }
  0xa0   :  { %183 = vst.msk [vmem:[%s367_s3] sm:$0xff] %vm339_vm3, %v176_v51  ;;  %v142_v55 = vadd.f32 %v132_v53, %v35_v50 }
  0xa1   :  { %v159_v56 = vld [vmem:[#allocation2 + $0x28] sm:$0xff] }
  0xa2   :  { %v173_v57 = vadd.f32 %v165_v41, %v159_v56  ;;  %150 = vst.msk [vmem:[#allocation2 + $0x38] sm:$0xff] %vm20_vm0, %v142_v55 }
  0xa3   :  { %v157_v58 = vld [vmem:[#allocation2 + $0x18] sm:$0xff] }
  0xa4   :  { %v178_v59 = vpack.c.bf16 %v173_v57, %v172_v54  ;;  %v171_v61 = vadd.f32 %v165_v41, %v157_v58 }
  0xa6   :  { %185 = vst.msk [vmem:[%s367_s3 + $0x10] sm:$0xff] %vm339_vm3, %v178_v59  ;;  %v177_v62 = vpack.c.bf16 %v171_v61, %v170_v60 }
  0xa8   :  { %184 = vst.msk [vmem:[%s367_s3 + $0x8] sm:$0xff] %vm339_vm3, %v177_v62 }
  0xa9   :  { %v161_v63 = vld [vmem:[#allocation2 + $0x38] sm:$0xff] }
  0xaa   :  { %v175_v1 = vadd.f32 %v165_v41, %v161_v63 }
  0xac   :  { %v179_v2 = vpack.c.bf16 %v175_v1, %v174_v0 }
  0xae   :  { %186 = vst.msk [vmem:[%s367_s3 + $0x18] sm:$0xff] %vm339_vm3, %v179_v2 }

// kernel: mp_relative_self_attn_forward.15
= control target key start
LH: loop header
LB: loop body
LE: loop exit
PB: predicated region body
PF: predicated region fallthrough
CT: control target
= control target key end

     0   :  { %vm63_vm0 = vcmask 64512   ;;  %vm136_vm1 = vcmask 7168   ;;  %s402_s0 = inlined_call_operand.vmem [shape: f32[192,8], index: 0, kind: input, shape index: {}]   ;;  %s403_s1 = inlined_call_operand.vmem [shape: f32[1,8], index: 1, kind: input, shape index: {}]   ;;  %s404_s2 = inlined_call_operand.vmem [shape: f32[192,1], index: 2, kind: output, shape index: {}]  }
   0x1   :  { %v15_v0 = vld [vmem:[%s402_s0 + $0x20] sm:$0xff]  ;;  %v13_v2 = vld [vmem:[%s402_s0 + $0x10] sm:$0xff]  ;;  %v16_v7 = vld [vmem:[%s402_s0 + $0x28] sm:$0xff] }
   0x2   :  { %v187_v1 = vld [vmem:[%s403_s1] ss:$0 sm:$0xff]  ;;  %v14_v8 = vld [vmem:[%s402_s0 + $0x18] sm:$0xff]  ;;  %v12_v12 = vld [vmem:[%s402_s0 + $0x8] sm:$0xff] }
   0x3   :  { %v11_v3 = vld [vmem:[%s402_s0] sm:$0xff]  ;;  %v43_v4 = vmul.f32 %v187_v1, %v15_v0  ;;  %v41_v5 = vmul.f32 %v187_v1, %v13_v2  ;;  %v44_v13 = vmul.f32 %v187_v1, %v16_v7  ;;  %v42_v14 = vmul.f32 %v187_v1, %v14_v8  ;;  %v18_v20 = vld [vmem:[%s402_s0 + $0x38] sm:$0xff]  ;;  %v17_v21 = vld [vmem:[%s402_s0 + $0x30] sm:$0xff] }
   0x4   :  { %v39_v6 = vmul.f32 %v187_v1, %v11_v3  ;;  %v40_v15 = vmul.f32 %v187_v1, %v12_v12  ;;  %v19_v19 = vld [vmem:[%s402_s0 + $0x40] sm:$0xff]  ;;  %v46_v23 = vmul.f32 %v187_v1, %v18_v20  ;;  %v45_v24 = vmul.f32 %v187_v1, %v17_v21  ;;  %v22_v28 = vld [vmem:[%s402_s0 + $0x58] sm:$0xff]  ;;  %v21_v29 = vld [vmem:[%s402_s0 + $0x50] sm:$0xff] }
   0x5   :  { %v76_v9 = vsel %vm63_vm0, %v43_v4, 0.0  ;;  %v70_v10 = vsel %vm63_vm0, %v41_v5, 0.0  ;;  %v79_v16 = vsel %vm63_vm0, %v44_v13, 0.0  ;;  %v73_v17 = vsel %vm63_vm0, %v42_v14, 0.0  ;;  %v20_v30 = vld [vmem:[%s402_s0 + $0x48] sm:$0xff]  ;;  %v25_v37 = vld [vmem:[%s402_s0 + $0x70] sm:$0xff] }
   0x6   :  { %v64_v11 = vsel %vm63_vm0, %v39_v6, 0.0  ;;  %77 = vadd.xlane.f32.xlu2 %v76_v9  ;;  %71 = vadd.xlane.f32.xlu1 %v70_v10  ;;  %v67_v18 = vsel %vm63_vm0, %v40_v15, 0.0  ;;  %v47_v22 = vmul.f32 %v187_v1, %v19_v19  ;;  %v85_v26 = vsel %vm63_vm0, %v46_v23, 0.0  ;;  %v24_v38 = vld [vmem:[%s402_s0 + $0x68] sm:$0xff]  ;;  %v23_v39 = vld [vmem:[%s402_s0 + $0x60] sm:$0xff]  ;;  %v26_v48 = vld [vmem:[%s402_s0 + $0x78] sm:$0xff] }
   0x7   :  { %65 = vadd.xlane.f32.xlu0 %v64_v11  ;;  %v82_v27 = vsel %vm63_vm0, %v45_v24, 0.0  ;;  %v50_v31 = vmul.f32 %v187_v1, %v22_v28  ;;  %v49_v32 = vmul.f32 %v187_v1, %v21_v29  ;;  %v48_v33 = vmul.f32 %v187_v1, %v20_v30  ;;  %v28_v46 = vld [vmem:[%s402_s0 + $0x88] sm:$0xff]  ;;  %v27_v47 = vld [vmem:[%s402_s0 + $0x80] sm:$0xff]  ;;  %v30_v56 = vld [vmem:[%s402_s0 + $0x98] sm:$0xff] }
   0x8   :  { %v88_v25 = vsel %vm63_vm0, %v47_v22, 0.0  ;;  %v53_v40 = vmul.f32 %v187_v1, %v25_v37  ;;  %v52_v41 = vmul.f32 %v187_v1, %v24_v38  ;;  %v51_v42 = vmul.f32 %v187_v1, %v23_v39  ;;  %v31_v55 = vld [vmem:[%s402_s0 + $0xa0] sm:$0xff]  ;;  %v29_v57 = vld [vmem:[%s402_s0 + $0x90] sm:$0xff]  ;;  %v34_v0 = vld [vmem:[%s402_s0 + $0xb8] sm:$0xff] }
   0x9   :  { %v97_v34 = vsel %vm63_vm0, %v50_v31, 0.0  ;;  %v94_v35 = vsel %vm63_vm0, %v49_v32, 0.0  ;;  %v91_v36 = vsel %vm63_vm0, %v48_v33, 0.0  ;;  %v56_v49 = vmul.f32 %v187_v1, %v28_v46  ;;  %v33_v2 = vld [vmem:[%s402_s0 + $0xb0] sm:$0xff]  ;;  %v32_v3 = vld [vmem:[%s402_s0 + $0xa8] sm:$0xff] }
   0xa   :  { %v106_v43 = vsel %vm63_vm0, %v53_v40, 0.0  ;;  %v103_v44 = vsel %vm63_vm0, %v52_v41, 0.0  ;;  %v100_v45 = vsel %vm63_vm0, %v51_v42, 0.0  ;;  %v55_v50 = vmul.f32 %v187_v1, %v27_v47 }
   0xb   :  { %v54_v51 = vmul.f32 %v187_v1, %v26_v48  ;;  %v115_v52 = vsel %vm63_vm0, %v56_v49, 0.0  ;;  %v59_v58 = vmul.f32 %v187_v1, %v31_v55  ;;  %v58_v59 = vmul.f32 %v187_v1, %v30_v56 }
   0xc   :  { %v112_v53 = vsel %vm63_vm0, %v55_v50, 0.0  ;;  %v57_v60 = vmul.f32 %v187_v1, %v29_v57  ;;  %v62_v4 = vmul.f32 %v187_v1, %v34_v0  ;;  %v61_v5 = vmul.f32 %v187_v1, %v33_v2 }
   0xd   :  { %v109_v54 = vsel %vm63_vm0, %v54_v51, 0.0  ;;  %v124_v61 = vsel %vm63_vm0, %v59_v58, 0.0  ;;  %v121_v62 = vsel %vm63_vm0, %v58_v59, 0.0  ;;  %v60_v6 = vmul.f32 %v187_v1, %v32_v3 }
   0xe   :  { %80 = vadd.xlane.f32.xlu2 %v79_v16  ;;  %74 = vadd.xlane.f32.xlu1 %v73_v17  ;;  %v118_v63 = vsel %vm63_vm0, %v57_v60, 0.0  ;;  %v133_v7 = vsel %vm63_vm0, %v62_v4, 0.0  ;;  %v130_v8 = vsel %vm63_vm0, %v61_v5, 0.0 }
   0xf   :  { %68 = vadd.xlane.f32.xlu0 %v67_v18  ;;  %v127_v9 = vsel %vm63_vm0, %v60_v6, 0.0 }
  0x16   :  { %89 = vadd.xlane.f32.xlu2 %v88_v25  ;;  %86 = vadd.xlane.f32.xlu1 %v85_v26 }
  0x17   :  { %83 = vadd.xlane.f32.xlu0 %v82_v27 }
  0x1e   :  { %98 = vadd.xlane.f32.xlu2 %v97_v34  ;;  %95 = vadd.xlane.f32.xlu1 %v94_v35 }
  0x1f   :  { %92 = vadd.xlane.f32.xlu0 %v91_v36 }
  0x26   :  { %107 = vadd.xlane.f32.xlu2 %v106_v43  ;;  %104 = vadd.xlane.f32.xlu1 %v103_v44 }
  0x27   :  { %101 = vadd.xlane.f32.xlu0 %v100_v45 }
  0x2e   :  { %116 = vadd.xlane.f32.xlu2 %v115_v52  ;;  %113 = vadd.xlane.f32.xlu1 %v112_v53 }
  0x2f   :  { %110 = vadd.xlane.f32.xlu0 %v109_v54 }
  0x36   :  { %125 = vadd.xlane.f32.xlu2 %v124_v61  ;;  %122 = vadd.xlane.f32.xlu1 %v121_v62 }
  0x37   :  { %119 = vadd.xlane.f32.xlu0 %v118_v63 }
  0x3e   :  { %134 = vadd.xlane.f32.xlu2 %v133_v7  ;;  %131 = vadd.xlane.f32.xlu1 %v130_v8 }
  0x3f   :  { %128 = vadd.xlane.f32.xlu0 %v127_v9 }
  0x79   :  { %v78_v10 = vpop.xlane.xlu2 %77  ;;  %v72_v11 = vpop.xlane.xlu1 %71 }
  0x7a   :  { %141 = vst.msk [vmem:[%s404_s2 + $0x20] sm:$0xff] %vm136_vm1, %v78_v10  ;;  %v66_v12 = vpop.xlane.xlu0 %65 }
  0x7b   :  { %139 = vst.msk [vmem:[%s404_s2 + $0x10] sm:$0xff] %vm136_vm1, %v72_v11 }
  0x7c   :  { %137 = vst.msk [vmem:[%s404_s2] sm:$0xff] %vm136_vm1, %v66_v12 }
  0x81   :  { %v81_v1 = vpop.xlane.xlu2 %80  ;;  %v75_v13 = vpop.xlane.xlu1 %74 }
  0x82   :  { %142 = vst.msk [vmem:[%s404_s2 + $0x28] sm:$0xff] %vm136_vm1, %v81_v1  ;;  %v69_v14 = vpop.xlane.xlu0 %68 }
  0x83   :  { %140 = vst.msk [vmem:[%s404_s2 + $0x18] sm:$0xff] %vm136_vm1, %v75_v13 }
  0x84   :  { %138 = vst.msk [vmem:[%s404_s2 + $0x8] sm:$0xff] %vm136_vm1, %v69_v14 }
  0x89   :  { %v90_v15 = vpop.xlane.xlu2 %89  ;;  %v87_v16 = vpop.xlane.xlu1 %86 }
  0x8a   :  { %145 = vst.msk [vmem:[%s404_s2 + $0x40] sm:$0xff] %vm136_vm1, %v90_v15  ;;  %v84_v17 = vpop.xlane.xlu0 %83 }
  0x8b   :  { %144 = vst.msk [vmem:[%s404_s2 + $0x38] sm:$0xff] %vm136_vm1, %v87_v16 }
  0x8c   :  { %143 = vst.msk [vmem:[%s404_s2 + $0x30] sm:$0xff] %vm136_vm1, %v84_v17 }
  0x91   :  { %v99_v18 = vpop.xlane.xlu2 %98  ;;  %v96_v19 = vpop.xlane.xlu1 %95 }
  0x92   :  { %148 = vst.msk [vmem:[%s404_s2 + $0x58] sm:$0xff] %vm136_vm1, %v99_v18  ;;  %v93_v20 = vpop.xlane.xlu0 %92 }
  0x93   :  { %147 = vst.msk [vmem:[%s404_s2 + $0x50] sm:$0xff] %vm136_vm1, %v96_v19 }
  0x94   :  { %146 = vst.msk [vmem:[%s404_s2 + $0x48] sm:$0xff] %vm136_vm1, %v93_v20 }
  0x99   :  { %v108_v21 = vpop.xlane.xlu2 %107  ;;  %v105_v22 = vpop.xlane.xlu1 %104 }
  0x9a   :  { %151 = vst.msk [vmem:[%s404_s2 + $0x70] sm:$0xff] %vm136_vm1, %v108_v21  ;;  %v102_v23 = vpop.xlane.xlu0 %101 }
  0x9b   :  { %150 = vst.msk [vmem:[%s404_s2 + $0x68] sm:$0xff] %vm136_vm1, %v105_v22 }
  0x9c   :  { %149 = vst.msk [vmem:[%s404_s2 + $0x60] sm:$0xff] %vm136_vm1, %v102_v23 }
  0xa1   :  { %v117_v24 = vpop.xlane.xlu2 %116  ;;  %v114_v25 = vpop.xlane.xlu1 %113 }
  0xa2   :  { %154 = vst.msk [vmem:[%s404_s2 + $0x88] sm:$0xff] %vm136_vm1, %v117_v24  ;;  %v111_v26 = vpop.xlane.xlu0 %110 }
  0xa3   :  { %153 = vst.msk [vmem:[%s404_s2 + $0x80] sm:$0xff] %vm136_vm1, %v114_v25 }
  0xa4   :  { %152 = vst.msk [vmem:[%s404_s2 + $0x78] sm:$0xff] %vm136_vm1, %v111_v26 }
  0xa9   :  { %v126_v27 = vpop.xlane.xlu2 %125  ;;  %v123_v28 = vpop.xlane.xlu1 %122 }
  0xaa   :  { %157 = vst.msk [vmem:[%s404_s2 + $0xa0] sm:$0xff] %vm136_vm1, %v126_v27  ;;  %v120_v29 = vpop.xlane.xlu0 %119 }
  0xab   :  { %156 = vst.msk [vmem:[%s404_s2 + $0x98] sm:$0xff] %vm136_vm1, %v123_v28 }
  0xac   :  { %155 = vst.msk [vmem:[%s404_s2 + $0x90] sm:$0xff] %vm136_vm1, %v120_v29 }
  0xb1   :  { %v135_v30 = vpop.xlane.xlu2 %134  ;;  %v132_v31 = vpop.xlane.xlu1 %131 }
  0xb2   :  { %160 = vst.msk [vmem:[%s404_s2 + $0xb8] sm:$0xff] %vm136_vm1, %v135_v30  ;;  %v129_v32 = vpop.xlane.xlu0 %128 }
  0xb3   :  { %159 = vst.msk [vmem:[%s404_s2 + $0xb0] sm:$0xff] %vm136_vm1, %v132_v31 }
  0xb4   :  { %158 = vst.msk [vmem:[%s404_s2 + $0xa8] sm:$0xff] %vm136_vm1, %v129_v32 }

// kernel: mp_relative_self_attn_forward.12
= control target key start
LH: loop header
LB: loop body
LE: loop exit
PB: predicated region body
PF: predicated region fallthrough
CT: control target
= control target key end

     0   :  { %s1149_s9 = smov 0   ;;  %s1824_s0 = inlined_call_operand.vmem [shape: f32[12288,8], index: 0, kind: input, shape index: {}]   ;;  %s1825_s1 = inlined_call_operand.vmem [shape: f32[1,8], index: 1, kind: input, shape index: {}]   ;;  %s1826_s2 = inlined_call_operand.vmem [shape: bf16[12288,1], index: 2, kind: output, shape index: {}]  }
   0x1 LB: > { %s1105_s10 = sadd.s32 4294967295, %s1132_s9   ;;  %p1109_p0 = scmp.ge.s32.totalorder %s1132_s9, 1  ;;  %s1132_s9 = sphi %s1149_s9, %s12_s9  }
   0x2   : > { %p113_p1 = scmp.lt.s32.totalorder %s1132_s9, 13 }
   0x4   : > { %p114_p2 = pnand %p1109_p0, %p113_p1 }
   0x5   : > { %s1110_s11 = sshll.u32 (!%p114_p2), %s1105_s10, 7 }
   0x6   : > { %117 = sbr.rel (%p114_p2) target bundleno = 474 (0x1da), region = 28  ;;  %p136_p3 = scmp.lt.s32.totalorder (!%p114_p2), %s1110_s11, 1535 }
   0xb   : > { %s1828_s11 = smov (!%p136_p3, %s1110_s11), 1535  ;;  %v1162_v0 = vld [vmem:[%s1825_s1] ss:$0 sm:$0xff]  ;;  %vm407_vm0 = vcmask 64512   ;;  %vm920_vm1 = vcmask 3072  }
   0xc   : > { %s1111_s14 = sshll.u32 %s1828_s11, 3  ;;  %s1113_s18 = sshll.u32 %s1828_s11, 2 }
   0xd   : > { %s1168_s17 = scalar_lea.vmem %s1824_s0, %s1111_s14  ;;  %s1315_s21 = scalar_lea.vmem %s1826_s2, %s1113_s18 }
   0xe   : > { %v149_v1 = vld [vmem:[%s1168_s17 + $0x10] sm:$0xff]  ;;  %v147_v2 = vld [vmem:[%s1168_s17] sm:$0xff]  ;;  %v150_v7 = vld [vmem:[%s1168_s17 + $0x18] sm:$0xff] }
   0xf   : > { %v151_v3 = vld [vmem:[%s1168_s17 + $0x20] sm:$0xff]  ;;  %v281_v4 = vmul.f32 %v1162_v0, %v149_v1  ;;  %v279_v5 = vmul.f32 %v1162_v0, %v147_v2  ;;  %v148_v8 = vld [vmem:[%s1168_s17 + $0x8] sm:$0xff]  ;;  %v282_v13 = vmul.f32 %v1162_v0, %v150_v7  ;;  %v154_v19 = vld [vmem:[%s1168_s17 + $0x38] sm:$0xff] }
  0x10   : > { %v283_v6 = vmul.f32 %v1162_v0, %v151_v3  ;;  %v152_v12 = vld [vmem:[%s1168_s17 + $0x28] sm:$0xff]  ;;  %v280_v14 = vmul.f32 %v1162_v0, %v148_v8  ;;  %v153_v20 = vld [vmem:[%s1168_s17 + $0x30] sm:$0xff]  ;;  %v155_v21 = vld [vmem:[%s1168_s17 + $0x40] sm:$0xff]  ;;  %v286_v22 = vmul.f32 %v1162_v0, %v154_v19 }
  0x11   : > { %v414_v9 = vsel %vm407_vm0, %v281_v4, 0.0  ;;  %v408_v10 = vsel %vm407_vm0, %v279_v5, 0.0  ;;  %v284_v15 = vmul.f32 %v1162_v0, %v152_v12  ;;  %v417_v16 = vsel %vm407_vm0, %v282_v13, 0.0  ;;  %v157_v28 = vld [vmem:[%s1168_s17 + $0x50] sm:$0xff]  ;;  %v156_v29 = vld [vmem:[%s1168_s17 + $0x48] sm:$0xff]  ;;  %v158_v30 = vld [vmem:[%s1168_s17 + $0x58] sm:$0xff] }
  0x12   : > { %v420_v11 = vsel %vm407_vm0, %v283_v6, 0.0  ;;  %415 = vadd.xlane.f32.xlu1 %v414_v9  ;;  %409 = vadd.xlane.f32.xlu0 %v408_v10  ;;  %v411_v17 = vsel %vm407_vm0, %v280_v14, 0.0  ;;  %v285_v23 = vmul.f32 %v1162_v0, %v153_v20  ;;  %v287_v24 = vmul.f32 %v1162_v0, %v155_v21  ;;  %v160_v37 = vld [vmem:[%s1168_s17 + $0x68] sm:$0xff]  ;;  %v159_v38 = vld [vmem:[%s1168_s17 + $0x60] sm:$0xff]  ;;  %v161_v39 = vld [vmem:[%s1168_s17 + $0x70] sm:$0xff] }
  0x13   : > { %421 = vadd.xlane.f32.xlu2 %v420_v11  ;;  %v423_v18 = vsel %vm407_vm0, %v284_v15, 0.0  ;;  %v429_v25 = vsel %vm407_vm0, %v286_v22, 0.0  ;;  %v289_v31 = vmul.f32 %v1162_v0, %v157_v28  ;;  %v288_v32 = vmul.f32 %v1162_v0, %v156_v29  ;;  %v163_v46 = vld [vmem:[%s1168_s17 + $0x80] sm:$0xff]  ;;  %v162_v47 = vld [vmem:[%s1168_s17 + $0x78] sm:$0xff]  ;;  %v164_v48 = vld [vmem:[%s1168_s17 + $0x88] sm:$0xff] }
  0x14   : > { %v426_v26 = vsel %vm407_vm0, %v285_v23, 0.0  ;;  %v432_v27 = vsel %vm407_vm0, %v287_v24, 0.0  ;;  %v290_v33 = vmul.f32 %v1162_v0, %v158_v30  ;;  %v292_v40 = vmul.f32 %v1162_v0, %v160_v37  ;;  %v166_v55 = vld [vmem:[%s1168_s17 + $0x98] sm:$0xff]  ;;  %v165_v56 = vld [vmem:[%s1168_s17 + $0x90] sm:$0xff]  ;;  %v167_v57 = vld [vmem:[%s1168_s17 + $0xa0] sm:$0xff] }
  0x15   : > { %v438_v34 = vsel %vm407_vm0, %v289_v31, 0.0  ;;  %v435_v35 = vsel %vm407_vm0, %v288_v32, 0.0  ;;  %v291_v41 = vmul.f32 %v1162_v0, %v159_v38  ;;  %v293_v42 = vmul.f32 %v1162_v0, %v161_v39  ;;  %v169_v1 = vld [vmem:[%s1168_s17 + $0xb0] sm:$0xff]  ;;  %v168_v2 = vld [vmem:[%s1168_s17 + $0xa8] sm:$0xff]  ;;  %v170_v3 = vld [vmem:[%s1168_s17 + $0xb8] sm:$0xff] }
  0x16   : > { %v441_v36 = vsel %vm407_vm0, %v290_v33, 0.0  ;;  %v447_v43 = vsel %vm407_vm0, %v292_v40, 0.0  ;;  %v295_v49 = vmul.f32 %v1162_v0, %v163_v46  ;;  %v294_v50 = vmul.f32 %v1162_v0, %v162_v47  ;;  %v172_v10 = vld [vmem:[%s1168_s17 + $0xc8] sm:$0xff]  ;;  %v171_v11 = vld [vmem:[%s1168_s17 + $0xc0] sm:$0xff]  ;;  %v173_v12 = vld [vmem:[%s1168_s17 + $0xd0] sm:$0xff] }
  0x17   : > { %v444_v44 = vsel %vm407_vm0, %v291_v41, 0.0  ;;  %v450_v45 = vsel %vm407_vm0, %v293_v42, 0.0  ;;  %v296_v51 = vmul.f32 %v1162_v0, %v164_v48  ;;  %v298_v58 = vmul.f32 %v1162_v0, %v166_v55  ;;  %v175_v19 = vld [vmem:[%s1168_s17 + $0xe0] sm:$0xff]  ;;  %v174_v20 = vld [vmem:[%s1168_s17 + $0xd8] sm:$0xff]  ;;  %v176_v21 = vld [vmem:[%s1168_s17 + $0xe8] sm:$0xff] }
  0x18   : > { %v456_v52 = vsel %vm407_vm0, %v295_v49, 0.0  ;;  %v453_v53 = vsel %vm407_vm0, %v294_v50, 0.0  ;;  %v297_v59 = vmul.f32 %v1162_v0, %v165_v56  ;;  %v299_v60 = vmul.f32 %v1162_v0, %v167_v57  ;;  %v178_v28 = vld [vmem:[%s1168_s17 + $0xf8] sm:$0xff]  ;;  %v177_v29 = vld [vmem:[%s1168_s17 + $0xf0] sm:$0xff]  ;;  %v179_v30 = vld [vmem:[%s1168_s17 + $0x100] sm:$0xff] }
  0x19   : > { %v459_v54 = vsel %vm407_vm0, %v296_v51, 0.0  ;;  %v465_v61 = vsel %vm407_vm0, %v298_v58, 0.0  ;;  %v301_v4 = vmul.f32 %v1162_v0, %v169_v1  ;;  %v300_v5 = vmul.f32 %v1162_v0, %v168_v2  ;;  %v181_v37 = vld [vmem:[%s1168_s17 + $0x110] sm:$0xff]  ;;  %v180_v38 = vld [vmem:[%s1168_s17 + $0x108] sm:$0xff]  ;;  %v182_v39 = vld [vmem:[%s1168_s17 + $0x118] sm:$0xff] }
  0x1a   : > { %418 = vadd.xlane.f32.xlu1 %v417_v16  ;;  %412 = vadd.xlane.f32.xlu0 %v411_v17  ;;  %v462_v62 = vsel %vm407_vm0, %v297_v59, 0.0  ;;  %v468_v63 = vsel %vm407_vm0, %v299_v60, 0.0  ;;  %v302_v6 = vmul.f32 %v1162_v0, %v170_v3  ;;  %v304_v13 = vmul.f32 %v1162_v0, %v172_v10  ;;  %v184_v46 = vld [vmem:[%s1168_s17 + $0x128] sm:$0xff]  ;;  %v183_v47 = vld [vmem:[%s1168_s17 + $0x120] sm:$0xff]  ;;  %v185_v48 = vld [vmem:[%s1168_s17 + $0x130] sm:$0xff] }
  0x1b   : > { %424 = vadd.xlane.f32.xlu2 %v423_v18  ;;  %v474_v7 = vsel %vm407_vm0, %v301_v4, 0.0  ;;  %v471_v8 = vsel %vm407_vm0, %v300_v5, 0.0  ;;  %v303_v14 = vmul.f32 %v1162_v0, %v171_v11  ;;  %v305_v15 = vmul.f32 %v1162_v0, %v173_v12  ;;  %v187_v55 = vld [vmem:[%s1168_s17 + $0x140] sm:$0xff]  ;;  %v186_v56 = vld [vmem:[%s1168_s17 + $0x138] sm:$0xff]  ;;  %v188_v57 = vld [vmem:[%s1168_s17 + $0x148] sm:$0xff] }
  0x1c   : > { %v477_v9 = vsel %vm407_vm0, %v302_v6, 0.0  ;;  %v483_v16 = vsel %vm407_vm0, %v304_v13, 0.0  ;;  %v307_v22 = vmul.f32 %v1162_v0, %v175_v19  ;;  %v306_v23 = vmul.f32 %v1162_v0, %v174_v20  ;;  %v190_v1 = vld [vmem:[%s1168_s17 + $0x158] sm:$0xff]  ;;  %v189_v2 = vld [vmem:[%s1168_s17 + $0x150] sm:$0xff]  ;;  %v191_v3 = vld [vmem:[%s1168_s17 + $0x160] sm:$0xff] }
  0x1d   : > { %v480_v17 = vsel %vm407_vm0, %v303_v14, 0.0  ;;  %v486_v18 = vsel %vm407_vm0, %v305_v15, 0.0  ;;  %v308_v24 = vmul.f32 %v1162_v0, %v176_v21  ;;  %v310_v31 = vmul.f32 %v1162_v0, %v178_v28  ;;  %v193_v10 = vld [vmem:[%s1168_s17 + $0x170] sm:$0xff]  ;;  %v192_v11 = vld [vmem:[%s1168_s17 + $0x168] sm:$0xff]  ;;  %v194_v12 = vld [vmem:[%s1168_s17 + $0x178] sm:$0xff] }
  0x1e   : > { %v309_v32 = vmul.f32 %v1162_v0, %v177_v29  ;;  %v311_v33 = vmul.f32 %v1162_v0, %v179_v30  ;;  %v313_v40 = vmul.f32 %v1162_v0, %v181_v37  ;;  %v312_v41 = vmul.f32 %v1162_v0, %v180_v38 }
  0x1f   : > { %v314_v42 = vmul.f32 %v1162_v0, %v182_v39  ;;  %v316_v49 = vmul.f32 %v1162_v0, %v184_v46  ;;  %v315_v50 = vmul.f32 %v1162_v0, %v183_v47  ;;  %v317_v51 = vmul.f32 %v1162_v0, %v185_v48 }
  0x20   : > { %v319_v58 = vmul.f32 %v1162_v0, %v187_v55  ;;  %v318_v59 = vmul.f32 %v1162_v0, %v186_v56  ;;  %v320_v60 = vmul.f32 %v1162_v0, %v188_v57  ;;  %v322_v4 = vmul.f32 %v1162_v0, %v190_v1  ;;  %v202_v55 = vld [vmem:[%s1168_s17 + $0x1b8] sm:$0xff]  ;;  %v201_v56 = vld [vmem:[%s1168_s17 + $0x1b0] sm:$0xff]  ;;  %v203_v57 = vld [vmem:[%s1168_s17 + $0x1c0] sm:$0xff] }
  0x21   : > { %v321_v5 = vmul.f32 %v1162_v0, %v189_v2  ;;  %v323_v6 = vmul.f32 %v1162_v0, %v191_v3  ;;  %v325_v13 = vmul.f32 %v1162_v0, %v193_v10  ;;  %v324_v14 = vmul.f32 %v1162_v0, %v192_v11 }
  0x22   : > { %430 = vadd.xlane.f32.xlu1 %v429_v25  ;;  %427 = vadd.xlane.f32.xlu0 %v426_v26  ;;  %v492_v25 = vsel %vm407_vm0, %v307_v22, 0.0  ;;  %v489_v26 = vsel %vm407_vm0, %v306_v23, 0.0  ;;  %v326_v15 = vmul.f32 %v1162_v0, %v194_v12 }
  0x23   : > { %433 = vadd.xlane.f32.xlu2 %v432_v27  ;;  %v495_v27 = vsel %vm407_vm0, %v308_v24, 0.0  ;;  %v546_v21 = vsel %vm407_vm0, %v325_v13, 0.0  ;;  %v543_v22 = vsel %vm407_vm0, %v324_v14, 0.0 }
  0x24   : > { %v549_v24 = vsel %vm407_vm0, %v326_v15, 0.0 }
  0x2a   : > { %439 = vadd.xlane.f32.xlu1 %v438_v34  ;;  %436 = vadd.xlane.f32.xlu0 %v435_v35  ;;  %v501_v34 = vsel %vm407_vm0, %v310_v31, 0.0  ;;  %v498_v35 = vsel %vm407_vm0, %v309_v32, 0.0 }
  0x2b   : > { %442 = vadd.xlane.f32.xlu2 %v441_v36  ;;  %v504_v36 = vsel %vm407_vm0, %v311_v33, 0.0 }
  0x32   : > { %448 = vadd.xlane.f32.xlu1 %v447_v43  ;;  %445 = vadd.xlane.f32.xlu0 %v444_v44  ;;  %v510_v43 = vsel %vm407_vm0, %v313_v40, 0.0  ;;  %v507_v44 = vsel %vm407_vm0, %v312_v41, 0.0  ;;  %v199_v40 = vld [vmem:[%s1168_s17 + $0x1a0] sm:$0xff]  ;;  %v198_v41 = vld [vmem:[%s1168_s17 + $0x198] sm:$0xff] }
  0x33   : > { %451 = vadd.xlane.f32.xlu2 %v450_v45  ;;  %v513_v45 = vsel %vm407_vm0, %v314_v42, 0.0  ;;  %v200_v42 = vld [vmem:[%s1168_s17 + $0x1a8] sm:$0xff] }
  0x3a   : > { %457 = vadd.xlane.f32.xlu1 %v456_v52  ;;  %454 = vadd.xlane.f32.xlu0 %v453_v53  ;;  %v519_v52 = vsel %vm407_vm0, %v316_v49, 0.0  ;;  %v516_v53 = vsel %vm407_vm0, %v315_v50, 0.0 }
  0x3b   : > { %460 = vadd.xlane.f32.xlu2 %v459_v54  ;;  %v522_v54 = vsel %vm407_vm0, %v317_v51, 0.0 }
  0x42   : > { %466 = vadd.xlane.f32.xlu1 %v465_v61  ;;  %463 = vadd.xlane.f32.xlu0 %v462_v62  ;;  %v528_v61 = vsel %vm407_vm0, %v319_v58, 0.0  ;;  %v525_v62 = vsel %vm407_vm0, %v318_v59, 0.0  ;;  %v334_v58 = vmul.f32 %v1162_v0, %v202_v55  ;;  %v333_v59 = vmul.f32 %v1162_v0, %v201_v56 }
  0x43   : > { %469 = vadd.xlane.f32.xlu2 %v468_v63  ;;  %v531_v63 = vsel %vm407_vm0, %v320_v60, 0.0  ;;  %v335_v60 = vmul.f32 %v1162_v0, %v203_v57 }
  0x44   : > { %v573_v3 = vsel %vm407_vm0, %v334_v58, 0.0 }
  0x4a   : > { %475 = vadd.xlane.f32.xlu1 %v474_v7  ;;  %472 = vadd.xlane.f32.xlu0 %v471_v8  ;;  %v537_v7 = vsel %vm407_vm0, %v322_v4, 0.0  ;;  %v534_v8 = vsel %vm407_vm0, %v321_v5, 0.0  ;;  %v570_v4 = vsel %vm407_vm0, %v333_v59, 0.0 }
  0x4b   : > { %478 = vadd.xlane.f32.xlu2 %v477_v9  ;;  %v540_v9 = vsel %vm407_vm0, %v323_v6, 0.0  ;;  %v576_v6 = vsel %vm407_vm0, %v335_v60, 0.0 }
  0x52   : > { %484 = vadd.xlane.f32.xlu1 %v483_v16  ;;  %481 = vadd.xlane.f32.xlu0 %v480_v17 }
  0x53   : > { %487 = vadd.xlane.f32.xlu2 %v486_v18 }
  0x5a   : > { %493 = vadd.xlane.f32.xlu1 %v492_v25  ;;  %490 = vadd.xlane.f32.xlu0 %v489_v26  ;;  %v196_v25 = vld [vmem:[%s1168_s17 + $0x188] sm:$0xff]  ;;  %v195_v26 = vld [vmem:[%s1168_s17 + $0x180] sm:$0xff] }
  0x5b   : > { %496 = vadd.xlane.f32.xlu2 %v495_v27  ;;  %v197_v27 = vld [vmem:[%s1168_s17 + $0x190] sm:$0xff]  ;;  %v328_v28 = vmul.f32 %v1162_v0, %v196_v25  ;;  %v327_v29 = vmul.f32 %v1162_v0, %v195_v26 }
  0x5c   : > { %v329_v30 = vmul.f32 %v1162_v0, %v197_v27 }
  0x5d   : > { %v552_v37 = vsel %vm407_vm0, %v327_v29, 0.0 }
  0x5e   : > { %v558_v39 = vsel %vm407_vm0, %v329_v30, 0.0 }
  0x62   : > { %502 = vadd.xlane.f32.xlu1 %v501_v34  ;;  %499 = vadd.xlane.f32.xlu0 %v498_v35 }
  0x63   : > { %505 = vadd.xlane.f32.xlu2 %v504_v36  ;;  %v555_v36 = vsel %vm407_vm0, %v328_v28, 0.0 }
  0x6a   : > { %511 = vadd.xlane.f32.xlu1 %v510_v43  ;;  %508 = vadd.xlane.f32.xlu0 %v507_v44  ;;  %v331_v43 = vmul.f32 %v1162_v0, %v199_v40  ;;  %v330_v44 = vmul.f32 %v1162_v0, %v198_v41 }
  0x6b   : > { %514 = vadd.xlane.f32.xlu2 %v513_v45  ;;  %v332_v45 = vmul.f32 %v1162_v0, %v200_v42 }
  0x6c   : > { %v564_v51 = vsel %vm407_vm0, %v331_v43, 0.0 }
  0x72   : > { %520 = vadd.xlane.f32.xlu1 %v519_v52  ;;  %517 = vadd.xlane.f32.xlu0 %v516_v53  ;;  %v561_v52 = vsel %vm407_vm0, %v330_v44, 0.0 }
  0x73   : > { %523 = vadd.xlane.f32.xlu2 %v522_v54  ;;  %v567_v54 = vsel %vm407_vm0, %v332_v45, 0.0 }
  0x7a   : > { %529 = vadd.xlane.f32.xlu1 %v528_v61  ;;  %526 = vadd.xlane.f32.xlu0 %v525_v62 }
  0x7b   : > { %532 = vadd.xlane.f32.xlu2 %v531_v63 }
  0x82   : > { %538 = vadd.xlane.f32.xlu1 %v537_v7  ;;  %535 = vadd.xlane.f32.xlu0 %v534_v8  ;;  %v205_v7 = vld [vmem:[%s1168_s17 + $0x1d0] sm:$0xff]  ;;  %v204_v8 = vld [vmem:[%s1168_s17 + $0x1c8] sm:$0xff] }
  0x83   : > { %541 = vadd.xlane.f32.xlu2 %v540_v9  ;;  %v206_v9 = vld [vmem:[%s1168_s17 + $0x1d8] sm:$0xff]  ;;  %v337_v10 = vmul.f32 %v1162_v0, %v205_v7  ;;  %v336_v11 = vmul.f32 %v1162_v0, %v204_v8 }
  0x84   : > { %v338_v12 = vmul.f32 %v1162_v0, %v206_v9 }
  0x85   : > { %v416_v16 = vpop.xlane.xlu1 %415  ;;  %v410_v17 = vpop.xlane.xlu0 %409 }
  0x86   : > { %v794_v18 = vpack.c.bf16 %v416_v16, %v416_v16  ;;  %v792_v19 = vpack.c.bf16 %v410_v17, %v410_v17  ;;  %v422_v20 = vpop.xlane.xlu2 %421 }
  0x87   : > { %v796_v23 = vpack.c.bf16 %v422_v20, %v422_v20 }
  0x88   : > { %923 = vst.msk [vmem:[%s1315_s21 + $0x8] sm:$0xf] %vm920_vm1, %v794_v18  ;;  %v582_v18 = vsel %vm407_vm0, %v337_v10, 0.0 }
  0x89   : > { %921 = vst.msk [vmem:[%s1315_s21] sm:$0xf] %vm920_vm1, %v792_v19  ;;  %v579_v19 = vsel %vm407_vm0, %v336_v11, 0.0 }
  0x8a   : > { %547 = vadd.xlane.f32.xlu1 %v546_v21  ;;  %544 = vadd.xlane.f32.xlu0 %v543_v22  ;;  %925 = vst.msk [vmem:[%s1315_s21 + $0x10] sm:$0xf] %vm920_vm1, %v796_v23  ;;  %v585_v21 = vsel %vm407_vm0, %v338_v12, 0.0  ;;  %v208_v22 = vld [vmem:[%s1168_s17 + $0x1e8] sm:$0xff]  ;;  %v207_v23 = vld [vmem:[%s1168_s17 + $0x1e0] sm:$0xff] }
  0x8b   : > { %550 = vadd.xlane.f32.xlu2 %v549_v24  ;;  %v209_v24 = vld [vmem:[%s1168_s17 + $0x1f0] sm:$0xff]  ;;  %v340_v25 = vmul.f32 %v1162_v0, %v208_v22  ;;  %v339_v26 = vmul.f32 %v1162_v0, %v207_v23 }
  0x8c   : > { %v341_v27 = vmul.f32 %v1162_v0, %v209_v24 }
  0x8d   : > { %v419_v31 = vpop.xlane.xlu1 %418  ;;  %v413_v32 = vpop.xlane.xlu0 %412 }
  0x8e   : > { %v795_v33 = vpack.c.bf16 %v419_v31, %v419_v31  ;;  %v793_v34 = vpack.c.bf16 %v413_v32, %v413_v32  ;;  %v425_v35 = vpop.xlane.xlu2 %424 }
  0x8f   : > { %v797_v38 = vpack.c.bf16 %v425_v35, %v425_v35 }
  0x90   : > { %924 = vst.msk [vmem:[%s1315_s21 + $0xc] sm:$0xf] %vm920_vm1, %v795_v33  ;;  %v591_v33 = vsel %vm407_vm0, %v340_v25, 0.0 }
  0x91   : > { %922 = vst.msk [vmem:[%s1315_s21 + $0x4] sm:$0xf] %vm920_vm1, %v793_v34  ;;  %v588_v34 = vsel %vm407_vm0, %v339_v26, 0.0 }
  0x92   : > { %556 = vadd.xlane.f32.xlu1 %v555_v36  ;;  %553 = vadd.xlane.f32.xlu0 %v552_v37  ;;  %926 = vst.msk [vmem:[%s1315_s21 + $0x14] sm:$0xf] %vm920_vm1, %v797_v38  ;;  %v594_v36 = vsel %vm407_vm0, %v341_v27, 0.0  ;;  %v211_v37 = vld [vmem:[%s1168_s17 + $0x200] sm:$0xff]  ;;  %v210_v38 = vld [vmem:[%s1168_s17 + $0x1f8] sm:$0xff] }
  0x93   : > { %559 = vadd.xlane.f32.xlu2 %v558_v39  ;;  %v212_v39 = vld [vmem:[%s1168_s17 + $0x208] sm:$0xff]  ;;  %v343_v40 = vmul.f32 %v1162_v0, %v211_v37  ;;  %v342_v41 = vmul.f32 %v1162_v0, %v210_v38 }
  0x94   : > { %v344_v42 = vmul.f32 %v1162_v0, %v212_v39 }
  0x95   : > { %v431_v46 = vpop.xlane.xlu1 %430  ;;  %v428_v47 = vpop.xlane.xlu0 %427 }
  0x96   : > { %v799_v48 = vpack.c.bf16 %v431_v46, %v431_v46  ;;  %v798_v49 = vpack.c.bf16 %v428_v47, %v428_v47  ;;  %v434_v50 = vpop.xlane.xlu2 %433 }
  0x97   : > { %v800_v53 = vpack.c.bf16 %v434_v50, %v434_v50 }
  0x98   : > { %928 = vst.msk [vmem:[%s1315_s21 + $0x1c] sm:$0xf] %vm920_vm1, %v799_v48  ;;  %v600_v48 = vsel %vm407_vm0, %v343_v40, 0.0 }
  0x99   : > { %927 = vst.msk [vmem:[%s1315_s21 + $0x18] sm:$0xf] %vm920_vm1, %v798_v49  ;;  %v597_v49 = vsel %vm407_vm0, %v342_v41, 0.0 }
  0x9a   : > { %565 = vadd.xlane.f32.xlu1 %v564_v51  ;;  %562 = vadd.xlane.f32.xlu0 %v561_v52  ;;  %929 = vst.msk [vmem:[%s1315_s21 + $0x20] sm:$0xf] %vm920_vm1, %v800_v53  ;;  %v603_v51 = vsel %vm407_vm0, %v344_v42, 0.0  ;;  %v214_v52 = vld [vmem:[%s1168_s17 + $0x218] sm:$0xff]  ;;  %v213_v53 = vld [vmem:[%s1168_s17 + $0x210] sm:$0xff] }
  0x9b   : > { %568 = vadd.xlane.f32.xlu2 %v567_v54  ;;  %v215_v54 = vld [vmem:[%s1168_s17 + $0x220] sm:$0xff]  ;;  %v346_v55 = vmul.f32 %v1162_v0, %v214_v52  ;;  %v345_v56 = vmul.f32 %v1162_v0, %v213_v53 }
  0x9c   : > { %v347_v57 = vmul.f32 %v1162_v0, %v215_v54 }
  0x9d   : > { %v440_v61 = vpop.xlane.xlu1 %439  ;;  %v437_v62 = vpop.xlane.xlu0 %436 }
  0x9e   : > { %v802_v63 = vpack.c.bf16 %v440_v61, %v440_v61  ;;  %v801_v1 = vpack.c.bf16 %v437_v62, %v437_v62  ;;  %v443_v2 = vpop.xlane.xlu2 %442 }
  0x9f   : > { %v803_v5 = vpack.c.bf16 %v443_v2, %v443_v2 }
  0xa0   : > { %931 = vst.msk [vmem:[%s1315_s21 + $0x28] sm:$0xf] %vm920_vm1, %v802_v63  ;;  %v609_v63 = vsel %vm407_vm0, %v346_v55, 0.0 }
  0xa1   : > { %930 = vst.msk [vmem:[%s1315_s21 + $0x24] sm:$0xf] %vm920_vm1, %v801_v1  ;;  %v606_v1 = vsel %vm407_vm0, %v345_v56, 0.0 }
  0xa2   : > { %574 = vadd.xlane.f32.xlu1 %v573_v3  ;;  %571 = vadd.xlane.f32.xlu0 %v570_v4  ;;  %932 = vst.msk [vmem:[%s1315_s21 + $0x2c] sm:$0xf] %vm920_vm1, %v803_v5  ;;  %v612_v3 = vsel %vm407_vm0, %v347_v57, 0.0  ;;  %v217_v4 = vld [vmem:[%s1168_s17 + $0x230] sm:$0xff]  ;;  %v216_v5 = vld [vmem:[%s1168_s17 + $0x228] sm:$0xff] }
  0xa3   : > { %577 = vadd.xlane.f32.xlu2 %v576_v6  ;;  %v218_v6 = vld [vmem:[%s1168_s17 + $0x238] sm:$0xff]  ;;  %v349_v7 = vmul.f32 %v1162_v0, %v217_v4  ;;  %v348_v8 = vmul.f32 %v1162_v0, %v216_v5 }
  0xa4   : > { %v350_v9 = vmul.f32 %v1162_v0, %v218_v6 }
  0xa5   : > { %v449_v13 = vpop.xlane.xlu1 %448  ;;  %v446_v14 = vpop.xlane.xlu0 %445 }
  0xa6   : > { %v805_v15 = vpack.c.bf16 %v449_v13, %v449_v13  ;;  %v804_v16 = vpack.c.bf16 %v446_v14, %v446_v14  ;;  %v452_v17 = vpop.xlane.xlu2 %451 }
  0xa7   : > { %v806_v20 = vpack.c.bf16 %v452_v17, %v452_v17 }
  0xa8   : > { %934 = vst.msk [vmem:[%s1315_s21 + $0x34] sm:$0xf] %vm920_vm1, %v805_v15  ;;  %v618_v15 = vsel %vm407_vm0, %v349_v7, 0.0 }
  0xa9   : > { %933 = vst.msk [vmem:[%s1315_s21 + $0x30] sm:$0xf] %vm920_vm1, %v804_v16  ;;  %v615_v16 = vsel %vm407_vm0, %v348_v8, 0.0 }
  0xaa   : > { %583 = vadd.xlane.f32.xlu1 %v582_v18  ;;  %580 = vadd.xlane.f32.xlu0 %v579_v19  ;;  %935 = vst.msk [vmem:[%s1315_s21 + $0x38] sm:$0xf] %vm920_vm1, %v806_v20  ;;  %v621_v18 = vsel %vm407_vm0, %v350_v9, 0.0  ;;  %v220_v19 = vld [vmem:[%s1168_s17 + $0x248] sm:$0xff]  ;;  %v219_v20 = vld [vmem:[%s1168_s17 + $0x240] sm:$0xff] }
  0xab   : > { %586 = vadd.xlane.f32.xlu2 %v585_v21  ;;  %v221_v21 = vld [vmem:[%s1168_s17 + $0x250] sm:$0xff]  ;;  %v352_v22 = vmul.f32 %v1162_v0, %v220_v19  ;;  %v351_v23 = vmul.f32 %v1162_v0, %v219_v20 }
  0xac   : > { %v353_v24 = vmul.f32 %v1162_v0, %v221_v21 }
  0xad   : > { %v458_v28 = vpop.xlane.xlu1 %457  ;;  %v455_v29 = vpop.xlane.xlu0 %454 }
  0xae   : > { %v808_v30 = vpack.c.bf16 %v458_v28, %v458_v28  ;;  %v807_v31 = vpack.c.bf16 %v455_v29, %v455_v29  ;;  %v461_v32 = vpop.xlane.xlu2 %460 }
  0xaf   : > { %v809_v35 = vpack.c.bf16 %v461_v32, %v461_v32 }
  0xb0   : > { %937 = vst.msk [vmem:[%s1315_s21 + $0x40] sm:$0xf] %vm920_vm1, %v808_v30  ;;  %v627_v30 = vsel %vm407_vm0, %v352_v22, 0.0 }
  0xb1   : > { %936 = vst.msk [vmem:[%s1315_s21 + $0x3c] sm:$0xf] %vm920_vm1, %v807_v31  ;;  %v624_v31 = vsel %vm407_vm0, %v351_v23, 0.0 }
  0xb2   : > { %592 = vadd.xlane.f32.xlu1 %v591_v33  ;;  %589 = vadd.xlane.f32.xlu0 %v588_v34  ;;  %938 = vst.msk [vmem:[%s1315_s21 + $0x44] sm:$0xf] %vm920_vm1, %v809_v35  ;;  %v630_v33 = vsel %vm407_vm0, %v353_v24, 0.0  ;;  %v223_v34 = vld [vmem:[%s1168_s17 + $0x260] sm:$0xff]  ;;  %v222_v35 = vld [vmem:[%s1168_s17 + $0x258] sm:$0xff] }
  0xb3   : > { %595 = vadd.xlane.f32.xlu2 %v594_v36  ;;  %v224_v36 = vld [vmem:[%s1168_s17 + $0x268] sm:$0xff]  ;;  %v355_v37 = vmul.f32 %v1162_v0, %v223_v34  ;;  %v354_v38 = vmul.f32 %v1162_v0, %v222_v35 }
  0xb4   : > { %v356_v39 = vmul.f32 %v1162_v0, %v224_v36 }
  0xb5   : > { %v467_v43 = vpop.xlane.xlu1 %466  ;;  %v464_v44 = vpop.xlane.xlu0 %463 }
  0xb6   : > { %v811_v45 = vpack.c.bf16 %v467_v43, %v467_v43  ;;  %v810_v46 = vpack.c.bf16 %v464_v44, %v464_v44  ;;  %v470_v47 = vpop.xlane.xlu2 %469 }
  0xb7   : > { %v812_v50 = vpack.c.bf16 %v470_v47, %v470_v47 }
  0xb8   : > { %940 = vst.msk [vmem:[%s1315_s21 + $0x4c] sm:$0xf] %vm920_vm1, %v811_v45  ;;  %v636_v45 = vsel %vm407_vm0, %v355_v37, 0.0 }
  0xb9   : > { %939 = vst.msk [vmem:[%s1315_s21 + $0x48] sm:$0xf] %vm920_vm1, %v810_v46  ;;  %v633_v46 = vsel %vm407_vm0, %v354_v38, 0.0 }
  0xba   : > { %601 = vadd.xlane.f32.xlu1 %v600_v48  ;;  %598 = vadd.xlane.f32.xlu0 %v597_v49  ;;  %941 = vst.msk [vmem:[%s1315_s21 + $0x50] sm:$0xf] %vm920_vm1, %v812_v50  ;;  %v639_v48 = vsel %vm407_vm0, %v356_v39, 0.0  ;;  %v226_v49 = vld [vmem:[%s1168_s17 + $0x278] sm:$0xff]  ;;  %v225_v50 = vld [vmem:[%s1168_s17 + $0x270] sm:$0xff] }
  0xbb   : > { %604 = vadd.xlane.f32.xlu2 %v603_v51  ;;  %v227_v51 = vld [vmem:[%s1168_s17 + $0x280] sm:$0xff]  ;;  %v358_v52 = vmul.f32 %v1162_v0, %v226_v49  ;;  %v357_v53 = vmul.f32 %v1162_v0, %v225_v50 }
  0xbc   : > { %v359_v54 = vmul.f32 %v1162_v0, %v227_v51 }
  0xbd   : > { %v476_v58 = vpop.xlane.xlu1 %475  ;;  %v473_v59 = vpop.xlane.xlu0 %472 }
  0xbe   : > { %v814_v60 = vpack.c.bf16 %v476_v58, %v476_v58  ;;  %v813_v61 = vpack.c.bf16 %v473_v59, %v473_v59  ;;  %v479_v62 = vpop.xlane.xlu2 %478 }
  0xbf   : > { %v815_v2 = vpack.c.bf16 %v479_v62, %v479_v62 }
  0xc0   : > { %943 = vst.msk [vmem:[%s1315_s21 + $0x58] sm:$0xf] %vm920_vm1, %v814_v60  ;;  %v645_v60 = vsel %vm407_vm0, %v358_v52, 0.0 }
  0xc1   : > { %942 = vst.msk [vmem:[%s1315_s21 + $0x54] sm:$0xf] %vm920_vm1, %v813_v61  ;;  %v642_v61 = vsel %vm407_vm0, %v357_v53, 0.0 }
  0xc2   : > { %610 = vadd.xlane.f32.xlu1 %v609_v63  ;;  %607 = vadd.xlane.f32.xlu0 %v606_v1  ;;  %944 = vst.msk [vmem:[%s1315_s21 + $0x5c] sm:$0xf] %vm920_vm1, %v815_v2  ;;  %v648_v63 = vsel %vm407_vm0, %v359_v54, 0.0  ;;  %v229_v1 = vld [vmem:[%s1168_s17 + $0x290] sm:$0xff]  ;;  %v228_v2 = vld [vmem:[%s1168_s17 + $0x288] sm:$0xff] }
  0xc3   : > { %613 = vadd.xlane.f32.xlu2 %v612_v3  ;;  %v230_v3 = vld [vmem:[%s1168_s17 + $0x298] sm:$0xff]  ;;  %v361_v4 = vmul.f32 %v1162_v0, %v229_v1  ;;  %v360_v5 = vmul.f32 %v1162_v0, %v228_v2 }
  0xc4   : > { %v362_v6 = vmul.f32 %v1162_v0, %v230_v3 }
  0xc5   : > { %v485_v10 = vpop.xlane.xlu1 %484  ;;  %v482_v11 = vpop.xlane.xlu0 %481 }
  0xc6   : > { %v817_v12 = vpack.c.bf16 %v485_v10, %v485_v10  ;;  %v816_v13 = vpack.c.bf16 %v482_v11, %v482_v11  ;;  %v488_v14 = vpop.xlane.xlu2 %487 }
  0xc7   : > { %v818_v17 = vpack.c.bf16 %v488_v14, %v488_v14 }
  0xc8   : > { %946 = vst.msk [vmem:[%s1315_s21 + $0x64] sm:$0xf] %vm920_vm1, %v817_v12  ;;  %v654_v12 = vsel %vm407_vm0, %v361_v4, 0.0 }
  0xc9   : > { %945 = vst.msk [vmem:[%s1315_s21 + $0x60] sm:$0xf] %vm920_vm1, %v816_v13  ;;  %v651_v13 = vsel %vm407_vm0, %v360_v5, 0.0 }
  0xca   : > { %619 = vadd.xlane.f32.xlu1 %v618_v15  ;;  %616 = vadd.xlane.f32.xlu0 %v615_v16  ;;  %947 = vst.msk [vmem:[%s1315_s21 + $0x68] sm:$0xf] %vm920_vm1, %v818_v17  ;;  %v657_v15 = vsel %vm407_vm0, %v362_v6, 0.0  ;;  %v232_v16 = vld [vmem:[%s1168_s17 + $0x2a8] sm:$0xff]  ;;  %v231_v17 = vld [vmem:[%s1168_s17 + $0x2a0] sm:$0xff] }
  0xcb   : > { %622 = vadd.xlane.f32.xlu2 %v621_v18  ;;  %v233_v18 = vld [vmem:[%s1168_s17 + $0x2b0] sm:$0xff]  ;;  %v364_v19 = vmul.f32 %v1162_v0, %v232_v16  ;;  %v363_v20 = vmul.f32 %v1162_v0, %v231_v17 }
  0xcc   : > { %v365_v21 = vmul.f32 %v1162_v0, %v233_v18 }
  0xcd   : > { %v494_v25 = vpop.xlane.xlu1 %493  ;;  %v491_v26 = vpop.xlane.xlu0 %490 }
  0xce   : > { %v820_v27 = vpack.c.bf16 %v494_v25, %v494_v25  ;;  %v819_v28 = vpack.c.bf16 %v491_v26, %v491_v26  ;;  %v497_v29 = vpop.xlane.xlu2 %496 }
  0xcf   : > { %v821_v32 = vpack.c.bf16 %v497_v29, %v497_v29 }
  0xd0   : > { %949 = vst.msk [vmem:[%s1315_s21 + $0x70] sm:$0xf] %vm920_vm1, %v820_v27  ;;  %v663_v27 = vsel %vm407_vm0, %v364_v19, 0.0 }
  0xd1   : > { %948 = vst.msk [vmem:[%s1315_s21 + $0x6c] sm:$0xf] %vm920_vm1, %v819_v28  ;;  %v660_v28 = vsel %vm407_vm0, %v363_v20, 0.0 }
  0xd2   : > { %628 = vadd.xlane.f32.xlu1 %v627_v30  ;;  %625 = vadd.xlane.f32.xlu0 %v624_v31  ;;  %950 = vst.msk [vmem:[%s1315_s21 + $0x74] sm:$0xf] %vm920_vm1, %v821_v32  ;;  %v666_v30 = vsel %vm407_vm0, %v365_v21, 0.0  ;;  %v235_v31 = vld [vmem:[%s1168_s17 + $0x2c0] sm:$0xff]  ;;  %v234_v32 = vld [vmem:[%s1168_s17 + $0x2b8] sm:$0xff] }
  0xd3   : > { %631 = vadd.xlane.f32.xlu2 %v630_v33  ;;  %v236_v33 = vld [vmem:[%s1168_s17 + $0x2c8] sm:$0xff]  ;;  %v367_v34 = vmul.f32 %v1162_v0, %v235_v31  ;;  %v366_v35 = vmul.f32 %v1162_v0, %v234_v32 }
  0xd4   : > { %v368_v36 = vmul.f32 %v1162_v0, %v236_v33 }
  0xd5   : > { %v503_v40 = vpop.xlane.xlu1 %502  ;;  %v500_v41 = vpop.xlane.xlu0 %499 }
  0xd6   : > { %v823_v42 = vpack.c.bf16 %v503_v40, %v503_v40  ;;  %v822_v43 = vpack.c.bf16 %v500_v41, %v500_v41  ;;  %v506_v44 = vpop.xlane.xlu2 %505 }
  0xd7   : > { %v824_v47 = vpack.c.bf16 %v506_v44, %v506_v44 }
  0xd8   : > { %952 = vst.msk [vmem:[%s1315_s21 + $0x7c] sm:$0xf] %vm920_vm1, %v823_v42  ;;  %v672_v42 = vsel %vm407_vm0, %v367_v34, 0.0 }
  0xd9   : > { %951 = vst.msk [vmem:[%s1315_s21 + $0x78] sm:$0xf] %vm920_vm1, %v822_v43  ;;  %v669_v43 = vsel %vm407_vm0, %v366_v35, 0.0 }
  0xda   : > { %637 = vadd.xlane.f32.xlu1 %v636_v45  ;;  %634 = vadd.xlane.f32.xlu0 %v633_v46  ;;  %953 = vst.msk [vmem:[%s1315_s21 + $0x80] sm:$0xf] %vm920_vm1, %v824_v47  ;;  %v675_v45 = vsel %vm407_vm0, %v368_v36, 0.0  ;;  %v238_v46 = vld [vmem:[%s1168_s17 + $0x2d8] sm:$0xff]  ;;  %v237_v47 = vld [vmem:[%s1168_s17 + $0x2d0] sm:$0xff] }
  0xdb   : > { %640 = vadd.xlane.f32.xlu2 %v639_v48  ;;  %v239_v48 = vld [vmem:[%s1168_s17 + $0x2e0] sm:$0xff]  ;;  %v370_v49 = vmul.f32 %v1162_v0, %v238_v46  ;;  %v369_v50 = vmul.f32 %v1162_v0, %v237_v47 }
  0xdc   : > { %v371_v51 = vmul.f32 %v1162_v0, %v239_v48  ;;  %v242_v0 = vld [vmem:[%s1168_s17 + $0x2f8] sm:$0xff] }
  0xdd   : > { %v512_v55 = vpop.xlane.xlu1 %511  ;;  %v509_v56 = vpop.xlane.xlu0 %508 }
  0xde   : > { %v826_v57 = vpack.c.bf16 %v512_v55, %v512_v55  ;;  %v825_v58 = vpack.c.bf16 %v509_v56, %v509_v56  ;;  %v515_v59 = vpop.xlane.xlu2 %514 }
  0xdf   : > { %v827_v62 = vpack.c.bf16 %v515_v59, %v515_v59 }
  0xe0   : > { %955 = vst.msk [vmem:[%s1315_s21 + $0x88] sm:$0xf] %vm920_vm1, %v826_v57  ;;  %v681_v57 = vsel %vm407_vm0, %v370_v49, 0.0 }
  0xe1   : > { %954 = vst.msk [vmem:[%s1315_s21 + $0x84] sm:$0xf] %vm920_vm1, %v825_v58  ;;  %v678_v58 = vsel %vm407_vm0, %v369_v50, 0.0 }
  0xe2   : > { %646 = vadd.xlane.f32.xlu1 %v645_v60  ;;  %643 = vadd.xlane.f32.xlu0 %v642_v61  ;;  %956 = vst.msk [vmem:[%s1315_s21 + $0x8c] sm:$0xf] %vm920_vm1, %v827_v62  ;;  %v684_v60 = vsel %vm407_vm0, %v371_v51, 0.0  ;;  %v241_v61 = vld [vmem:[%s1168_s17 + $0x2f0] sm:$0xff]  ;;  %v240_v62 = vld [vmem:[%s1168_s17 + $0x2e8] sm:$0xff] }
  0xe3   : > { %649 = vadd.xlane.f32.xlu2 %v648_v63  ;;  %v1557_v63 = vld [vmem:[%s1825_s1] ss:$0 sm:$0xff] }
  0xe4   : > { %v373_v1 = vmul.f32 %v1557_v63, %v241_v61  ;;  %v372_v2 = vmul.f32 %v1557_v63, %v240_v62  ;;  %v374_v3 = vmul.f32 %v1557_v63, %v242_v0 }
  0xe5   : > { %v521_v7 = vpop.xlane.xlu1 %520  ;;  %v518_v8 = vpop.xlane.xlu0 %517 }
  0xe6   : > { %v829_v9 = vpack.c.bf16 %v521_v7, %v521_v7  ;;  %v828_v10 = vpack.c.bf16 %v518_v8, %v518_v8  ;;  %v524_v11 = vpop.xlane.xlu2 %523 }
  0xe7   : > { %v830_v14 = vpack.c.bf16 %v524_v11, %v524_v11 }
  0xe8   : > { %958 = vst.msk [vmem:[%s1315_s21 + $0x94] sm:$0xf] %vm920_vm1, %v829_v9  ;;  %v690_v9 = vsel %vm407_vm0, %v373_v1, 0.0 }
  0xe9   : > { %957 = vst.msk [vmem:[%s1315_s21 + $0x90] sm:$0xf] %vm920_vm1, %v828_v10  ;;  %v687_v10 = vsel %vm407_vm0, %v372_v2, 0.0 }
  0xea   : > { %655 = vadd.xlane.f32.xlu1 %v654_v12  ;;  %652 = vadd.xlane.f32.xlu0 %v651_v13  ;;  %959 = vst.msk [vmem:[%s1315_s21 + $0x98] sm:$0xf] %vm920_vm1, %v830_v14  ;;  %v693_v12 = vsel %vm407_vm0, %v374_v3, 0.0  ;;  %v244_v13 = vld [vmem:[%s1168_s17 + $0x308] sm:$0xff]  ;;  %v243_v14 = vld [vmem:[%s1168_s17 + $0x300] sm:$0xff] }
  0xeb   : > { %658 = vadd.xlane.f32.xlu2 %v657_v15  ;;  %v245_v15 = vld [vmem:[%s1168_s17 + $0x310] sm:$0xff]  ;;  %v376_v16 = vmul.f32 %v1557_v63, %v244_v13  ;;  %v375_v17 = vmul.f32 %v1557_v63, %v243_v14 }
  0xec   : > { %v377_v18 = vmul.f32 %v1557_v63, %v245_v15 }
  0xed   : > { %v530_v22 = vpop.xlane.xlu1 %529  ;;  %v527_v23 = vpop.xlane.xlu0 %526 }
  0xee   : > { %v832_v24 = vpack.c.bf16 %v530_v22, %v530_v22  ;;  %v831_v25 = vpack.c.bf16 %v527_v23, %v527_v23  ;;  %v533_v26 = vpop.xlane.xlu2 %532 }
  0xef   : > { %v833_v29 = vpack.c.bf16 %v533_v26, %v533_v26 }
  0xf0   : > { %961 = vst.msk [vmem:[%s1315_s21 + $0xa0] sm:$0xf] %vm920_vm1, %v832_v24  ;;  %v699_v24 = vsel %vm407_vm0, %v376_v16, 0.0 }
  0xf1   : > { %960 = vst.msk [vmem:[%s1315_s21 + $0x9c] sm:$0xf] %vm920_vm1, %v831_v25  ;;  %v696_v25 = vsel %vm407_vm0, %v375_v17, 0.0 }
  0xf2   : > { %664 = vadd.xlane.f32.xlu1 %v663_v27  ;;  %661 = vadd.xlane.f32.xlu0 %v660_v28  ;;  %962 = vst.msk [vmem:[%s1315_s21 + $0xa4] sm:$0xf] %vm920_vm1, %v833_v29  ;;  %v702_v27 = vsel %vm407_vm0, %v377_v18, 0.0  ;;  %v247_v28 = vld [vmem:[%s1168_s17 + $0x320] sm:$0xff]  ;;  %v246_v29 = vld [vmem:[%s1168_s17 + $0x318] sm:$0xff] }
  0xf3   : > { %667 = vadd.xlane.f32.xlu2 %v666_v30  ;;  %v248_v30 = vld [vmem:[%s1168_s17 + $0x328] sm:$0xff]  ;;  %v379_v31 = vmul.f32 %v1557_v63, %v247_v28  ;;  %v378_v32 = vmul.f32 %v1557_v63, %v246_v29 }
  0xf4   : > { %v380_v33 = vmul.f32 %v1557_v63, %v248_v30 }
  0xf5   : > { %v539_v37 = vpop.xlane.xlu1 %538  ;;  %v536_v38 = vpop.xlane.xlu0 %535 }
  0xf6   : > { %v835_v39 = vpack.c.bf16 %v539_v37, %v539_v37  ;;  %v834_v40 = vpack.c.bf16 %v536_v38, %v536_v38  ;;  %v542_v41 = vpop.xlane.xlu2 %541 }
  0xf7   : > { %v836_v44 = vpack.c.bf16 %v542_v41, %v542_v41 }
  0xf8   : > { %964 = vst.msk [vmem:[%s1315_s21 + $0xac] sm:$0xf] %vm920_vm1, %v835_v39  ;;  %v708_v39 = vsel %vm407_vm0, %v379_v31, 0.0 }
  0xf9   : > { %963 = vst.msk [vmem:[%s1315_s21 + $0xa8] sm:$0xf] %vm920_vm1, %v834_v40  ;;  %v705_v40 = vsel %vm407_vm0, %v378_v32, 0.0 }
  0xfa   : > { %673 = vadd.xlane.f32.xlu1 %v672_v42  ;;  %670 = vadd.xlane.f32.xlu0 %v669_v43  ;;  %965 = vst.msk [vmem:[%s1315_s21 + $0xb0] sm:$0xf] %vm920_vm1, %v836_v44  ;;  %v711_v42 = vsel %vm407_vm0, %v380_v33, 0.0  ;;  %v250_v43 = vld [vmem:[%s1168_s17 + $0x338] sm:$0xff]  ;;  %v249_v44 = vld [vmem:[%s1168_s17 + $0x330] sm:$0xff] }
  0xfb   : > { %676 = vadd.xlane.f32.xlu2 %v675_v45  ;;  %v251_v45 = vld [vmem:[%s1168_s17 + $0x340] sm:$0xff]  ;;  %v382_v46 = vmul.f32 %v1557_v63, %v250_v43  ;;  %v381_v47 = vmul.f32 %v1557_v63, %v249_v44 }
  0xfc   : > { %v383_v48 = vmul.f32 %v1557_v63, %v251_v45 }
  0xfd   : > { %v548_v52 = vpop.xlane.xlu1 %547  ;;  %v545_v53 = vpop.xlane.xlu0 %544 }
  0xfe   : > { %v838_v54 = vpack.c.bf16 %v548_v52, %v548_v52  ;;  %v837_v55 = vpack.c.bf16 %v545_v53, %v545_v53  ;;  %v551_v56 = vpop.xlane.xlu2 %550 }
  0xff   : > { %v839_v59 = vpack.c.bf16 %v551_v56, %v551_v56 }
 0x100   : > { %967 = vst.msk [vmem:[%s1315_s21 + $0xb8] sm:$0xf] %vm920_vm1, %v838_v54  ;;  %v717_v54 = vsel %vm407_vm0, %v382_v46, 0.0 }
 0x101   : > { %966 = vst.msk [vmem:[%s1315_s21 + $0xb4] sm:$0xf] %vm920_vm1, %v837_v55  ;;  %v714_v55 = vsel %vm407_vm0, %v381_v47, 0.0 }
 0x102   : > { %682 = vadd.xlane.f32.xlu1 %v681_v57  ;;  %679 = vadd.xlane.f32.xlu0 %v678_v58  ;;  %968 = vst.msk [vmem:[%s1315_s21 + $0xbc] sm:$0xf] %vm920_vm1, %v839_v59  ;;  %v720_v57 = vsel %vm407_vm0, %v383_v48, 0.0  ;;  %v253_v58 = vld [vmem:[%s1168_s17 + $0x350] sm:$0xff]  ;;  %v252_v59 = vld [vmem:[%s1168_s17 + $0x348] sm:$0xff] }
 0x103   : > { %685 = vadd.xlane.f32.xlu2 %v684_v60  ;;  %v254_v60 = vld [vmem:[%s1168_s17 + $0x358] sm:$0xff]  ;;  %v385_v61 = vmul.f32 %v1557_v63, %v253_v58  ;;  %v384_v62 = vmul.f32 %v1557_v63, %v252_v59 }
 0x104   : > { %v386_v0 = vmul.f32 %v1557_v63, %v254_v60 }
 0x105   : > { %v557_v4 = vpop.xlane.xlu1 %556  ;;  %v554_v5 = vpop.xlane.xlu0 %553 }
 0x106   : > { %v841_v6 = vpack.c.bf16 %v557_v4, %v557_v4  ;;  %v840_v7 = vpack.c.bf16 %v554_v5, %v554_v5  ;;  %v560_v8 = vpop.xlane.xlu2 %559 }
 0x107   : > { %v842_v11 = vpack.c.bf16 %v560_v8, %v560_v8 }
 0x108   : > { %970 = vst.msk [vmem:[%s1315_s21 + $0xc4] sm:$0xf] %vm920_vm1, %v841_v6  ;;  %v726_v6 = vsel %vm407_vm0, %v385_v61, 0.0 }
 0x109   : > { %969 = vst.msk [vmem:[%s1315_s21 + $0xc0] sm:$0xf] %vm920_vm1, %v840_v7  ;;  %v723_v7 = vsel %vm407_vm0, %v384_v62, 0.0 }
 0x10a   : > { %691 = vadd.xlane.f32.xlu1 %v690_v9  ;;  %688 = vadd.xlane.f32.xlu0 %v687_v10  ;;  %971 = vst.msk [vmem:[%s1315_s21 + $0xc8] sm:$0xf] %vm920_vm1, %v842_v11  ;;  %v729_v9 = vsel %vm407_vm0, %v386_v0, 0.0  ;;  %v256_v10 = vld [vmem:[%s1168_s17 + $0x368] sm:$0xff]  ;;  %v255_v11 = vld [vmem:[%s1168_s17 + $0x360] sm:$0xff] }
 0x10b   : > { %694 = vadd.xlane.f32.xlu2 %v693_v12  ;;  %v257_v12 = vld [vmem:[%s1168_s17 + $0x370] sm:$0xff]  ;;  %v388_v13 = vmul.f32 %v1557_v63, %v256_v10  ;;  %v387_v14 = vmul.f32 %v1557_v63, %v255_v11 }
 0x10c   : > { %v389_v15 = vmul.f32 %v1557_v63, %v257_v12 }
 0x10d   : > { %v566_v19 = vpop.xlane.xlu1 %565  ;;  %v563_v20 = vpop.xlane.xlu0 %562 }
 0x10e   : > { %v844_v21 = vpack.c.bf16 %v566_v19, %v566_v19  ;;  %v843_v22 = vpack.c.bf16 %v563_v20, %v563_v20  ;;  %v569_v23 = vpop.xlane.xlu2 %568 }
 0x10f   : > { %v845_v26 = vpack.c.bf16 %v569_v23, %v569_v23 }
 0x110   : > { %973 = vst.msk [vmem:[%s1315_s21 + $0xd0] sm:$0xf] %vm920_vm1, %v844_v21  ;;  %v735_v21 = vsel %vm407_vm0, %v388_v13, 0.0 }
 0x111   : > { %972 = vst.msk [vmem:[%s1315_s21 + $0xcc] sm:$0xf] %vm920_vm1, %v843_v22  ;;  %v732_v22 = vsel %vm407_vm0, %v387_v14, 0.0 }
 0x112   : > { %700 = vadd.xlane.f32.xlu1 %v699_v24  ;;  %697 = vadd.xlane.f32.xlu0 %v696_v25  ;;  %974 = vst.msk [vmem:[%s1315_s21 + $0xd4] sm:$0xf] %vm920_vm1, %v845_v26  ;;  %v738_v24 = vsel %vm407_vm0, %v389_v15, 0.0  ;;  %v259_v25 = vld [vmem:[%s1168_s17 + $0x380] sm:$0xff]  ;;  %v258_v26 = vld [vmem:[%s1168_s17 + $0x378] sm:$0xff] }
 0x113   : > { %703 = vadd.xlane.f32.xlu2 %v702_v27  ;;  %v260_v27 = vld [vmem:[%s1168_s17 + $0x388] sm:$0xff]  ;;  %v391_v28 = vmul.f32 %v1557_v63, %v259_v25  ;;  %v390_v29 = vmul.f32 %v1557_v63, %v258_v26 }
 0x114   : > { %v392_v30 = vmul.f32 %v1557_v63, %v260_v27 }
 0x115   : > { %v575_v34 = vpop.xlane.xlu1 %574  ;;  %v572_v35 = vpop.xlane.xlu0 %571 }
 0x116   : > { %v847_v36 = vpack.c.bf16 %v575_v34, %v575_v34  ;;  %v846_v37 = vpack.c.bf16 %v572_v35, %v572_v35  ;;  %v578_v38 = vpop.xlane.xlu2 %577 }
 0x117   : > { %v848_v41 = vpack.c.bf16 %v578_v38, %v578_v38 }
 0x118   : > { %976 = vst.msk [vmem:[%s1315_s21 + $0xdc] sm:$0xf] %vm920_vm1, %v847_v36  ;;  %v744_v36 = vsel %vm407_vm0, %v391_v28, 0.0 }
 0x119   : > { %975 = vst.msk [vmem:[%s1315_s21 + $0xd8] sm:$0xf] %vm920_vm1, %v846_v37  ;;  %v741_v37 = vsel %vm407_vm0, %v390_v29, 0.0 }
 0x11a   : > { %709 = vadd.xlane.f32.xlu1 %v708_v39  ;;  %706 = vadd.xlane.f32.xlu0 %v705_v40  ;;  %977 = vst.msk [vmem:[%s1315_s21 + $0xe0] sm:$0xf] %vm920_vm1, %v848_v41  ;;  %v747_v39 = vsel %vm407_vm0, %v392_v30, 0.0  ;;  %v262_v40 = vld [vmem:[%s1168_s17 + $0x398] sm:$0xff]  ;;  %v261_v41 = vld [vmem:[%s1168_s17 + $0x390] sm:$0xff] }
 0x11b   : > { %712 = vadd.xlane.f32.xlu2 %v711_v42  ;;  %v263_v42 = vld [vmem:[%s1168_s17 + $0x3a0] sm:$0xff]  ;;  %v394_v43 = vmul.f32 %v1557_v63, %v262_v40  ;;  %v393_v44 = vmul.f32 %v1557_v63, %v261_v41 }
 0x11c   : > { %v395_v45 = vmul.f32 %v1557_v63, %v263_v42 }
 0x11d   : > { %v584_v49 = vpop.xlane.xlu1 %583  ;;  %v581_v50 = vpop.xlane.xlu0 %580 }
 0x11e   : > { %v850_v51 = vpack.c.bf16 %v584_v49, %v584_v49  ;;  %v849_v52 = vpack.c.bf16 %v581_v50, %v581_v50  ;;  %v587_v53 = vpop.xlane.xlu2 %586 }
 0x11f   : > { %v851_v56 = vpack.c.bf16 %v587_v53, %v587_v53 }
 0x120   : > { %979 = vst.msk [vmem:[%s1315_s21 + $0xe8] sm:$0xf] %vm920_vm1, %v850_v51  ;;  %v753_v51 = vsel %vm407_vm0, %v394_v43, 0.0 }
 0x121   : > { %978 = vst.msk [vmem:[%s1315_s21 + $0xe4] sm:$0xf] %vm920_vm1, %v849_v52  ;;  %v750_v52 = vsel %vm407_vm0, %v393_v44, 0.0 }
 0x122   : > { %718 = vadd.xlane.f32.xlu1 %v717_v54  ;;  %715 = vadd.xlane.f32.xlu0 %v714_v55  ;;  %980 = vst.msk [vmem:[%s1315_s21 + $0xec] sm:$0xf] %vm920_vm1, %v851_v56  ;;  %v756_v54 = vsel %vm407_vm0, %v395_v45, 0.0  ;;  %v265_v55 = vld [vmem:[%s1168_s17 + $0x3b0] sm:$0xff]  ;;  %v264_v56 = vld [vmem:[%s1168_s17 + $0x3a8] sm:$0xff] }
 0x123   : > { %721 = vadd.xlane.f32.xlu2 %v720_v57  ;;  %v266_v57 = vld [vmem:[%s1168_s17 + $0x3b8] sm:$0xff]  ;;  %v397_v58 = vmul.f32 %v1557_v63, %v265_v55  ;;  %v396_v59 = vmul.f32 %v1557_v63, %v264_v56 }
 0x124   : > { %v398_v60 = vmul.f32 %v1557_v63, %v266_v57 }
 0x125   : > { %v593_v1 = vpop.xlane.xlu1 %592  ;;  %v590_v2 = vpop.xlane.xlu0 %589 }
 0x126   : > { %v853_v3 = vpack.c.bf16 %v593_v1, %v593_v1  ;;  %v852_v4 = vpack.c.bf16 %v590_v2, %v590_v2  ;;  %v596_v5 = vpop.xlane.xlu2 %595 }
 0x127   : > { %v854_v8 = vpack.c.bf16 %v596_v5, %v596_v5 }
 0x128   : > { %982 = vst.msk [vmem:[%s1315_s21 + $0xf4] sm:$0xf] %vm920_vm1, %v853_v3  ;;  %v762_v3 = vsel %vm407_vm0, %v397_v58, 0.0 }
 0x129   : > { %981 = vst.msk [vmem:[%s1315_s21 + $0xf0] sm:$0xf] %vm920_vm1, %v852_v4  ;;  %v759_v4 = vsel %vm407_vm0, %v396_v59, 0.0 }
 0x12a   : > { %727 = vadd.xlane.f32.xlu1 %v726_v6  ;;  %724 = vadd.xlane.f32.xlu0 %v723_v7  ;;  %983 = vst.msk [vmem:[%s1315_s21 + $0xf8] sm:$0xf] %vm920_vm1, %v854_v8  ;;  %v765_v6 = vsel %vm407_vm0, %v398_v60, 0.0  ;;  %v268_v7 = vld [vmem:[%s1168_s17 + $0x3c8] sm:$0xff]  ;;  %v267_v8 = vld [vmem:[%s1168_s17 + $0x3c0] sm:$0xff] }
 0x12b   : > { %730 = vadd.xlane.f32.xlu2 %v729_v9  ;;  %v269_v9 = vld [vmem:[%s1168_s17 + $0x3d0] sm:$0xff]  ;;  %v400_v10 = vmul.f32 %v1557_v63, %v268_v7  ;;  %v399_v11 = vmul.f32 %v1557_v63, %v267_v8 }
 0x12c   : > { %v401_v12 = vmul.f32 %v1557_v63, %v269_v9 }
 0x12d   : > { %v602_v16 = vpop.xlane.xlu1 %601  ;;  %v599_v17 = vpop.xlane.xlu0 %598 }
 0x12e   : > { %v856_v18 = vpack.c.bf16 %v602_v16, %v602_v16  ;;  %v855_v19 = vpack.c.bf16 %v599_v17, %v599_v17  ;;  %v605_v20 = vpop.xlane.xlu2 %604 }
 0x12f   : > { %v857_v23 = vpack.c.bf16 %v605_v20, %v605_v20 }
 0x130   : > { %985 = vst.msk [vmem:[%s1315_s21 + $0x100] sm:$0xf] %vm920_vm1, %v856_v18  ;;  %v771_v18 = vsel %vm407_vm0, %v400_v10, 0.0 }
 0x131   : > { %984 = vst.msk [vmem:[%s1315_s21 + $0xfc] sm:$0xf] %vm920_vm1, %v855_v19  ;;  %v768_v19 = vsel %vm407_vm0, %v399_v11, 0.0 }
 0x132   : > { %736 = vadd.xlane.f32.xlu1 %v735_v21  ;;  %733 = vadd.xlane.f32.xlu0 %v732_v22  ;;  %986 = vst.msk [vmem:[%s1315_s21 + $0x104] sm:$0xf] %vm920_vm1, %v857_v23  ;;  %v774_v21 = vsel %vm407_vm0, %v401_v12, 0.0  ;;  %v271_v22 = vld [vmem:[%s1168_s17 + $0x3e0] sm:$0xff]  ;;  %v270_v23 = vld [vmem:[%s1168_s17 + $0x3d8] sm:$0xff] }
 0x133   : > { %739 = vadd.xlane.f32.xlu2 %v738_v24  ;;  %v272_v24 = vld [vmem:[%s1168_s17 + $0x3e8] sm:$0xff]  ;;  %v403_v25 = vmul.f32 %v1557_v63, %v271_v22  ;;  %v402_v26 = vmul.f32 %v1557_v63, %v270_v23 }
 0x134   : > { %v404_v27 = vmul.f32 %v1557_v63, %v272_v24 }
 0x135   : > { %v611_v31 = vpop.xlane.xlu1 %610  ;;  %v608_v32 = vpop.xlane.xlu0 %607 }
 0x136   : > { %v859_v33 = vpack.c.bf16 %v611_v31, %v611_v31  ;;  %v858_v34 = vpack.c.bf16 %v608_v32, %v608_v32  ;;  %v614_v35 = vpop.xlane.xlu2 %613 }
 0x137   : > { %v860_v38 = vpack.c.bf16 %v614_v35, %v614_v35 }
 0x138   : > { %988 = vst.msk [vmem:[%s1315_s21 + $0x10c] sm:$0xf] %vm920_vm1, %v859_v33  ;;  %v780_v33 = vsel %vm407_vm0, %v403_v25, 0.0 }
 0x139   : > { %987 = vst.msk [vmem:[%s1315_s21 + $0x108] sm:$0xf] %vm920_vm1, %v858_v34  ;;  %v777_v34 = vsel %vm407_vm0, %v402_v26, 0.0 }
 0x13a   : > { %745 = vadd.xlane.f32.xlu1 %v744_v36  ;;  %742 = vadd.xlane.f32.xlu0 %v741_v37  ;;  %989 = vst.msk [vmem:[%s1315_s21 + $0x110] sm:$0xf] %vm920_vm1, %v860_v38  ;;  %v783_v36 = vsel %vm407_vm0, %v404_v27, 0.0  ;;  %v274_v37 = vld [vmem:[%s1168_s17 + $0x3f8] sm:$0xff]  ;;  %v273_v38 = vld [vmem:[%s1168_s17 + $0x3f0] sm:$0xff] }
 0x13b   : > { %748 = vadd.xlane.f32.xlu2 %v747_v39  ;;  %v406_v39 = vmul.f32 %v1557_v63, %v274_v37  ;;  %v405_v40 = vmul.f32 %v1557_v63, %v273_v38 }
 0x13d   : > { %v620_v46 = vpop.xlane.xlu1 %619  ;;  %v617_v47 = vpop.xlane.xlu0 %616 }
 0x13e   : > { %v862_v48 = vpack.c.bf16 %v620_v46, %v620_v46  ;;  %v861_v49 = vpack.c.bf16 %v617_v47, %v617_v47  ;;  %v623_v50 = vpop.xlane.xlu2 %622  ;;  %v789_v46 = vsel %vm407_vm0, %v406_v39, 0.0  ;;  %v786_v47 = vsel %vm407_vm0, %v405_v40, 0.0 }
 0x13f   : > { %v863_v53 = vpack.c.bf16 %v623_v50, %v623_v50 }
 0x140   : > { %991 = vst.msk [vmem:[%s1315_s21 + $0x118] sm:$0xf] %vm920_vm1, %v862_v48 }
 0x141   : > { %990 = vst.msk [vmem:[%s1315_s21 + $0x114] sm:$0xf] %vm920_vm1, %v861_v49 }
 0x142   : > { %754 = vadd.xlane.f32.xlu1 %v753_v51  ;;  %751 = vadd.xlane.f32.xlu0 %v750_v52  ;;  %992 = vst.msk [vmem:[%s1315_s21 + $0x11c] sm:$0xf] %vm920_vm1, %v863_v53 }
 0x143   : > { %757 = vadd.xlane.f32.xlu2 %v756_v54 }
 0x145   : > { %v629_v61 = vpop.xlane.xlu1 %628  ;;  %v626_v62 = vpop.xlane.xlu0 %625 }
 0x146   : > { %v865_v0 = vpack.c.bf16 %v629_v61, %v629_v61  ;;  %v864_v1 = vpack.c.bf16 %v626_v62, %v626_v62  ;;  %v632_v2 = vpop.xlane.xlu2 %631 }
 0x147   : > { %v866_v5 = vpack.c.bf16 %v632_v2, %v632_v2 }
 0x148   : > { %994 = vst.msk [vmem:[%s1315_s21 + $0x124] sm:$0xf] %vm920_vm1, %v865_v0 }
 0x149   : > { %993 = vst.msk [vmem:[%s1315_s21 + $0x120] sm:$0xf] %vm920_vm1, %v864_v1 }
 0x14a   : > { %763 = vadd.xlane.f32.xlu1 %v762_v3  ;;  %760 = vadd.xlane.f32.xlu0 %v759_v4  ;;  %995 = vst.msk [vmem:[%s1315_s21 + $0x128] sm:$0xf] %vm920_vm1, %v866_v5 }
 0x14b   : > { %766 = vadd.xlane.f32.xlu2 %v765_v6 }
 0x14d   : > { %v638_v13 = vpop.xlane.xlu1 %637  ;;  %v635_v14 = vpop.xlane.xlu0 %634 }
 0x14e   : > { %v868_v15 = vpack.c.bf16 %v638_v13, %v638_v13  ;;  %v867_v16 = vpack.c.bf16 %v635_v14, %v635_v14  ;;  %v641_v17 = vpop.xlane.xlu2 %640 }
 0x14f   : > { %v869_v20 = vpack.c.bf16 %v641_v17, %v641_v17 }
 0x150   : > { %997 = vst.msk [vmem:[%s1315_s21 + $0x130] sm:$0xf] %vm920_vm1, %v868_v15 }
 0x151   : > { %996 = vst.msk [vmem:[%s1315_s21 + $0x12c] sm:$0xf] %vm920_vm1, %v867_v16 }
 0x152   : > { %772 = vadd.xlane.f32.xlu1 %v771_v18  ;;  %769 = vadd.xlane.f32.xlu0 %v768_v19  ;;  %998 = vst.msk [vmem:[%s1315_s21 + $0x134] sm:$0xf] %vm920_vm1, %v869_v20 }
 0x153   : > { %775 = vadd.xlane.f32.xlu2 %v774_v21 }
 0x155   : > { %v647_v28 = vpop.xlane.xlu1 %646  ;;  %v644_v29 = vpop.xlane.xlu0 %643 }
 0x156   : > { %v871_v30 = vpack.c.bf16 %v647_v28, %v647_v28  ;;  %v870_v31 = vpack.c.bf16 %v644_v29, %v644_v29  ;;  %v650_v32 = vpop.xlane.xlu2 %649 }
 0x157   : > { %v872_v35 = vpack.c.bf16 %v650_v32, %v650_v32 }
 0x158   : > { %1000 = vst.msk [vmem:[%s1315_s21 + $0x13c] sm:$0xf] %vm920_vm1, %v871_v30 }
 0x159   : > { %999 = vst.msk [vmem:[%s1315_s21 + $0x138] sm:$0xf] %vm920_vm1, %v870_v31 }
 0x15a   : > { %781 = vadd.xlane.f32.xlu1 %v780_v33  ;;  %778 = vadd.xlane.f32.xlu0 %v777_v34  ;;  %1001 = vst.msk [vmem:[%s1315_s21 + $0x140] sm:$0xf] %vm920_vm1, %v872_v35 }
 0x15b   : > { %784 = vadd.xlane.f32.xlu2 %v783_v36 }
 0x15d   : > { %v656_v41 = vpop.xlane.xlu1 %655  ;;  %v653_v42 = vpop.xlane.xlu0 %652 }
 0x15e   : > { %v874_v43 = vpack.c.bf16 %v656_v41, %v656_v41  ;;  %v873_v44 = vpack.c.bf16 %v653_v42, %v653_v42  ;;  %v659_v45 = vpop.xlane.xlu2 %658 }
 0x15f   : > { %v875_v48 = vpack.c.bf16 %v659_v45, %v659_v45 }
 0x160   : > { %1003 = vst.msk [vmem:[%s1315_s21 + $0x148] sm:$0xf] %vm920_vm1, %v874_v43 }
 0x161   : > { %1002 = vst.msk [vmem:[%s1315_s21 + $0x144] sm:$0xf] %vm920_vm1, %v873_v44 }
 0x162   : > { %790 = vadd.xlane.f32.xlu1 %v789_v46  ;;  %787 = vadd.xlane.f32.xlu0 %v786_v47  ;;  %1004 = vst.msk [vmem:[%s1315_s21 + $0x14c] sm:$0xf] %vm920_vm1, %v875_v48 }
 0x165   : > { %v665_v63 = vpop.xlane.xlu1 %664  ;;  %v662_v49 = vpop.xlane.xlu0 %661 }
 0x166   : > { %v877_v50 = vpack.c.bf16 %v665_v63, %v665_v63  ;;  %v876_v51 = vpack.c.bf16 %v662_v49, %v662_v49  ;;  %v668_v52 = vpop.xlane.xlu2 %667 }
 0x167   : > { %v878_v53 = vpack.c.bf16 %v668_v52, %v668_v52 }
 0x168   : > { %1006 = vst.msk [vmem:[%s1315_s21 + $0x154] sm:$0xf] %vm920_vm1, %v877_v50 }
 0x169   : > { %1005 = vst.msk [vmem:[%s1315_s21 + $0x150] sm:$0xf] %vm920_vm1, %v876_v51 }
 0x16a   : > { %1007 = vst.msk [vmem:[%s1315_s21 + $0x158] sm:$0xf] %vm920_vm1, %v878_v53 }
 0x16d   : > { %v674_v54 = vpop.xlane.xlu1 %673  ;;  %v671_v55 = vpop.xlane.xlu0 %670 }
 0x16e   : > { %v880_v56 = vpack.c.bf16 %v674_v54, %v674_v54  ;;  %v879_v57 = vpack.c.bf16 %v671_v55, %v671_v55  ;;  %v677_v58 = vpop.xlane.xlu2 %676 }
 0x16f   : > { %v881_v59 = vpack.c.bf16 %v677_v58, %v677_v58 }
 0x170   : > { %1009 = vst.msk [vmem:[%s1315_s21 + $0x160] sm:$0xf] %vm920_vm1, %v880_v56 }
 0x171   : > { %1008 = vst.msk [vmem:[%s1315_s21 + $0x15c] sm:$0xf] %vm920_vm1, %v879_v57 }
 0x172   : > { %1010 = vst.msk [vmem:[%s1315_s21 + $0x164] sm:$0xf] %vm920_vm1, %v881_v59 }
 0x175   : > { %v683_v60 = vpop.xlane.xlu1 %682  ;;  %v680_v61 = vpop.xlane.xlu0 %679 }
 0x176   : > { %v883_v62 = vpack.c.bf16 %v683_v60, %v683_v60  ;;  %v882_v0 = vpack.c.bf16 %v680_v61, %v680_v61  ;;  %v686_v1 = vpop.xlane.xlu2 %685 }
 0x177   : > { %v884_v2 = vpack.c.bf16 %v686_v1, %v686_v1 }
 0x178   : > { %1012 = vst.msk [vmem:[%s1315_s21 + $0x16c] sm:$0xf] %vm920_vm1, %v883_v62 }
 0x179   : > { %1011 = vst.msk [vmem:[%s1315_s21 + $0x168] sm:$0xf] %vm920_vm1, %v882_v0 }
 0x17a   : > { %1013 = vst.msk [vmem:[%s1315_s21 + $0x170] sm:$0xf] %vm920_vm1, %v884_v2 }
 0x17d   : > { %v692_v3 = vpop.xlane.xlu1 %691  ;;  %v689_v4 = vpop.xlane.xlu0 %688 }
 0x17e   : > { %v886_v5 = vpack.c.bf16 %v692_v3, %v692_v3  ;;  %v885_v6 = vpack.c.bf16 %v689_v4, %v689_v4  ;;  %v695_v7 = vpop.xlane.xlu2 %694 }
 0x17f   : > { %v887_v8 = vpack.c.bf16 %v695_v7, %v695_v7 }
 0x180   : > { %1015 = vst.msk [vmem:[%s1315_s21 + $0x178] sm:$0xf] %vm920_vm1, %v886_v5 }
 0x181   : > { %1014 = vst.msk [vmem:[%s1315_s21 + $0x174] sm:$0xf] %vm920_vm1, %v885_v6 }
 0x182   : > { %1016 = vst.msk [vmem:[%s1315_s21 + $0x17c] sm:$0xf] %vm920_vm1, %v887_v8 }
 0x185   : > { %v701_v9 = vpop.xlane.xlu1 %700  ;;  %v698_v10 = vpop.xlane.xlu0 %697 }
 0x186   : > { %v889_v11 = vpack.c.bf16 %v701_v9, %v701_v9  ;;  %v888_v12 = vpack.c.bf16 %v698_v10, %v698_v10  ;;  %v704_v13 = vpop.xlane.xlu2 %703 }
 0x187   : > { %v890_v14 = vpack.c.bf16 %v704_v13, %v704_v13 }
 0x188   : > { %1018 = vst.msk [vmem:[%s1315_s21 + $0x184] sm:$0xf] %vm920_vm1, %v889_v11 }
 0x189   : > { %1017 = vst.msk [vmem:[%s1315_s21 + $0x180] sm:$0xf] %vm920_vm1, %v888_v12 }
 0x18a   : > { %1019 = vst.msk [vmem:[%s1315_s21 + $0x188] sm:$0xf] %vm920_vm1, %v890_v14 }
 0x18d   : > { %v710_v15 = vpop.xlane.xlu1 %709  ;;  %v707_v16 = vpop.xlane.xlu0 %706 }
 0x18e   : > { %v892_v17 = vpack.c.bf16 %v710_v15, %v710_v15  ;;  %v891_v18 = vpack.c.bf16 %v707_v16, %v707_v16  ;;  %v713_v19 = vpop.xlane.xlu2 %712 }
 0x18f   : > { %v893_v20 = vpack.c.bf16 %v713_v19, %v713_v19 }
 0x190   : > { %1021 = vst.msk [vmem:[%s1315_s21 + $0x190] sm:$0xf] %vm920_vm1, %v892_v17 }
 0x191   : > { %1020 = vst.msk [vmem:[%s1315_s21 + $0x18c] sm:$0xf] %vm920_vm1, %v891_v18 }
 0x192   : > { %1022 = vst.msk [vmem:[%s1315_s21 + $0x194] sm:$0xf] %vm920_vm1, %v893_v20 }
 0x195   : > { %v719_v21 = vpop.xlane.xlu1 %718  ;;  %v716_v22 = vpop.xlane.xlu0 %715 }
 0x196   : > { %v895_v23 = vpack.c.bf16 %v719_v21, %v719_v21  ;;  %v894_v24 = vpack.c.bf16 %v716_v22, %v716_v22  ;;  %v722_v25 = vpop.xlane.xlu2 %721 }
 0x197   : > { %v896_v26 = vpack.c.bf16 %v722_v25, %v722_v25 }
 0x198   : > { %1024 = vst.msk [vmem:[%s1315_s21 + $0x19c] sm:$0xf] %vm920_vm1, %v895_v23 }
 0x199   : > { %1023 = vst.msk [vmem:[%s1315_s21 + $0x198] sm:$0xf] %vm920_vm1, %v894_v24 }
 0x19a   : > { %1025 = vst.msk [vmem:[%s1315_s21 + $0x1a0] sm:$0xf] %vm920_vm1, %v896_v26 }
 0x19d   : > { %v728_v27 = vpop.xlane.xlu1 %727  ;;  %v725_v28 = vpop.xlane.xlu0 %724 }
 0x19e   : > { %v898_v29 = vpack.c.bf16 %v728_v27, %v728_v27  ;;  %v897_v30 = vpack.c.bf16 %v725_v28, %v725_v28  ;;  %v731_v31 = vpop.xlane.xlu2 %730 }
 0x19f   : > { %v899_v32 = vpack.c.bf16 %v731_v31, %v731_v31 }
 0x1a0   : > { %1027 = vst.msk [vmem:[%s1315_s21 + $0x1a8] sm:$0xf] %vm920_vm1, %v898_v29 }
 0x1a1   : > { %1026 = vst.msk [vmem:[%s1315_s21 + $0x1a4] sm:$0xf] %vm920_vm1, %v897_v30 }
 0x1a2   : > { %1028 = vst.msk [vmem:[%s1315_s21 + $0x1ac] sm:$0xf] %vm920_vm1, %v899_v32 }
 0x1a5   : > { %v737_v33 = vpop.xlane.xlu1 %736  ;;  %v734_v34 = vpop.xlane.xlu0 %733 }
 0x1a6   : > { %v901_v35 = vpack.c.bf16 %v737_v33, %v737_v33  ;;  %v900_v36 = vpack.c.bf16 %v734_v34, %v734_v34  ;;  %v740_v37 = vpop.xlane.xlu2 %739 }
 0x1a7   : > { %v902_v38 = vpack.c.bf16 %v740_v37, %v740_v37 }
 0x1a8   : > { %1030 = vst.msk [vmem:[%s1315_s21 + $0x1b4] sm:$0xf] %vm920_vm1, %v901_v35 }
 0x1a9   : > { %1029 = vst.msk [vmem:[%s1315_s21 + $0x1b0] sm:$0xf] %vm920_vm1, %v900_v36 }
 0x1aa   : > { %1031 = vst.msk [vmem:[%s1315_s21 + $0x1b8] sm:$0xf] %vm920_vm1, %v902_v38 }
 0x1ad   : > { %v746_v39 = vpop.xlane.xlu1 %745  ;;  %v743_v40 = vpop.xlane.xlu0 %742 }
 0x1ae   : > { %v904_v41 = vpack.c.bf16 %v746_v39, %v746_v39  ;;  %v903_v42 = vpack.c.bf16 %v743_v40, %v743_v40  ;;  %v749_v43 = vpop.xlane.xlu2 %748 }
 0x1af   : > { %v905_v44 = vpack.c.bf16 %v749_v43, %v749_v43 }
 0x1b0   : > { %1033 = vst.msk [vmem:[%s1315_s21 + $0x1c0] sm:$0xf] %vm920_vm1, %v904_v41 }
 0x1b1   : > { %1032 = vst.msk [vmem:[%s1315_s21 + $0x1bc] sm:$0xf] %vm920_vm1, %v903_v42 }
 0x1b2   : > { %1034 = vst.msk [vmem:[%s1315_s21 + $0x1c4] sm:$0xf] %vm920_vm1, %v905_v44 }
 0x1b5   : > { %v755_v45 = vpop.xlane.xlu1 %754  ;;  %v752_v46 = vpop.xlane.xlu0 %751 }
 0x1b6   : > { %v907_v47 = vpack.c.bf16 %v755_v45, %v755_v45  ;;  %v906_v48 = vpack.c.bf16 %v752_v46, %v752_v46  ;;  %v758_v63 = vpop.xlane.xlu2 %757 }
 0x1b7   : > { %v908_v49 = vpack.c.bf16 %v758_v63, %v758_v63 }
 0x1b8   : > { %1036 = vst.msk [vmem:[%s1315_s21 + $0x1cc] sm:$0xf] %vm920_vm1, %v907_v47 }
 0x1b9   : > { %1035 = vst.msk [vmem:[%s1315_s21 + $0x1c8] sm:$0xf] %vm920_vm1, %v906_v48 }
 0x1ba   : > { %1037 = vst.msk [vmem:[%s1315_s21 + $0x1d0] sm:$0xf] %vm920_vm1, %v908_v49 }
 0x1bd   : > { %v764_v50 = vpop.xlane.xlu1 %763  ;;  %v761_v51 = vpop.xlane.xlu0 %760 }
 0x1be   : > { %v910_v52 = vpack.c.bf16 %v764_v50, %v764_v50  ;;  %v909_v53 = vpack.c.bf16 %v761_v51, %v761_v51  ;;  %v767_v54 = vpop.xlane.xlu2 %766 }
 0x1bf   : > { %v911_v55 = vpack.c.bf16 %v767_v54, %v767_v54 }
 0x1c0   : > { %1039 = vst.msk [vmem:[%s1315_s21 + $0x1d8] sm:$0xf] %vm920_vm1, %v910_v52 }
 0x1c1   : > { %1038 = vst.msk [vmem:[%s1315_s21 + $0x1d4] sm:$0xf] %vm920_vm1, %v909_v53 }
 0x1c2   : > { %1040 = vst.msk [vmem:[%s1315_s21 + $0x1dc] sm:$0xf] %vm920_vm1, %v911_v55 }
 0x1c5   : > { %v773_v56 = vpop.xlane.xlu1 %772  ;;  %v770_v57 = vpop.xlane.xlu0 %769 }
 0x1c6   : > { %v913_v58 = vpack.c.bf16 %v773_v56, %v773_v56  ;;  %v912_v59 = vpack.c.bf16 %v770_v57, %v770_v57  ;;  %v776_v60 = vpop.xlane.xlu2 %775 }
 0x1c7   : > { %v914_v61 = vpack.c.bf16 %v776_v60, %v776_v60 }
 0x1c8   : > { %1042 = vst.msk [vmem:[%s1315_s21 + $0x1e4] sm:$0xf] %vm920_vm1, %v913_v58 }
 0x1c9   : > { %1041 = vst.msk [vmem:[%s1315_s21 + $0x1e0] sm:$0xf] %vm920_vm1, %v912_v59 }
 0x1ca   : > { %1043 = vst.msk [vmem:[%s1315_s21 + $0x1e8] sm:$0xf] %vm920_vm1, %v914_v61 }
 0x1cd   : > { %v782_v62 = vpop.xlane.xlu1 %781  ;;  %v779_v0 = vpop.xlane.xlu0 %778 }
 0x1ce   : > { %v916_v1 = vpack.c.bf16 %v782_v62, %v782_v62  ;;  %v915_v2 = vpack.c.bf16 %v779_v0, %v779_v0  ;;  %v785_v3 = vpop.xlane.xlu2 %784 }
 0x1cf   : > { %v917_v4 = vpack.c.bf16 %v785_v3, %v785_v3 }
 0x1d0   : > { %1045 = vst.msk [vmem:[%s1315_s21 + $0x1f0] sm:$0xf] %vm920_vm1, %v916_v1 }
 0x1d1   : > { %1044 = vst.msk [vmem:[%s1315_s21 + $0x1ec] sm:$0xf] %vm920_vm1, %v915_v2 }
 0x1d2   : > { %1046 = vst.msk [vmem:[%s1315_s21 + $0x1f4] sm:$0xf] %vm920_vm1, %v917_v4 }
 0x1d5   : > { %v791_v5 = vpop.xlane.xlu1 %790  ;;  %v788_v6 = vpop.xlane.xlu0 %787 }
 0x1d6   : > { %v919_v7 = vpack.c.bf16 %v791_v5, %v791_v5  ;;  %v918_v8 = vpack.c.bf16 %v788_v6, %v788_v6 }
 0x1d8   : > { %1048 = vst.msk [vmem:[%s1315_s21 + $0x1fc] sm:$0xf] %vm920_vm1, %v919_v7 }
 0x1d9   : > { %1047 = vst.msk [vmem:[%s1315_s21 + $0x1f8] sm:$0xf] %vm920_vm1, %v918_v8 }
 0x1da PF: > { %s12_s9 = sadd.s32 1, %s1132_s9  }
 0x1db   : > { %p9_p4 = scmp.ge.s32.totalorder %s12_s9, 14  }
 0x1dd   :  { %11 = sbr.rel (!%p9_p4) target bundleno = 1 (0x1), region = 58 }

// kernel: mp_relative_self_attn_forward.13
= control target key start
LH: loop header
LB: loop body
LE: loop exit
PB: predicated region body
PF: predicated region fallthrough
CT: control target
= control target key end

     0   :  { %s1149_s9 = smov 0   ;;  %s1824_s0 = inlined_call_operand.vmem [shape: f32[4096,8], index: 0, kind: input, shape index: {}]   ;;  %s1825_s1 = inlined_call_operand.vmem [shape: f32[1,8], index: 1, kind: input, shape index: {}]   ;;  %s1826_s2 = inlined_call_operand.vmem [shape: bf16[4096,1], index: 2, kind: output, shape index: {}]  }
   0x1 LB: > { %s1105_s10 = sadd.s32 4294967295, %s1132_s9   ;;  %p1109_p0 = scmp.ge.s32.totalorder %s1132_s9, 1  ;;  %s1132_s9 = sphi %s1149_s9, %s12_s9  }
   0x2   : > { %p113_p1 = scmp.lt.s32.totalorder %s1132_s9, 5 }
   0x4   : > { %p114_p2 = pnand %p1109_p0, %p113_p1 }
   0x5   : > { %s1110_s11 = sshll.u32 (!%p114_p2), %s1105_s10, 7 }
   0x6   : > { %117 = sbr.rel (%p114_p2) target bundleno = 474 (0x1da), region = 28  ;;  %p136_p3 = scmp.lt.s32.totalorder (!%p114_p2), %s1110_s11, 511 }
   0xb   : > { %s1828_s11 = smov (!%p136_p3, %s1110_s11), 511  ;;  %v1162_v0 = vld [vmem:[%s1825_s1] ss:$0 sm:$0xff]  ;;  %vm407_vm0 = vcmask 64512   ;;  %vm920_vm1 = vcmask 3072  }
   0xc   : > { %s1111_s14 = sshll.u32 %s1828_s11, 3  ;;  %s1113_s18 = sshll.u32 %s1828_s11, 2 }
   0xd   : > { %s1168_s17 = scalar_lea.vmem %s1824_s0, %s1111_s14  ;;  %s1315_s21 = scalar_lea.vmem %s1826_s2, %s1113_s18 }
   0xe   : > { %v149_v1 = vld [vmem:[%s1168_s17 + $0x10] sm:$0xff]  ;;  %v147_v2 = vld [vmem:[%s1168_s17] sm:$0xff]  ;;  %v150_v7 = vld [vmem:[%s1168_s17 + $0x18] sm:$0xff] }
   0xf   : > { %v151_v3 = vld [vmem:[%s1168_s17 + $0x20] sm:$0xff]  ;;  %v281_v4 = vmul.f32 %v1162_v0, %v149_v1  ;;  %v279_v5 = vmul.f32 %v1162_v0, %v147_v2  ;;  %v148_v8 = vld [vmem:[%s1168_s17 + $0x8] sm:$0xff]  ;;  %v282_v13 = vmul.f32 %v1162_v0, %v150_v7  ;;  %v154_v19 = vld [vmem:[%s1168_s17 + $0x38] sm:$0xff] }
  0x10   : > { %v283_v6 = vmul.f32 %v1162_v0, %v151_v3  ;;  %v152_v12 = vld [vmem:[%s1168_s17 + $0x28] sm:$0xff]  ;;  %v280_v14 = vmul.f32 %v1162_v0, %v148_v8  ;;  %v153_v20 = vld [vmem:[%s1168_s17 + $0x30] sm:$0xff]  ;;  %v155_v21 = vld [vmem:[%s1168_s17 + $0x40] sm:$0xff]  ;;  %v286_v22 = vmul.f32 %v1162_v0, %v154_v19 }
  0x11   : > { %v414_v9 = vsel %vm407_vm0, %v281_v4, 0.0  ;;  %v408_v10 = vsel %vm407_vm0, %v279_v5, 0.0  ;;  %v284_v15 = vmul.f32 %v1162_v0, %v152_v12  ;;  %v417_v16 = vsel %vm407_vm0, %v282_v13, 0.0  ;;  %v157_v28 = vld [vmem:[%s1168_s17 + $0x50] sm:$0xff]  ;;  %v156_v29 = vld [vmem:[%s1168_s17 + $0x48] sm:$0xff]  ;;  %v158_v30 = vld [vmem:[%s1168_s17 + $0x58] sm:$0xff] }
  0x12   : > { %v420_v11 = vsel %vm407_vm0, %v283_v6, 0.0  ;;  %415 = vadd.xlane.f32.xlu1 %v414_v9  ;;  %409 = vadd.xlane.f32.xlu0 %v408_v10  ;;  %v411_v17 = vsel %vm407_vm0, %v280_v14, 0.0  ;;  %v285_v23 = vmul.f32 %v1162_v0, %v153_v20  ;;  %v287_v24 = vmul.f32 %v1162_v0, %v155_v21  ;;  %v160_v37 = vld [vmem:[%s1168_s17 + $0x68] sm:$0xff]  ;;  %v159_v38 = vld [vmem:[%s1168_s17 + $0x60] sm:$0xff]  ;;  %v161_v39 = vld [vmem:[%s1168_s17 + $0x70] sm:$0xff] }
  0x13   : > { %421 = vadd.xlane.f32.xlu2 %v420_v11  ;;  %v423_v18 = vsel %vm407_vm0, %v284_v15, 0.0  ;;  %v429_v25 = vsel %vm407_vm0, %v286_v22, 0.0  ;;  %v289_v31 = vmul.f32 %v1162_v0, %v157_v28  ;;  %v288_v32 = vmul.f32 %v1162_v0, %v156_v29  ;;  %v163_v46 = vld [vmem:[%s1168_s17 + $0x80] sm:$0xff]  ;;  %v162_v47 = vld [vmem:[%s1168_s17 + $0x78] sm:$0xff]  ;;  %v164_v48 = vld [vmem:[%s1168_s17 + $0x88] sm:$0xff] }
  0x14   : > { %v426_v26 = vsel %vm407_vm0, %v285_v23, 0.0  ;;  %v432_v27 = vsel %vm407_vm0, %v287_v24, 0.0  ;;  %v290_v33 = vmul.f32 %v1162_v0, %v158_v30  ;;  %v292_v40 = vmul.f32 %v1162_v0, %v160_v37  ;;  %v166_v55 = vld [vmem:[%s1168_s17 + $0x98] sm:$0xff]  ;;  %v165_v56 = vld [vmem:[%s1168_s17 + $0x90] sm:$0xff]  ;;  %v167_v57 = vld [vmem:[%s1168_s17 + $0xa0] sm:$0xff] }
  0x15   : > { %v438_v34 = vsel %vm407_vm0, %v289_v31, 0.0  ;;  %v435_v35 = vsel %vm407_vm0, %v288_v32, 0.0  ;;  %v291_v41 = vmul.f32 %v1162_v0, %v159_v38  ;;  %v293_v42 = vmul.f32 %v1162_v0, %v161_v39  ;;  %v169_v1 = vld [vmem:[%s1168_s17 + $0xb0] sm:$0xff]  ;;  %v168_v2 = vld [vmem:[%s1168_s17 + $0xa8] sm:$0xff]  ;;  %v170_v3 = vld [vmem:[%s1168_s17 + $0xb8] sm:$0xff] }
  0x16   : > { %v441_v36 = vsel %vm407_vm0, %v290_v33, 0.0  ;;  %v447_v43 = vsel %vm407_vm0, %v292_v40, 0.0  ;;  %v295_v49 = vmul.f32 %v1162_v0, %v163_v46  ;;  %v294_v50 = vmul.f32 %v1162_v0, %v162_v47  ;;  %v172_v10 = vld [vmem:[%s1168_s17 + $0xc8] sm:$0xff]  ;;  %v171_v11 = vld [vmem:[%s1168_s17 + $0xc0] sm:$0xff]  ;;  %v173_v12 = vld [vmem:[%s1168_s17 + $0xd0] sm:$0xff] }
  0x17   : > { %v444_v44 = vsel %vm407_vm0, %v291_v41, 0.0  ;;  %v450_v45 = vsel %vm407_vm0, %v293_v42, 0.0  ;;  %v296_v51 = vmul.f32 %v1162_v0, %v164_v48  ;;  %v298_v58 = vmul.f32 %v1162_v0, %v166_v55  ;;  %v175_v19 = vld [vmem:[%s1168_s17 + $0xe0] sm:$0xff]  ;;  %v174_v20 = vld [vmem:[%s1168_s17 + $0xd8] sm:$0xff]  ;;  %v176_v21 = vld [vmem:[%s1168_s17 + $0xe8] sm:$0xff] }
  0x18   : > { %v456_v52 = vsel %vm407_vm0, %v295_v49, 0.0  ;;  %v453_v53 = vsel %vm407_vm0, %v294_v50, 0.0  ;;  %v297_v59 = vmul.f32 %v1162_v0, %v165_v56  ;;  %v299_v60 = vmul.f32 %v1162_v0, %v167_v57  ;;  %v178_v28 = vld [vmem:[%s1168_s17 + $0xf8] sm:$0xff]  ;;  %v177_v29 = vld [vmem:[%s1168_s17 + $0xf0] sm:$0xff]  ;;  %v179_v30 = vld [vmem:[%s1168_s17 + $0x100] sm:$0xff] }
  0x19   : > { %v459_v54 = vsel %vm407_vm0, %v296_v51, 0.0  ;;  %v465_v61 = vsel %vm407_vm0, %v298_v58, 0.0  ;;  %v301_v4 = vmul.f32 %v1162_v0, %v169_v1  ;;  %v300_v5 = vmul.f32 %v1162_v0, %v168_v2  ;;  %v181_v37 = vld [vmem:[%s1168_s17 + $0x110] sm:$0xff]  ;;  %v180_v38 = vld [vmem:[%s1168_s17 + $0x108] sm:$0xff]  ;;  %v182_v39 = vld [vmem:[%s1168_s17 + $0x118] sm:$0xff] }
  0x1a   : > { %418 = vadd.xlane.f32.xlu1 %v417_v16  ;;  %412 = vadd.xlane.f32.xlu0 %v411_v17  ;;  %v462_v62 = vsel %vm407_vm0, %v297_v59, 0.0  ;;  %v468_v63 = vsel %vm407_vm0, %v299_v60, 0.0  ;;  %v302_v6 = vmul.f32 %v1162_v0, %v170_v3  ;;  %v304_v13 = vmul.f32 %v1162_v0, %v172_v10  ;;  %v184_v46 = vld [vmem:[%s1168_s17 + $0x128] sm:$0xff]  ;;  %v183_v47 = vld [vmem:[%s1168_s17 + $0x120] sm:$0xff]  ;;  %v185_v48 = vld [vmem:[%s1168_s17 + $0x130] sm:$0xff] }
  0x1b   : > { %424 = vadd.xlane.f32.xlu2 %v423_v18  ;;  %v474_v7 = vsel %vm407_vm0, %v301_v4, 0.0  ;;  %v471_v8 = vsel %vm407_vm0, %v300_v5, 0.0  ;;  %v303_v14 = vmul.f32 %v1162_v0, %v171_v11  ;;  %v305_v15 = vmul.f32 %v1162_v0, %v173_v12  ;;  %v187_v55 = vld [vmem:[%s1168_s17 + $0x140] sm:$0xff]  ;;  %v186_v56 = vld [vmem:[%s1168_s17 + $0x138] sm:$0xff]  ;;  %v188_v57 = vld [vmem:[%s1168_s17 + $0x148] sm:$0xff] }
  0x1c   : > { %v477_v9 = vsel %vm407_vm0, %v302_v6, 0.0  ;;  %v483_v16 = vsel %vm407_vm0, %v304_v13, 0.0  ;;  %v307_v22 = vmul.f32 %v1162_v0, %v175_v19  ;;  %v306_v23 = vmul.f32 %v1162_v0, %v174_v20  ;;  %v190_v1 = vld [vmem:[%s1168_s17 + $0x158] sm:$0xff]  ;;  %v189_v2 = vld [vmem:[%s1168_s17 + $0x150] sm:$0xff]  ;;  %v191_v3 = vld [vmem:[%s1168_s17 + $0x160] sm:$0xff] }
  0x1d   : > { %v480_v17 = vsel %vm407_vm0, %v303_v14, 0.0  ;;  %v486_v18 = vsel %vm407_vm0, %v305_v15, 0.0  ;;  %v308_v24 = vmul.f32 %v1162_v0, %v176_v21  ;;  %v310_v31 = vmul.f32 %v1162_v0, %v178_v28  ;;  %v193_v10 = vld [vmem:[%s1168_s17 + $0x170] sm:$0xff]  ;;  %v192_v11 = vld [vmem:[%s1168_s17 + $0x168] sm:$0xff]  ;;  %v194_v12 = vld [vmem:[%s1168_s17 + $0x178] sm:$0xff] }
  0x1e   : > { %v309_v32 = vmul.f32 %v1162_v0, %v177_v29  ;;  %v311_v33 = vmul.f32 %v1162_v0, %v179_v30  ;;  %v313_v40 = vmul.f32 %v1162_v0, %v181_v37  ;;  %v312_v41 = vmul.f32 %v1162_v0, %v180_v38 }
  0x1f   : > { %v314_v42 = vmul.f32 %v1162_v0, %v182_v39  ;;  %v316_v49 = vmul.f32 %v1162_v0, %v184_v46  ;;  %v315_v50 = vmul.f32 %v1162_v0, %v183_v47  ;;  %v317_v51 = vmul.f32 %v1162_v0, %v185_v48 }
  0x20   : > { %v319_v58 = vmul.f32 %v1162_v0, %v187_v55  ;;  %v318_v59 = vmul.f32 %v1162_v0, %v186_v56  ;;  %v320_v60 = vmul.f32 %v1162_v0, %v188_v57  ;;  %v322_v4 = vmul.f32 %v1162_v0, %v190_v1  ;;  %v202_v55 = vld [vmem:[%s1168_s17 + $0x1b8] sm:$0xff]  ;;  %v201_v56 = vld [vmem:[%s1168_s17 + $0x1b0] sm:$0xff]  ;;  %v203_v57 = vld [vmem:[%s1168_s17 + $0x1c0] sm:$0xff] }
  0x21   : > { %v321_v5 = vmul.f32 %v1162_v0, %v189_v2  ;;  %v323_v6 = vmul.f32 %v1162_v0, %v191_v3  ;;  %v325_v13 = vmul.f32 %v1162_v0, %v193_v10  ;;  %v324_v14 = vmul.f32 %v1162_v0, %v192_v11 }
  0x22   : > { %430 = vadd.xlane.f32.xlu1 %v429_v25  ;;  %427 = vadd.xlane.f32.xlu0 %v426_v26  ;;  %v492_v25 = vsel %vm407_vm0, %v307_v22, 0.0  ;;  %v489_v26 = vsel %vm407_vm0, %v306_v23, 0.0  ;;  %v326_v15 = vmul.f32 %v1162_v0, %v194_v12 }
  0x23   : > { %433 = vadd.xlane.f32.xlu2 %v432_v27  ;;  %v495_v27 = vsel %vm407_vm0, %v308_v24, 0.0  ;;  %v546_v21 = vsel %vm407_vm0, %v325_v13, 0.0  ;;  %v543_v22 = vsel %vm407_vm0, %v324_v14, 0.0 }
  0x24   : > { %v549_v24 = vsel %vm407_vm0, %v326_v15, 0.0 }
  0x2a   : > { %439 = vadd.xlane.f32.xlu1 %v438_v34  ;;  %436 = vadd.xlane.f32.xlu0 %v435_v35  ;;  %v501_v34 = vsel %vm407_vm0, %v310_v31, 0.0  ;;  %v498_v35 = vsel %vm407_vm0, %v309_v32, 0.0 }
  0x2b   : > { %442 = vadd.xlane.f32.xlu2 %v441_v36  ;;  %v504_v36 = vsel %vm407_vm0, %v311_v33, 0.0 }
  0x32   : > { %448 = vadd.xlane.f32.xlu1 %v447_v43  ;;  %445 = vadd.xlane.f32.xlu0 %v444_v44  ;;  %v510_v43 = vsel %vm407_vm0, %v313_v40, 0.0  ;;  %v507_v44 = vsel %vm407_vm0, %v312_v41, 0.0  ;;  %v199_v40 = vld [vmem:[%s1168_s17 + $0x1a0] sm:$0xff]  ;;  %v198_v41 = vld [vmem:[%s1168_s17 + $0x198] sm:$0xff] }
  0x33   : > { %451 = vadd.xlane.f32.xlu2 %v450_v45  ;;  %v513_v45 = vsel %vm407_vm0, %v314_v42, 0.0  ;;  %v200_v42 = vld [vmem:[%s1168_s17 + $0x1a8] sm:$0xff] }
  0x3a   : > { %457 = vadd.xlane.f32.xlu1 %v456_v52  ;;  %454 = vadd.xlane.f32.xlu0 %v453_v53  ;;  %v519_v52 = vsel %vm407_vm0, %v316_v49, 0.0  ;;  %v516_v53 = vsel %vm407_vm0, %v315_v50, 0.0 }
  0x3b   : > { %460 = vadd.xlane.f32.xlu2 %v459_v54  ;;  %v522_v54 = vsel %vm407_vm0, %v317_v51, 0.0 }
  0x42   : > { %466 = vadd.xlane.f32.xlu1 %v465_v61  ;;  %463 = vadd.xlane.f32.xlu0 %v462_v62  ;;  %v528_v61 = vsel %vm407_vm0, %v319_v58, 0.0  ;;  %v525_v62 = vsel %vm407_vm0, %v318_v59, 0.0  ;;  %v334_v58 = vmul.f32 %v1162_v0, %v202_v55  ;;  %v333_v59 = vmul.f32 %v1162_v0, %v201_v56 }
  0x43   : > { %469 = vadd.xlane.f32.xlu2 %v468_v63  ;;  %v531_v63 = vsel %vm407_vm0, %v320_v60, 0.0  ;;  %v335_v60 = vmul.f32 %v1162_v0, %v203_v57 }
  0x44   : > { %v573_v3 = vsel %vm407_vm0, %v334_v58, 0.0 }
  0x4a   : > { %475 = vadd.xlane.f32.xlu1 %v474_v7  ;;  %472 = vadd.xlane.f32.xlu0 %v471_v8  ;;  %v537_v7 = vsel %vm407_vm0, %v322_v4, 0.0  ;;  %v534_v8 = vsel %vm407_vm0, %v321_v5, 0.0  ;;  %v570_v4 = vsel %vm407_vm0, %v333_v59, 0.0 }
  0x4b   : > { %478 = vadd.xlane.f32.xlu2 %v477_v9  ;;  %v540_v9 = vsel %vm407_vm0, %v323_v6, 0.0  ;;  %v576_v6 = vsel %vm407_vm0, %v335_v60, 0.0 }
  0x52   : > { %484 = vadd.xlane.f32.xlu1 %v483_v16  ;;  %481 = vadd.xlane.f32.xlu0 %v480_v17 }
  0x53   : > { %487 = vadd.xlane.f32.xlu2 %v486_v18 }
  0x5a   : > { %493 = vadd.xlane.f32.xlu1 %v492_v25  ;;  %490 = vadd.xlane.f32.xlu0 %v489_v26  ;;  %v196_v25 = vld [vmem:[%s1168_s17 + $0x188] sm:$0xff]  ;;  %v195_v26 = vld [vmem:[%s1168_s17 + $0x180] sm:$0xff] }
  0x5b   : > { %496 = vadd.xlane.f32.xlu2 %v495_v27  ;;  %v197_v27 = vld [vmem:[%s1168_s17 + $0x190] sm:$0xff]  ;;  %v328_v28 = vmul.f32 %v1162_v0, %v196_v25  ;;  %v327_v29 = vmul.f32 %v1162_v0, %v195_v26 }
  0x5c   : > { %v329_v30 = vmul.f32 %v1162_v0, %v197_v27 }
  0x5d   : > { %v552_v37 = vsel %vm407_vm0, %v327_v29, 0.0 }
  0x5e   : > { %v558_v39 = vsel %vm407_vm0, %v329_v30, 0.0 }
  0x62   : > { %502 = vadd.xlane.f32.xlu1 %v501_v34  ;;  %499 = vadd.xlane.f32.xlu0 %v498_v35 }
  0x63   : > { %505 = vadd.xlane.f32.xlu2 %v504_v36  ;;  %v555_v36 = vsel %vm407_vm0, %v328_v28, 0.0 }
  0x6a   : > { %511 = vadd.xlane.f32.xlu1 %v510_v43  ;;  %508 = vadd.xlane.f32.xlu0 %v507_v44  ;;  %v331_v43 = vmul.f32 %v1162_v0, %v199_v40  ;;  %v330_v44 = vmul.f32 %v1162_v0, %v198_v41 }
  0x6b   : > { %514 = vadd.xlane.f32.xlu2 %v513_v45  ;;  %v332_v45 = vmul.f32 %v1162_v0, %v200_v42 }
  0x6c   : > { %v564_v51 = vsel %vm407_vm0, %v331_v43, 0.0 }
  0x72   : > { %520 = vadd.xlane.f32.xlu1 %v519_v52  ;;  %517 = vadd.xlane.f32.xlu0 %v516_v53  ;;  %v561_v52 = vsel %vm407_vm0, %v330_v44, 0.0 }
  0x73   : > { %523 = vadd.xlane.f32.xlu2 %v522_v54  ;;  %v567_v54 = vsel %vm407_vm0, %v332_v45, 0.0 }
  0x7a   : > { %529 = vadd.xlane.f32.xlu1 %v528_v61  ;;  %526 = vadd.xlane.f32.xlu0 %v525_v62 }
  0x7b   : > { %532 = vadd.xlane.f32.xlu2 %v531_v63 }
  0x82   : > { %538 = vadd.xlane.f32.xlu1 %v537_v7  ;;  %535 = vadd.xlane.f32.xlu0 %v534_v8  ;;  %v205_v7 = vld [vmem:[%s1168_s17 + $0x1d0] sm:$0xff]  ;;  %v204_v8 = vld [vmem:[%s1168_s17 + $0x1c8] sm:$0xff] }
  0x83   : > { %541 = vadd.xlane.f32.xlu2 %v540_v9  ;;  %v206_v9 = vld [vmem:[%s1168_s17 + $0x1d8] sm:$0xff]  ;;  %v337_v10 = vmul.f32 %v1162_v0, %v205_v7  ;;  %v336_v11 = vmul.f32 %v1162_v0, %v204_v8 }
  0x84   : > { %v338_v12 = vmul.f32 %v1162_v0, %v206_v9 }
  0x85   : > { %v416_v16 = vpop.xlane.xlu1 %415  ;;  %v410_v17 = vpop.xlane.xlu0 %409 }
  0x86   : > { %v794_v18 = vpack.c.bf16 %v416_v16, %v416_v16  ;;  %v792_v19 = vpack.c.bf16 %v410_v17, %v410_v17  ;;  %v422_v20 = vpop.xlane.xlu2 %421 }
  0x87   : > { %v796_v23 = vpack.c.bf16 %v422_v20, %v422_v20 }
  0x88   : > { %923 = vst.msk [vmem:[%s1315_s21 + $0x8] sm:$0xf] %vm920_vm1, %v794_v18  ;;  %v582_v18 = vsel %vm407_vm0, %v337_v10, 0.0 }
  0x89   : > { %921 = vst.msk [vmem:[%s1315_s21] sm:$0xf] %vm920_vm1, %v792_v19  ;;  %v579_v19 = vsel %vm407_vm0, %v336_v11, 0.0 }
  0x8a   : > { %547 = vadd.xlane.f32.xlu1 %v546_v21  ;;  %544 = vadd.xlane.f32.xlu0 %v543_v22  ;;  %925 = vst.msk [vmem:[%s1315_s21 + $0x10] sm:$0xf] %vm920_vm1, %v796_v23  ;;  %v585_v21 = vsel %vm407_vm0, %v338_v12, 0.0  ;;  %v208_v22 = vld [vmem:[%s1168_s17 + $0x1e8] sm:$0xff]  ;;  %v207_v23 = vld [vmem:[%s1168_s17 + $0x1e0] sm:$0xff] }
  0x8b   : > { %550 = vadd.xlane.f32.xlu2 %v549_v24  ;;  %v209_v24 = vld [vmem:[%s1168_s17 + $0x1f0] sm:$0xff]  ;;  %v340_v25 = vmul.f32 %v1162_v0, %v208_v22  ;;  %v339_v26 = vmul.f32 %v1162_v0, %v207_v23 }
  0x8c   : > { %v341_v27 = vmul.f32 %v1162_v0, %v209_v24 }
  0x8d   : > { %v419_v31 = vpop.xlane.xlu1 %418  ;;  %v413_v32 = vpop.xlane.xlu0 %412 }
  0x8e   : > { %v795_v33 = vpack.c.bf16 %v419_v31, %v419_v31  ;;  %v793_v34 = vpack.c.bf16 %v413_v32, %v413_v32  ;;  %v425_v35 = vpop.xlane.xlu2 %424 }
  0x8f   : > { %v797_v38 = vpack.c.bf16 %v425_v35, %v425_v35 }
  0x90   : > { %924 = vst.msk [vmem:[%s1315_s21 + $0xc] sm:$0xf] %vm920_vm1, %v795_v33  ;;  %v591_v33 = vsel %vm407_vm0, %v340_v25, 0.0 }
  0x91   : > { %922 = vst.msk [vmem:[%s1315_s21 + $0x4] sm:$0xf] %vm920_vm1, %v793_v34  ;;  %v588_v34 = vsel %vm407_vm0, %v339_v26, 0.0 }
  0x92   : > { %556 = vadd.xlane.f32.xlu1 %v555_v36  ;;  %553 = vadd.xlane.f32.xlu0 %v552_v37  ;;  %926 = vst.msk [vmem:[%s1315_s21 + $0x14] sm:$0xf] %vm920_vm1, %v797_v38  ;;  %v594_v36 = vsel %vm407_vm0, %v341_v27, 0.0  ;;  %v211_v37 = vld [vmem:[%s1168_s17 + $0x200] sm:$0xff]  ;;  %v210_v38 = vld [vmem:[%s1168_s17 + $0x1f8] sm:$0xff] }
  0x93   : > { %559 = vadd.xlane.f32.xlu2 %v558_v39  ;;  %v212_v39 = vld [vmem:[%s1168_s17 + $0x208] sm:$0xff]  ;;  %v343_v40 = vmul.f32 %v1162_v0, %v211_v37  ;;  %v342_v41 = vmul.f32 %v1162_v0, %v210_v38 }
  0x94   : > { %v344_v42 = vmul.f32 %v1162_v0, %v212_v39 }
  0x95   : > { %v431_v46 = vpop.xlane.xlu1 %430  ;;  %v428_v47 = vpop.xlane.xlu0 %427 }
  0x96   : > { %v799_v48 = vpack.c.bf16 %v431_v46, %v431_v46  ;;  %v798_v49 = vpack.c.bf16 %v428_v47, %v428_v47  ;;  %v434_v50 = vpop.xlane.xlu2 %433 }
  0x97   : > { %v800_v53 = vpack.c.bf16 %v434_v50, %v434_v50 }
  0x98   : > { %928 = vst.msk [vmem:[%s1315_s21 + $0x1c] sm:$0xf] %vm920_vm1, %v799_v48  ;;  %v600_v48 = vsel %vm407_vm0, %v343_v40, 0.0 }
  0x99   : > { %927 = vst.msk [vmem:[%s1315_s21 + $0x18] sm:$0xf] %vm920_vm1, %v798_v49  ;;  %v597_v49 = vsel %vm407_vm0, %v342_v41, 0.0 }
  0x9a   : > { %565 = vadd.xlane.f32.xlu1 %v564_v51  ;;  %562 = vadd.xlane.f32.xlu0 %v561_v52  ;;  %929 = vst.msk [vmem:[%s1315_s21 + $0x20] sm:$0xf] %vm920_vm1, %v800_v53  ;;  %v603_v51 = vsel %vm407_vm0, %v344_v42, 0.0  ;;  %v214_v52 = vld [vmem:[%s1168_s17 + $0x218] sm:$0xff]  ;;  %v213_v53 = vld [vmem:[%s1168_s17 + $0x210] sm:$0xff] }
  0x9b   : > { %568 = vadd.xlane.f32.xlu2 %v567_v54  ;;  %v215_v54 = vld [vmem:[%s1168_s17 + $0x220] sm:$0xff]  ;;  %v346_v55 = vmul.f32 %v1162_v0, %v214_v52  ;;  %v345_v56 = vmul.f32 %v1162_v0, %v213_v53 }
  0x9c   : > { %v347_v57 = vmul.f32 %v1162_v0, %v215_v54 }
  0x9d   : > { %v440_v61 = vpop.xlane.xlu1 %439  ;;  %v437_v62 = vpop.xlane.xlu0 %436 }
  0x9e   : > { %v802_v63 = vpack.c.bf16 %v440_v61, %v440_v61  ;;  %v801_v1 = vpack.c.bf16 %v437_v62, %v437_v62  ;;  %v443_v2 = vpop.xlane.xlu2 %442 }
  0x9f   : > { %v803_v5 = vpack.c.bf16 %v443_v2, %v443_v2 }
  0xa0   : > { %931 = vst.msk [vmem:[%s1315_s21 + $0x28] sm:$0xf] %vm920_vm1, %v802_v63  ;;  %v609_v63 = vsel %vm407_vm0, %v346_v55, 0.0 }
  0xa1   : > { %930 = vst.msk [vmem:[%s1315_s21 + $0x24] sm:$0xf] %vm920_vm1, %v801_v1  ;;  %v606_v1 = vsel %vm407_vm0, %v345_v56, 0.0 }
  0xa2   : > { %574 = vadd.xlane.f32.xlu1 %v573_v3  ;;  %571 = vadd.xlane.f32.xlu0 %v570_v4  ;;  %932 = vst.msk [vmem:[%s1315_s21 + $0x2c] sm:$0xf] %vm920_vm1, %v803_v5  ;;  %v612_v3 = vsel %vm407_vm0, %v347_v57, 0.0  ;;  %v217_v4 = vld [vmem:[%s1168_s17 + $0x230] sm:$0xff]  ;;  %v216_v5 = vld [vmem:[%s1168_s17 + $0x228] sm:$0xff] }
  0xa3   : > { %577 = vadd.xlane.f32.xlu2 %v576_v6  ;;  %v218_v6 = vld [vmem:[%s1168_s17 + $0x238] sm:$0xff]  ;;  %v349_v7 = vmul.f32 %v1162_v0, %v217_v4  ;;  %v348_v8 = vmul.f32 %v1162_v0, %v216_v5 }
  0xa4   : > { %v350_v9 = vmul.f32 %v1162_v0, %v218_v6 }
  0xa5   : > { %v449_v13 = vpop.xlane.xlu1 %448  ;;  %v446_v14 = vpop.xlane.xlu0 %445 }
  0xa6   : > { %v805_v15 = vpack.c.bf16 %v449_v13, %v449_v13  ;;  %v804_v16 = vpack.c.bf16 %v446_v14, %v446_v14  ;;  %v452_v17 = vpop.xlane.xlu2 %451 }
  0xa7   : > { %v806_v20 = vpack.c.bf16 %v452_v17, %v452_v17 }
  0xa8   : > { %934 = vst.msk [vmem:[%s1315_s21 + $0x34] sm:$0xf] %vm920_vm1, %v805_v15  ;;  %v618_v15 = vsel %vm407_vm0, %v349_v7, 0.0 }
  0xa9   : > { %933 = vst.msk [vmem:[%s1315_s21 + $0x30] sm:$0xf] %vm920_vm1, %v804_v16  ;;  %v615_v16 = vsel %vm407_vm0, %v348_v8, 0.0 }
  0xaa   : > { %583 = vadd.xlane.f32.xlu1 %v582_v18  ;;  %580 = vadd.xlane.f32.xlu0 %v579_v19  ;;  %935 = vst.msk [vmem:[%s1315_s21 + $0x38] sm:$0xf] %vm920_vm1, %v806_v20  ;;  %v621_v18 = vsel %vm407_vm0, %v350_v9, 0.0  ;;  %v220_v19 = vld [vmem:[%s1168_s17 + $0x248] sm:$0xff]  ;;  %v219_v20 = vld [vmem:[%s1168_s17 + $0x240] sm:$0xff] }
  0xab   : > { %586 = vadd.xlane.f32.xlu2 %v585_v21  ;;  %v221_v21 = vld [vmem:[%s1168_s17 + $0x250] sm:$0xff]  ;;  %v352_v22 = vmul.f32 %v1162_v0, %v220_v19  ;;  %v351_v23 = vmul.f32 %v1162_v0, %v219_v20 }
  0xac   : > { %v353_v24 = vmul.f32 %v1162_v0, %v221_v21 }
  0xad   : > { %v458_v28 = vpop.xlane.xlu1 %457  ;;  %v455_v29 = vpop.xlane.xlu0 %454 }
  0xae   : > { %v808_v30 = vpack.c.bf16 %v458_v28, %v458_v28  ;;  %v807_v31 = vpack.c.bf16 %v455_v29, %v455_v29  ;;  %v461_v32 = vpop.xlane.xlu2 %460 }
  0xaf   : > { %v809_v35 = vpack.c.bf16 %v461_v32, %v461_v32 }
  0xb0   : > { %937 = vst.msk [vmem:[%s1315_s21 + $0x40] sm:$0xf] %vm920_vm1, %v808_v30  ;;  %v627_v30 = vsel %vm407_vm0, %v352_v22, 0.0 }
  0xb1   : > { %936 = vst.msk [vmem:[%s1315_s21 + $0x3c] sm:$0xf] %vm920_vm1, %v807_v31  ;;  %v624_v31 = vsel %vm407_vm0, %v351_v23, 0.0 }
  0xb2   : > { %592 = vadd.xlane.f32.xlu1 %v591_v33  ;;  %589 = vadd.xlane.f32.xlu0 %v588_v34  ;;  %938 = vst.msk [vmem:[%s1315_s21 + $0x44] sm:$0xf] %vm920_vm1, %v809_v35  ;;  %v630_v33 = vsel %vm407_vm0, %v353_v24, 0.0  ;;  %v223_v34 = vld [vmem:[%s1168_s17 + $0x260] sm:$0xff]  ;;  %v222_v35 = vld [vmem:[%s1168_s17 + $0x258] sm:$0xff] }
  0xb3   : > { %595 = vadd.xlane.f32.xlu2 %v594_v36  ;;  %v224_v36 = vld [vmem:[%s1168_s17 + $0x268] sm:$0xff]  ;;  %v355_v37 = vmul.f32 %v1162_v0, %v223_v34  ;;  %v354_v38 = vmul.f32 %v1162_v0, %v222_v35 }
  0xb4   : > { %v356_v39 = vmul.f32 %v1162_v0, %v224_v36 }
  0xb5   : > { %v467_v43 = vpop.xlane.xlu1 %466  ;;  %v464_v44 = vpop.xlane.xlu0 %463 }
  0xb6   : > { %v811_v45 = vpack.c.bf16 %v467_v43, %v467_v43  ;;  %v810_v46 = vpack.c.bf16 %v464_v44, %v464_v44  ;;  %v470_v47 = vpop.xlane.xlu2 %469 }
  0xb7   : > { %v812_v50 = vpack.c.bf16 %v470_v47, %v470_v47 }
  0xb8   : > { %940 = vst.msk [vmem:[%s1315_s21 + $0x4c] sm:$0xf] %vm920_vm1, %v811_v45  ;;  %v636_v45 = vsel %vm407_vm0, %v355_v37, 0.0 }
  0xb9   : > { %939 = vst.msk [vmem:[%s1315_s21 + $0x48] sm:$0xf] %vm920_vm1, %v810_v46  ;;  %v633_v46 = vsel %vm407_vm0, %v354_v38, 0.0 }
  0xba   : > { %601 = vadd.xlane.f32.xlu1 %v600_v48  ;;  %598 = vadd.xlane.f32.xlu0 %v597_v49  ;;  %941 = vst.msk [vmem:[%s1315_s21 + $0x50] sm:$0xf] %vm920_vm1, %v812_v50  ;;  %v639_v48 = vsel %vm407_vm0, %v356_v39, 0.0  ;;  %v226_v49 = vld [vmem:[%s1168_s17 + $0x278] sm:$0xff]  ;;  %v225_v50 = vld [vmem:[%s1168_s17 + $0x270] sm:$0xff] }
  0xbb   : > { %604 = vadd.xlane.f32.xlu2 %v603_v51  ;;  %v227_v51 = vld [vmem:[%s1168_s17 + $0x280] sm:$0xff]  ;;  %v358_v52 = vmul.f32 %v1162_v0, %v226_v49  ;;  %v357_v53 = vmul.f32 %v1162_v0, %v225_v50 }
  0xbc   : > { %v359_v54 = vmul.f32 %v1162_v0, %v227_v51 }
  0xbd   : > { %v476_v58 = vpop.xlane.xlu1 %475  ;;  %v473_v59 = vpop.xlane.xlu0 %472 }
  0xbe   : > { %v814_v60 = vpack.c.bf16 %v476_v58, %v476_v58  ;;  %v813_v61 = vpack.c.bf16 %v473_v59, %v473_v59  ;;  %v479_v62 = vpop.xlane.xlu2 %478 }
  0xbf   : > { %v815_v2 = vpack.c.bf16 %v479_v62, %v479_v62 }
  0xc0   : > { %943 = vst.msk [vmem:[%s1315_s21 + $0x58] sm:$0xf] %vm920_vm1, %v814_v60  ;;  %v645_v60 = vsel %vm407_vm0, %v358_v52, 0.0 }
  0xc1   : > { %942 = vst.msk [vmem:[%s1315_s21 + $0x54] sm:$0xf] %vm920_vm1, %v813_v61  ;;  %v642_v61 = vsel %vm407_vm0, %v357_v53, 0.0 }
  0xc2   : > { %610 = vadd.xlane.f32.xlu1 %v609_v63  ;;  %607 = vadd.xlane.f32.xlu0 %v606_v1  ;;  %944 = vst.msk [vmem:[%s1315_s21 + $0x5c] sm:$0xf] %vm920_vm1, %v815_v2  ;;  %v648_v63 = vsel %vm407_vm0, %v359_v54, 0.0  ;;  %v229_v1 = vld [vmem:[%s1168_s17 + $0x290] sm:$0xff]  ;;  %v228_v2 = vld [vmem:[%s1168_s17 + $0x288] sm:$0xff] }
  0xc3   : > { %613 = vadd.xlane.f32.xlu2 %v612_v3  ;;  %v230_v3 = vld [vmem:[%s1168_s17 + $0x298] sm:$0xff]  ;;  %v361_v4 = vmul.f32 %v1162_v0, %v229_v1  ;;  %v360_v5 = vmul.f32 %v1162_v0, %v228_v2 }
  0xc4   : > { %v362_v6 = vmul.f32 %v1162_v0, %v230_v3 }
  0xc5   : > { %v485_v10 = vpop.xlane.xlu1 %484  ;;  %v482_v11 = vpop.xlane.xlu0 %481 }
  0xc6   : > { %v817_v12 = vpack.c.bf16 %v485_v10, %v485_v10  ;;  %v816_v13 = vpack.c.bf16 %v482_v11, %v482_v11  ;;  %v488_v14 = vpop.xlane.xlu2 %487 }
  0xc7   : > { %v818_v17 = vpack.c.bf16 %v488_v14, %v488_v14 }
  0xc8   : > { %946 = vst.msk [vmem:[%s1315_s21 + $0x64] sm:$0xf] %vm920_vm1, %v817_v12  ;;  %v654_v12 = vsel %vm407_vm0, %v361_v4, 0.0 }
  0xc9   : > { %945 = vst.msk [vmem:[%s1315_s21 + $0x60] sm:$0xf] %vm920_vm1, %v816_v13  ;;  %v651_v13 = vsel %vm407_vm0, %v360_v5, 0.0 }
  0xca   : > { %619 = vadd.xlane.f32.xlu1 %v618_v15  ;;  %616 = vadd.xlane.f32.xlu0 %v615_v16  ;;  %947 = vst.msk [vmem:[%s1315_s21 + $0x68] sm:$0xf] %vm920_vm1, %v818_v17  ;;  %v657_v15 = vsel %vm407_vm0, %v362_v6, 0.0  ;;  %v232_v16 = vld [vmem:[%s1168_s17 + $0x2a8] sm:$0xff]  ;;  %v231_v17 = vld [vmem:[%s1168_s17 + $0x2a0] sm:$0xff] }
  0xcb   : > { %622 = vadd.xlane.f32.xlu2 %v621_v18  ;;  %v233_v18 = vld [vmem:[%s1168_s17 + $0x2b0] sm:$0xff]  ;;  %v364_v19 = vmul.f32 %v1162_v0, %v232_v16  ;;  %v363_v20 = vmul.f32 %v1162_v0, %v231_v17 }
  0xcc   : > { %v365_v21 = vmul.f32 %v1162_v0, %v233_v18 }
  0xcd   : > { %v494_v25 = vpop.xlane.xlu1 %493  ;;  %v491_v26 = vpop.xlane.xlu0 %490 }
  0xce   : > { %v820_v27 = vpack.c.bf16 %v494_v25, %v494_v25  ;;  %v819_v28 = vpack.c.bf16 %v491_v26, %v491_v26  ;;  %v497_v29 = vpop.xlane.xlu2 %496 }
  0xcf   : > { %v821_v32 = vpack.c.bf16 %v497_v29, %v497_v29 }
  0xd0   : > { %949 = vst.msk [vmem:[%s1315_s21 + $0x70] sm:$0xf] %vm920_vm1, %v820_v27  ;;  %v663_v27 = vsel %vm407_vm0, %v364_v19, 0.0 }
  0xd1   : > { %948 = vst.msk [vmem:[%s1315_s21 + $0x6c] sm:$0xf] %vm920_vm1, %v819_v28  ;;  %v660_v28 = vsel %vm407_vm0, %v363_v20, 0.0 }
  0xd2   : > { %628 = vadd.xlane.f32.xlu1 %v627_v30  ;;  %625 = vadd.xlane.f32.xlu0 %v624_v31  ;;  %950 = vst.msk [vmem:[%s1315_s21 + $0x74] sm:$0xf] %vm920_vm1, %v821_v32  ;;  %v666_v30 = vsel %vm407_vm0, %v365_v21, 0.0  ;;  %v235_v31 = vld [vmem:[%s1168_s17 + $0x2c0] sm:$0xff]  ;;  %v234_v32 = vld [vmem:[%s1168_s17 + $0x2b8] sm:$0xff] }
  0xd3   : > { %631 = vadd.xlane.f32.xlu2 %v630_v33  ;;  %v236_v33 = vld [vmem:[%s1168_s17 + $0x2c8] sm:$0xff]  ;;  %v367_v34 = vmul.f32 %v1162_v0, %v235_v31  ;;  %v366_v35 = vmul.f32 %v1162_v0, %v234_v32 }
  0xd4   : > { %v368_v36 = vmul.f32 %v1162_v0, %v236_v33 }
  0xd5   : > { %v503_v40 = vpop.xlane.xlu1 %502  ;;  %v500_v41 = vpop.xlane.xlu0 %499 }
  0xd6   : > { %v823_v42 = vpack.c.bf16 %v503_v40, %v503_v40  ;;  %v822_v43 = vpack.c.bf16 %v500_v41, %v500_v41  ;;  %v506_v44 = vpop.xlane.xlu2 %505 }
  0xd7   : > { %v824_v47 = vpack.c.bf16 %v506_v44, %v506_v44 }
  0xd8   : > { %952 = vst.msk [vmem:[%s1315_s21 + $0x7c] sm:$0xf] %vm920_vm1, %v823_v42  ;;  %v672_v42 = vsel %vm407_vm0, %v367_v34, 0.0 }
  0xd9   : > { %951 = vst.msk [vmem:[%s1315_s21 + $0x78] sm:$0xf] %vm920_vm1, %v822_v43  ;;  %v669_v43 = vsel %vm407_vm0, %v366_v35, 0.0 }
  0xda   : > { %637 = vadd.xlane.f32.xlu1 %v636_v45  ;;  %634 = vadd.xlane.f32.xlu0 %v633_v46  ;;  %953 = vst.msk [vmem:[%s1315_s21 + $0x80] sm:$0xf] %vm920_vm1, %v824_v47  ;;  %v675_v45 = vsel %vm407_vm0, %v368_v36, 0.0  ;;  %v238_v46 = vld [vmem:[%s1168_s17 + $0x2d8] sm:$0xff]  ;;  %v237_v47 = vld [vmem:[%s1168_s17 + $0x2d0] sm:$0xff] }
  0xdb   : > { %640 = vadd.xlane.f32.xlu2 %v639_v48  ;;  %v239_v48 = vld [vmem:[%s1168_s17 + $0x2e0] sm:$0xff]  ;;  %v370_v49 = vmul.f32 %v1162_v0, %v238_v46  ;;  %v369_v50 = vmul.f32 %v1162_v0, %v237_v47 }
  0xdc   : > { %v371_v51 = vmul.f32 %v1162_v0, %v239_v48  ;;  %v242_v0 = vld [vmem:[%s1168_s17 + $0x2f8] sm:$0xff] }
  0xdd   : > { %v512_v55 = vpop.xlane.xlu1 %511  ;;  %v509_v56 = vpop.xlane.xlu0 %508 }
  0xde   : > { %v826_v57 = vpack.c.bf16 %v512_v55, %v512_v55  ;;  %v825_v58 = vpack.c.bf16 %v509_v56, %v509_v56  ;;  %v515_v59 = vpop.xlane.xlu2 %514 }
  0xdf   : > { %v827_v62 = vpack.c.bf16 %v515_v59, %v515_v59 }
  0xe0   : > { %955 = vst.msk [vmem:[%s1315_s21 + $0x88] sm:$0xf] %vm920_vm1, %v826_v57  ;;  %v681_v57 = vsel %vm407_vm0, %v370_v49, 0.0 }
  0xe1   : > { %954 = vst.msk [vmem:[%s1315_s21 + $0x84] sm:$0xf] %vm920_vm1, %v825_v58  ;;  %v678_v58 = vsel %vm407_vm0, %v369_v50, 0.0 }
  0xe2   : > { %646 = vadd.xlane.f32.xlu1 %v645_v60  ;;  %643 = vadd.xlane.f32.xlu0 %v642_v61  ;;  %956 = vst.msk [vmem:[%s1315_s21 + $0x8c] sm:$0xf] %vm920_vm1, %v827_v62  ;;  %v684_v60 = vsel %vm407_vm0, %v371_v51, 0.0  ;;  %v241_v61 = vld [vmem:[%s1168_s17 + $0x2f0] sm:$0xff]  ;;  %v240_v62 = vld [vmem:[%s1168_s17 + $0x2e8] sm:$0xff] }
  0xe3   : > { %649 = vadd.xlane.f32.xlu2 %v648_v63  ;;  %v1557_v63 = vld [vmem:[%s1825_s1] ss:$0 sm:$0xff] }
  0xe4   : > { %v373_v1 = vmul.f32 %v1557_v63, %v241_v61  ;;  %v372_v2 = vmul.f32 %v1557_v63, %v240_v62  ;;  %v374_v3 = vmul.f32 %v1557_v63, %v242_v0 }
  0xe5   : > { %v521_v7 = vpop.xlane.xlu1 %520  ;;  %v518_v8 = vpop.xlane.xlu0 %517 }
  0xe6   : > { %v829_v9 = vpack.c.bf16 %v521_v7, %v521_v7  ;;  %v828_v10 = vpack.c.bf16 %v518_v8, %v518_v8  ;;  %v524_v11 = vpop.xlane.xlu2 %523 }
  0xe7   : > { %v830_v14 = vpack.c.bf16 %v524_v11, %v524_v11 }
  0xe8   : > { %958 = vst.msk [vmem:[%s1315_s21 + $0x94] sm:$0xf] %vm920_vm1, %v829_v9  ;;  %v690_v9 = vsel %vm407_vm0, %v373_v1, 0.0 }
  0xe9   : > { %957 = vst.msk [vmem:[%s1315_s21 + $0x90] sm:$0xf] %vm920_vm1, %v828_v10  ;;  %v687_v10 = vsel %vm407_vm0, %v372_v2, 0.0 }
  0xea   : > { %655 = vadd.xlane.f32.xlu1 %v654_v12  ;;  %652 = vadd.xlane.f32.xlu0 %v651_v13  ;;  %959 = vst.msk [vmem:[%s1315_s21 + $0x98] sm:$0xf] %vm920_vm1, %v830_v14  ;;  %v693_v12 = vsel %vm407_vm0, %v374_v3, 0.0  ;;  %v244_v13 = vld [vmem:[%s1168_s17 + $0x308] sm:$0xff]  ;;  %v243_v14 = vld [vmem:[%s1168_s17 + $0x300] sm:$0xff] }
  0xeb   : > { %658 = vadd.xlane.f32.xlu2 %v657_v15  ;;  %v245_v15 = vld [vmem:[%s1168_s17 + $0x310] sm:$0xff]  ;;  %v376_v16 = vmul.f32 %v1557_v63, %v244_v13  ;;  %v375_v17 = vmul.f32 %v1557_v63, %v243_v14 }
  0xec   : > { %v377_v18 = vmul.f32 %v1557_v63, %v245_v15 }
  0xed   : > { %v530_v22 = vpop.xlane.xlu1 %529  ;;  %v527_v23 = vpop.xlane.xlu0 %526 }
  0xee   : > { %v832_v24 = vpack.c.bf16 %v530_v22, %v530_v22  ;;  %v831_v25 = vpack.c.bf16 %v527_v23, %v527_v23  ;;  %v533_v26 = vpop.xlane.xlu2 %532 }
  0xef   : > { %v833_v29 = vpack.c.bf16 %v533_v26, %v533_v26 }
  0xf0   : > { %961 = vst.msk [vmem:[%s1315_s21 + $0xa0] sm:$0xf] %vm920_vm1, %v832_v24  ;;  %v699_v24 = vsel %vm407_vm0, %v376_v16, 0.0 }
  0xf1   : > { %960 = vst.msk [vmem:[%s1315_s21 + $0x9c] sm:$0xf] %vm920_vm1, %v831_v25  ;;  %v696_v25 = vsel %vm407_vm0, %v375_v17, 0.0 }
  0xf2   : > { %664 = vadd.xlane.f32.xlu1 %v663_v27  ;;  %661 = vadd.xlane.f32.xlu0 %v660_v28  ;;  %962 = vst.msk [vmem:[%s1315_s21 + $0xa4] sm:$0xf] %vm920_vm1, %v833_v29  ;;  %v702_v27 = vsel %vm407_vm0, %v377_v18, 0.0  ;;  %v247_v28 = vld [vmem:[%s1168_s17 + $0x320] sm:$0xff]  ;;  %v246_v29 = vld [vmem:[%s1168_s17 + $0x318] sm:$0xff] }
  0xf3   : > { %667 = vadd.xlane.f32.xlu2 %v666_v30  ;;  %v248_v30 = vld [vmem:[%s1168_s17 + $0x328] sm:$0xff]  ;;  %v379_v31 = vmul.f32 %v1557_v63, %v247_v28  ;;  %v378_v32 = vmul.f32 %v1557_v63, %v246_v29 }
  0xf4   : > { %v380_v33 = vmul.f32 %v1557_v63, %v248_v30 }
  0xf5   : > { %v539_v37 = vpop.xlane.xlu1 %538  ;;  %v536_v38 = vpop.xlane.xlu0 %535 }
  0xf6   : > { %v835_v39 = vpack.c.bf16 %v539_v37, %v539_v37  ;;  %v834_v40 = vpack.c.bf16 %v536_v38, %v536_v38  ;;  %v542_v41 = vpop.xlane.xlu2 %541 }
  0xf7   : > { %v836_v44 = vpack.c.bf16 %v542_v41, %v542_v41 }
  0xf8   : > { %964 = vst.msk [vmem:[%s1315_s21 + $0xac] sm:$0xf] %vm920_vm1, %v835_v39  ;;  %v708_v39 = vsel %vm407_vm0, %v379_v31, 0.0 }
  0xf9   : > { %963 = vst.msk [vmem:[%s1315_s21 + $0xa8] sm:$0xf] %vm920_vm1, %v834_v40  ;;  %v705_v40 = vsel %vm407_vm0, %v378_v32, 0.0 }
  0xfa   : > { %673 = vadd.xlane.f32.xlu1 %v672_v42  ;;  %670 = vadd.xlane.f32.xlu0 %v669_v43  ;;  %965 = vst.msk [vmem:[%s1315_s21 + $0xb0] sm:$0xf] %vm920_vm1, %v836_v44  ;;  %v711_v42 = vsel %vm407_vm0, %v380_v33, 0.0  ;;  %v250_v43 = vld [vmem:[%s1168_s17 + $0x338] sm:$0xff]  ;;  %v249_v44 = vld [vmem:[%s1168_s17 + $0x330] sm:$0xff] }
  0xfb   : > { %676 = vadd.xlane.f32.xlu2 %v675_v45  ;;  %v251_v45 = vld [vmem:[%s1168_s17 + $0x340] sm:$0xff]  ;;  %v382_v46 = vmul.f32 %v1557_v63, %v250_v43  ;;  %v381_v47 = vmul.f32 %v1557_v63, %v249_v44 }
  0xfc   : > { %v383_v48 = vmul.f32 %v1557_v63, %v251_v45 }
  0xfd   : > { %v548_v52 = vpop.xlane.xlu1 %547  ;;  %v545_v53 = vpop.xlane.xlu0 %544 }
  0xfe   : > { %v838_v54 = vpack.c.bf16 %v548_v52, %v548_v52  ;;  %v837_v55 = vpack.c.bf16 %v545_v53, %v545_v53  ;;  %v551_v56 = vpop.xlane.xlu2 %550 }
  0xff   : > { %v839_v59 = vpack.c.bf16 %v551_v56, %v551_v56 }
 0x100   : > { %967 = vst.msk [vmem:[%s1315_s21 + $0xb8] sm:$0xf] %vm920_vm1, %v838_v54  ;;  %v717_v54 = vsel %vm407_vm0, %v382_v46, 0.0 }
 0x101   : > { %966 = vst.msk [vmem:[%s1315_s21 + $0xb4] sm:$0xf] %vm920_vm1, %v837_v55  ;;  %v714_v55 = vsel %vm407_vm0, %v381_v47, 0.0 }
 0x102   : > { %682 = vadd.xlane.f32.xlu1 %v681_v57  ;;  %679 = vadd.xlane.f32.xlu0 %v678_v58  ;;  %968 = vst.msk [vmem:[%s1315_s21 + $0xbc] sm:$0xf] %vm920_vm1, %v839_v59  ;;  %v720_v57 = vsel %vm407_vm0, %v383_v48, 0.0  ;;  %v253_v58 = vld [vmem:[%s1168_s17 + $0x350] sm:$0xff]  ;;  %v252_v59 = vld [vmem:[%s1168_s17 + $0x348] sm:$0xff] }
 0x103   : > { %685 = vadd.xlane.f32.xlu2 %v684_v60  ;;  %v254_v60 = vld [vmem:[%s1168_s17 + $0x358] sm:$0xff]  ;;  %v385_v61 = vmul.f32 %v1557_v63, %v253_v58  ;;  %v384_v62 = vmul.f32 %v1557_v63, %v252_v59 }
 0x104   : > { %v386_v0 = vmul.f32 %v1557_v63, %v254_v60 }
 0x105   : > { %v557_v4 = vpop.xlane.xlu1 %556  ;;  %v554_v5 = vpop.xlane.xlu0 %553 }
 0x106   : > { %v841_v6 = vpack.c.bf16 %v557_v4, %v557_v4  ;;  %v840_v7 = vpack.c.bf16 %v554_v5, %v554_v5  ;;  %v560_v8 = vpop.xlane.xlu2 %559 }
 0x107   : > { %v842_v11 = vpack.c.bf16 %v560_v8, %v560_v8 }
 0x108   : > { %970 = vst.msk [vmem:[%s1315_s21 + $0xc4] sm:$0xf] %vm920_vm1, %v841_v6  ;;  %v726_v6 = vsel %vm407_vm0, %v385_v61, 0.0 }
 0x109   : > { %969 = vst.msk [vmem:[%s1315_s21 + $0xc0] sm:$0xf] %vm920_vm1, %v840_v7  ;;  %v723_v7 = vsel %vm407_vm0, %v384_v62, 0.0 }
 0x10a   : > { %691 = vadd.xlane.f32.xlu1 %v690_v9  ;;  %688 = vadd.xlane.f32.xlu0 %v687_v10  ;;  %971 = vst.msk [vmem:[%s1315_s21 + $0xc8] sm:$0xf] %vm920_vm1, %v842_v11  ;;  %v729_v9 = vsel %vm407_vm0, %v386_v0, 0.0  ;;  %v256_v10 = vld [vmem:[%s1168_s17 + $0x368] sm:$0xff]  ;;  %v255_v11 = vld [vmem:[%s1168_s17 + $0x360] sm:$0xff] }
 0x10b   : > { %694 = vadd.xlane.f32.xlu2 %v693_v12  ;;  %v257_v12 = vld [vmem:[%s1168_s17 + $0x370] sm:$0xff]  ;;  %v388_v13 = vmul.f32 %v1557_v63, %v256_v10  ;;  %v387_v14 = vmul.f32 %v1557_v63, %v255_v11 }
 0x10c   : > { %v389_v15 = vmul.f32 %v1557_v63, %v257_v12 }
 0x10d   : > { %v566_v19 = vpop.xlane.xlu1 %565  ;;  %v563_v20 = vpop.xlane.xlu0 %562 }
 0x10e   : > { %v844_v21 = vpack.c.bf16 %v566_v19, %v566_v19  ;;  %v843_v22 = vpack.c.bf16 %v563_v20, %v563_v20  ;;  %v569_v23 = vpop.xlane.xlu2 %568 }
 0x10f   : > { %v845_v26 = vpack.c.bf16 %v569_v23, %v569_v23 }
 0x110   : > { %973 = vst.msk [vmem:[%s1315_s21 + $0xd0] sm:$0xf] %vm920_vm1, %v844_v21  ;;  %v735_v21 = vsel %vm407_vm0, %v388_v13, 0.0 }
 0x111   : > { %972 = vst.msk [vmem:[%s1315_s21 + $0xcc] sm:$0xf] %vm920_vm1, %v843_v22  ;;  %v732_v22 = vsel %vm407_vm0, %v387_v14, 0.0 }
 0x112   : > { %700 = vadd.xlane.f32.xlu1 %v699_v24  ;;  %697 = vadd.xlane.f32.xlu0 %v696_v25  ;;  %974 = vst.msk [vmem:[%s1315_s21 + $0xd4] sm:$0xf] %vm920_vm1, %v845_v26  ;;  %v738_v24 = vsel %vm407_vm0, %v389_v15, 0.0  ;;  %v259_v25 = vld [vmem:[%s1168_s17 + $0x380] sm:$0xff]  ;;  %v258_v26 = vld [vmem:[%s1168_s17 + $0x378] sm:$0xff] }
 0x113   : > { %703 = vadd.xlane.f32.xlu2 %v702_v27  ;;  %v260_v27 = vld [vmem:[%s1168_s17 + $0x388] sm:$0xff]  ;;  %v391_v28 = vmul.f32 %v1557_v63, %v259_v25  ;;  %v390_v29 = vmul.f32 %v1557_v63, %v258_v26 }
 0x114   : > { %v392_v30 = vmul.f32 %v1557_v63, %v260_v27 }
 0x115   : > { %v575_v34 = vpop.xlane.xlu1 %574  ;;  %v572_v35 = vpop.xlane.xlu0 %571 }
 0x116   : > { %v847_v36 = vpack.c.bf16 %v575_v34, %v575_v34  ;;  %v846_v37 = vpack.c.bf16 %v572_v35, %v572_v35  ;;  %v578_v38 = vpop.xlane.xlu2 %577 }
 0x117   : > { %v848_v41 = vpack.c.bf16 %v578_v38, %v578_v38 }
 0x118   : > { %976 = vst.msk [vmem:[%s1315_s21 + $0xdc] sm:$0xf] %vm920_vm1, %v847_v36  ;;  %v744_v36 = vsel %vm407_vm0, %v391_v28, 0.0 }
 0x119   : > { %975 = vst.msk [vmem:[%s1315_s21 + $0xd8] sm:$0xf] %vm920_vm1, %v846_v37  ;;  %v741_v37 = vsel %vm407_vm0, %v390_v29, 0.0 }
 0x11a   : > { %709 = vadd.xlane.f32.xlu1 %v708_v39  ;;  %706 = vadd.xlane.f32.xlu0 %v705_v40  ;;  %977 = vst.msk [vmem:[%s1315_s21 + $0xe0] sm:$0xf] %vm920_vm1, %v848_v41  ;;  %v747_v39 = vsel %vm407_vm0, %v392_v30, 0.0  ;;  %v262_v40 = vld [vmem:[%s1168_s17 + $0x398] sm:$0xff]  ;;  %v261_v41 = vld [vmem:[%s1168_s17 + $0x390] sm:$0xff] }
 0x11b   : > { %712 = vadd.xlane.f32.xlu2 %v711_v42  ;;  %v263_v42 = vld [vmem:[%s1168_s17 + $0x3a0] sm:$0xff]  ;;  %v394_v43 = vmul.f32 %v1557_v63, %v262_v40  ;;  %v393_v44 = vmul.f32 %v1557_v63, %v261_v41 }
 0x11c   : > { %v395_v45 = vmul.f32 %v1557_v63, %v263_v42 }
 0x11d   : > { %v584_v49 = vpop.xlane.xlu1 %583  ;;  %v581_v50 = vpop.xlane.xlu0 %580 }
 0x11e   : > { %v850_v51 = vpack.c.bf16 %v584_v49, %v584_v49  ;;  %v849_v52 = vpack.c.bf16 %v581_v50, %v581_v50  ;;  %v587_v53 = vpop.xlane.xlu2 %586 }
 0x11f   : > { %v851_v56 = vpack.c.bf16 %v587_v53, %v587_v53 }
 0x120   : > { %979 = vst.msk [vmem:[%s1315_s21 + $0xe8] sm:$0xf] %vm920_vm1, %v850_v51  ;;  %v753_v51 = vsel %vm407_vm0, %v394_v43, 0.0 }
 0x121   : > { %978 = vst.msk [vmem:[%s1315_s21 + $0xe4] sm:$0xf] %vm920_vm1, %v849_v52  ;;  %v750_v52 = vsel %vm407_vm0, %v393_v44, 0.0 }
 0x122   : > { %718 = vadd.xlane.f32.xlu1 %v717_v54  ;;  %715 = vadd.xlane.f32.xlu0 %v714_v55  ;;  %980 = vst.msk [vmem:[%s1315_s21 + $0xec] sm:$0xf] %vm920_vm1, %v851_v56  ;;  %v756_v54 = vsel %vm407_vm0, %v395_v45, 0.0  ;;  %v265_v55 = vld [vmem:[%s1168_s17 + $0x3b0] sm:$0xff]  ;;  %v264_v56 = vld [vmem:[%s1168_s17 + $0x3a8] sm:$0xff] }
 0x123   : > { %721 = vadd.xlane.f32.xlu2 %v720_v57  ;;  %v266_v57 = vld [vmem:[%s1168_s17 + $0x3b8] sm:$0xff]  ;;  %v397_v58 = vmul.f32 %v1557_v63, %v265_v55  ;;  %v396_v59 = vmul.f32 %v1557_v63, %v264_v56 }
 0x124   : > { %v398_v60 = vmul.f32 %v1557_v63, %v266_v57 }
 0x125   : > { %v593_v1 = vpop.xlane.xlu1 %592  ;;  %v590_v2 = vpop.xlane.xlu0 %589 }
 0x126   : > { %v853_v3 = vpack.c.bf16 %v593_v1, %v593_v1  ;;  %v852_v4 = vpack.c.bf16 %v590_v2, %v590_v2  ;;  %v596_v5 = vpop.xlane.xlu2 %595 }
 0x127   : > { %v854_v8 = vpack.c.bf16 %v596_v5, %v596_v5 }
 0x128   : > { %982 = vst.msk [vmem:[%s1315_s21 + $0xf4] sm:$0xf] %vm920_vm1, %v853_v3  ;;  %v762_v3 = vsel %vm407_vm0, %v397_v58, 0.0 }
 0x129   : > { %981 = vst.msk [vmem:[%s1315_s21 + $0xf0] sm:$0xf] %vm920_vm1, %v852_v4  ;;  %v759_v4 = vsel %vm407_vm0, %v396_v59, 0.0 }
 0x12a   : > { %727 = vadd.xlane.f32.xlu1 %v726_v6  ;;  %724 = vadd.xlane.f32.xlu0 %v723_v7  ;;  %983 = vst.msk [vmem:[%s1315_s21 + $0xf8] sm:$0xf] %vm920_vm1, %v854_v8  ;;  %v765_v6 = vsel %vm407_vm0, %v398_v60, 0.0  ;;  %v268_v7 = vld [vmem:[%s1168_s17 + $0x3c8] sm:$0xff]  ;;  %v267_v8 = vld [vmem:[%s1168_s17 + $0x3c0] sm:$0xff] }
 0x12b   : > { %730 = vadd.xlane.f32.xlu2 %v729_v9  ;;  %v269_v9 = vld [vmem:[%s1168_s17 + $0x3d0] sm:$0xff]  ;;  %v400_v10 = vmul.f32 %v1557_v63, %v268_v7  ;;  %v399_v11 = vmul.f32 %v1557_v63, %v267_v8 }
 0x12c   : > { %v401_v12 = vmul.f32 %v1557_v63, %v269_v9 }
 0x12d   : > { %v602_v16 = vpop.xlane.xlu1 %601  ;;  %v599_v17 = vpop.xlane.xlu0 %598 }
 0x12e   : > { %v856_v18 = vpack.c.bf16 %v602_v16, %v602_v16  ;;  %v855_v19 = vpack.c.bf16 %v599_v17, %v599_v17  ;;  %v605_v20 = vpop.xlane.xlu2 %604 }
 0x12f   : > { %v857_v23 = vpack.c.bf16 %v605_v20, %v605_v20 }
 0x130   : > { %985 = vst.msk [vmem:[%s1315_s21 + $0x100] sm:$0xf] %vm920_vm1, %v856_v18  ;;  %v771_v18 = vsel %vm407_vm0, %v400_v10, 0.0 }
 0x131   : > { %984 = vst.msk [vmem:[%s1315_s21 + $0xfc] sm:$0xf] %vm920_vm1, %v855_v19  ;;  %v768_v19 = vsel %vm407_vm0, %v399_v11, 0.0 }
 0x132   : > { %736 = vadd.xlane.f32.xlu1 %v735_v21  ;;  %733 = vadd.xlane.f32.xlu0 %v732_v22  ;;  %986 = vst.msk [vmem:[%s1315_s21 + $0x104] sm:$0xf] %vm920_vm1, %v857_v23  ;;  %v774_v21 = vsel %vm407_vm0, %v401_v12, 0.0  ;;  %v271_v22 = vld [vmem:[%s1168_s17 + $0x3e0] sm:$0xff]  ;;  %v270_v23 = vld [vmem:[%s1168_s17 + $0x3d8] sm:$0xff] }
 0x133   : > { %739 = vadd.xlane.f32.xlu2 %v738_v24  ;;  %v272_v24 = vld [vmem:[%s1168_s17 + $0x3e8] sm:$0xff]  ;;  %v403_v25 = vmul.f32 %v1557_v63, %v271_v22  ;;  %v402_v26 = vmul.f32 %v1557_v63, %v270_v23 }
 0x134   : > { %v404_v27 = vmul.f32 %v1557_v63, %v272_v24 }
 0x135   : > { %v611_v31 = vpop.xlane.xlu1 %610  ;;  %v608_v32 = vpop.xlane.xlu0 %607 }
 0x136   : > { %v859_v33 = vpack.c.bf16 %v611_v31, %v611_v31  ;;  %v858_v34 = vpack.c.bf16 %v608_v32, %v608_v32  ;;  %v614_v35 = vpop.xlane.xlu2 %613 }
 0x137   : > { %v860_v38 = vpack.c.bf16 %v614_v35, %v614_v35 }
 0x138   : > { %988 = vst.msk [vmem:[%s1315_s21 + $0x10c] sm:$0xf] %vm920_vm1, %v859_v33  ;;  %v780_v33 = vsel %vm407_vm0, %v403_v25, 0.0 }
 0x139   : > { %987 = vst.msk [vmem:[%s1315_s21 + $0x108] sm:$0xf] %vm920_vm1, %v858_v34  ;;  %v777_v34 = vsel %vm407_vm0, %v402_v26, 0.0 }
 0x13a   : > { %745 = vadd.xlane.f32.xlu1 %v744_v36  ;;  %742 = vadd.xlane.f32.xlu0 %v741_v37  ;;  %989 = vst.msk [vmem:[%s1315_s21 + $0x110] sm:$0xf] %vm920_vm1, %v860_v38  ;;  %v783_v36 = vsel %vm407_vm0, %v404_v27, 0.0  ;;  %v274_v37 = vld [vmem:[%s1168_s17 + $0x3f8] sm:$0xff]  ;;  %v273_v38 = vld [vmem:[%s1168_s17 + $0x3f0] sm:$0xff] }
 0x13b   : > { %748 = vadd.xlane.f32.xlu2 %v747_v39  ;;  %v406_v39 = vmul.f32 %v1557_v63, %v274_v37  ;;  %v405_v40 = vmul.f32 %v1557_v63, %v273_v38 }
 0x13d   : > { %v620_v46 = vpop.xlane.xlu1 %619  ;;  %v617_v47 = vpop.xlane.xlu0 %616 }
 0x13e   : > { %v862_v48 = vpack.c.bf16 %v620_v46, %v620_v46  ;;  %v861_v49 = vpack.c.bf16 %v617_v47, %v617_v47  ;;  %v623_v50 = vpop.xlane.xlu2 %622  ;;  %v789_v46 = vsel %vm407_vm0, %v406_v39, 0.0  ;;  %v786_v47 = vsel %vm407_vm0, %v405_v40, 0.0 }
 0x13f   : > { %v863_v53 = vpack.c.bf16 %v623_v50, %v623_v50 }
 0x140   : > { %991 = vst.msk [vmem:[%s1315_s21 + $0x118] sm:$0xf] %vm920_vm1, %v862_v48 }
 0x141   : > { %990 = vst.msk [vmem:[%s1315_s21 + $0x114] sm:$0xf] %vm920_vm1, %v861_v49 }
 0x142   : > { %754 = vadd.xlane.f32.xlu1 %v753_v51  ;;  %751 = vadd.xlane.f32.xlu0 %v750_v52  ;;  %992 = vst.msk [vmem:[%s1315_s21 + $0x11c] sm:$0xf] %vm920_vm1, %v863_v53 }
 0x143   : > { %757 = vadd.xlane.f32.xlu2 %v756_v54 }
 0x145   : > { %v629_v61 = vpop.xlane.xlu1 %628  ;;  %v626_v62 = vpop.xlane.xlu0 %625 }
 0x146   : > { %v865_v0 = vpack.c.bf16 %v629_v61, %v629_v61  ;;  %v864_v1 = vpack.c.bf16 %v626_v62, %v626_v62  ;;  %v632_v2 = vpop.xlane.xlu2 %631 }
 0x147   : > { %v866_v5 = vpack.c.bf16 %v632_v2, %v632_v2 }
 0x148   : > { %994 = vst.msk [vmem:[%s1315_s21 + $0x124] sm:$0xf] %vm920_vm1, %v865_v0 }
 0x149   : > { %993 = vst.msk [vmem:[%s1315_s21 + $0x120] sm:$0xf] %vm920_vm1, %v864_v1 }
 0x14a   : > { %763 = vadd.xlane.f32.xlu1 %v762_v3  ;;  %760 = vadd.xlane.f32.xlu0 %v759_v4  ;;  %995 = vst.msk [vmem:[%s1315_s21 + $0x128] sm:$0xf] %vm920_vm1, %v866_v5 }
 0x14b   : > { %766 = vadd.xlane.f32.xlu2 %v765_v6 }
 0x14d   : > { %v638_v13 = vpop.xlane.xlu1 %637  ;;  %v635_v14 = vpop.xlane.xlu0 %634 }
 0x14e   : > { %v868_v15 = vpack.c.bf16 %v638_v13, %v638_v13  ;;  %v867_v16 = vpack.c.bf16 %v635_v14, %v635_v14  ;;  %v641_v17 = vpop.xlane.xlu2 %640 }
 0x14f   : > { %v869_v20 = vpack.c.bf16 %v641_v17, %v641_v17 }
 0x150   : > { %997 = vst.msk [vmem:[%s1315_s21 + $0x130] sm:$0xf] %vm920_vm1, %v868_v15 }
 0x151   : > { %996 = vst.msk [vmem:[%s1315_s21 + $0x12c] sm:$0xf] %vm920_vm1, %v867_v16 }
 0x152   : > { %772 = vadd.xlane.f32.xlu1 %v771_v18  ;;  %769 = vadd.xlane.f32.xlu0 %v768_v19  ;;  %998 = vst.msk [vmem:[%s1315_s21 + $0x134] sm:$0xf] %vm920_vm1, %v869_v20 }
 0x153   : > { %775 = vadd.xlane.f32.xlu2 %v774_v21 }
 0x155   : > { %v647_v28 = vpop.xlane.xlu1 %646  ;;  %v644_v29 = vpop.xlane.xlu0 %643 }
 0x156   : > { %v871_v30 = vpack.c.bf16 %v647_v28, %v647_v28  ;;  %v870_v31 = vpack.c.bf16 %v644_v29, %v644_v29  ;;  %v650_v32 = vpop.xlane.xlu2 %649 }
 0x157   : > { %v872_v35 = vpack.c.bf16 %v650_v32, %v650_v32 }
 0x158   : > { %1000 = vst.msk [vmem:[%s1315_s21 + $0x13c] sm:$0xf] %vm920_vm1, %v871_v30 }
 0x159   : > { %999 = vst.msk [vmem:[%s1315_s21 + $0x138] sm:$0xf] %vm920_vm1, %v870_v31 }
 0x15a   : > { %781 = vadd.xlane.f32.xlu1 %v780_v33  ;;  %778 = vadd.xlane.f32.xlu0 %v777_v34  ;;  %1001 = vst.msk [vmem:[%s1315_s21 + $0x140] sm:$0xf] %vm920_vm1, %v872_v35 }
 0x15b   : > { %784 = vadd.xlane.f32.xlu2 %v783_v36 }
 0x15d   : > { %v656_v41 = vpop.xlane.xlu1 %655  ;;  %v653_v42 = vpop.xlane.xlu0 %652 }
 0x15e   : > { %v874_v43 = vpack.c.bf16 %v656_v41, %v656_v41  ;;  %v873_v44 = vpack.c.bf16 %v653_v42, %v653_v42  ;;  %v659_v45 = vpop.xlane.xlu2 %658 }
 0x15f   : > { %v875_v48 = vpack.c.bf16 %v659_v45, %v659_v45 }
 0x160   : > { %1003 = vst.msk [vmem:[%s1315_s21 + $0x148] sm:$0xf] %vm920_vm1, %v874_v43 }
 0x161   : > { %1002 = vst.msk [vmem:[%s1315_s21 + $0x144] sm:$0xf] %vm920_vm1, %v873_v44 }
 0x162   : > { %790 = vadd.xlane.f32.xlu1 %v789_v46  ;;  %787 = vadd.xlane.f32.xlu0 %v786_v47  ;;  %1004 = vst.msk [vmem:[%s1315_s21 + $0x14c] sm:$0xf] %vm920_vm1, %v875_v48 }
 0x165   : > { %v665_v63 = vpop.xlane.xlu1 %664  ;;  %v662_v49 = vpop.xlane.xlu0 %661 }
 0x166   : > { %v877_v50 = vpack.c.bf16 %v665_v63, %v665_v63  ;;  %v876_v51 = vpack.c.bf16 %v662_v49, %v662_v49  ;;  %v668_v52 = vpop.xlane.xlu2 %667 }
 0x167   : > { %v878_v53 = vpack.c.bf16 %v668_v52, %v668_v52 }
 0x168   : > { %1006 = vst.msk [vmem:[%s1315_s21 + $0x154] sm:$0xf] %vm920_vm1, %v877_v50 }
 0x169   : > { %1005 = vst.msk [vmem:[%s1315_s21 + $0x150] sm:$0xf] %vm920_vm1, %v876_v51 }
 0x16a   : > { %1007 = vst.msk [vmem:[%s1315_s21 + $0x158] sm:$0xf] %vm920_vm1, %v878_v53 }
 0x16d   : > { %v674_v54 = vpop.xlane.xlu1 %673  ;;  %v671_v55 = vpop.xlane.xlu0 %670 }
 0x16e   : > { %v880_v56 = vpack.c.bf16 %v674_v54, %v674_v54  ;;  %v879_v57 = vpack.c.bf16 %v671_v55, %v671_v55  ;;  %v677_v58 = vpop.xlane.xlu2 %676 }
 0x16f   : > { %v881_v59 = vpack.c.bf16 %v677_v58, %v677_v58 }
 0x170   : > { %1009 = vst.msk [vmem:[%s1315_s21 + $0x160] sm:$0xf] %vm920_vm1, %v880_v56 }
 0x171   : > { %1008 = vst.msk [vmem:[%s1315_s21 + $0x15c] sm:$0xf] %vm920_vm1, %v879_v57 }
 0x172   : > { %1010 = vst.msk [vmem:[%s1315_s21 + $0x164] sm:$0xf] %vm920_vm1, %v881_v59 }
 0x175   : > { %v683_v60 = vpop.xlane.xlu1 %682  ;;  %v680_v61 = vpop.xlane.xlu0 %679 }
 0x176   : > { %v883_v62 = vpack.c.bf16 %v683_v60, %v683_v60  ;;  %v882_v0 = vpack.c.bf16 %v680_v61, %v680_v61  ;;  %v686_v1 = vpop.xlane.xlu2 %685 }
 0x177   : > { %v884_v2 = vpack.c.bf16 %v686_v1, %v686_v1 }
 0x178   : > { %1012 = vst.msk [vmem:[%s1315_s21 + $0x16c] sm:$0xf] %vm920_vm1, %v883_v62 }
 0x179   : > { %1011 = vst.msk [vmem:[%s1315_s21 + $0x168] sm:$0xf] %vm920_vm1, %v882_v0 }
 0x17a   : > { %1013 = vst.msk [vmem:[%s1315_s21 + $0x170] sm:$0xf] %vm920_vm1, %v884_v2 }
 0x17d   : > { %v692_v3 = vpop.xlane.xlu1 %691  ;;  %v689_v4 = vpop.xlane.xlu0 %688 }
 0x17e   : > { %v886_v5 = vpack.c.bf16 %v692_v3, %v692_v3  ;;  %v885_v6 = vpack.c.bf16 %v689_v4, %v689_v4  ;;  %v695_v7 = vpop.xlane.xlu2 %694 }
 0x17f   : > { %v887_v8 = vpack.c.bf16 %v695_v7, %v695_v7 }
 0x180   : > { %1015 = vst.msk [vmem:[%s1315_s21 + $0x178] sm:$0xf] %vm920_vm1, %v886_v5 }
 0x181   : > { %1014 = vst.msk [vmem:[%s1315_s21 + $0x174] sm:$0xf] %vm920_vm1, %v885_v6 }
 0x182   : > { %1016 = vst.msk [vmem:[%s1315_s21 + $0x17c] sm:$0xf] %vm920_vm1, %v887_v8 }
 0x185   : > { %v701_v9 = vpop.xlane.xlu1 %700  ;;  %v698_v10 = vpop.xlane.xlu0 %697 }
 0x186   : > { %v889_v11 = vpack.c.bf16 %v701_v9, %v701_v9  ;;  %v888_v12 = vpack.c.bf16 %v698_v10, %v698_v10  ;;  %v704_v13 = vpop.xlane.xlu2 %703 }
 0x187   : > { %v890_v14 = vpack.c.bf16 %v704_v13, %v704_v13 }
 0x188   : > { %1018 = vst.msk [vmem:[%s1315_s21 + $0x184] sm:$0xf] %vm920_vm1, %v889_v11 }
 0x189   : > { %1017 = vst.msk [vmem:[%s1315_s21 + $0x180] sm:$0xf] %vm920_vm1, %v888_v12 }
 0x18a   : > { %1019 = vst.msk [vmem:[%s1315_s21 + $0x188] sm:$0xf] %vm920_vm1, %v890_v14 }
 0x18d   : > { %v710_v15 = vpop.xlane.xlu1 %709  ;;  %v707_v16 = vpop.xlane.xlu0 %706 }
 0x18e   : > { %v892_v17 = vpack.c.bf16 %v710_v15, %v710_v15  ;;  %v891_v18 = vpack.c.bf16 %v707_v16, %v707_v16  ;;  %v713_v19 = vpop.xlane.xlu2 %712 }
 0x18f   : > { %v893_v20 = vpack.c.bf16 %v713_v19, %v713_v19 }
 0x190   : > { %1021 = vst.msk [vmem:[%s1315_s21 + $0x190] sm:$0xf] %vm920_vm1, %v892_v17 }
 0x191   : > { %1020 = vst.msk [vmem:[%s1315_s21 + $0x18c] sm:$0xf] %vm920_vm1, %v891_v18 }
 0x192   : > { %1022 = vst.msk [vmem:[%s1315_s21 + $0x194] sm:$0xf] %vm920_vm1, %v893_v20 }
 0x195   : > { %v719_v21 = vpop.xlane.xlu1 %718  ;;  %v716_v22 = vpop.xlane.xlu0 %715 }
 0x196   : > { %v895_v23 = vpack.c.bf16 %v719_v21, %v719_v21  ;;  %v894_v24 = vpack.c.bf16 %v716_v22, %v716_v22  ;;  %v722_v25 = vpop.xlane.xlu2 %721 }
 0x197   : > { %v896_v26 = vpack.c.bf16 %v722_v25, %v722_v25 }
 0x198   : > { %1024 = vst.msk [vmem:[%s1315_s21 + $0x19c] sm:$0xf] %vm920_vm1, %v895_v23 }
 0x199   : > { %1023 = vst.msk [vmem:[%s1315_s21 + $0x198] sm:$0xf] %vm920_vm1, %v894_v24 }
 0x19a   : > { %1025 = vst.msk [vmem:[%s1315_s21 + $0x1a0] sm:$0xf] %vm920_vm1, %v896_v26 }
 0x19d   : > { %v728_v27 = vpop.xlane.xlu1 %727  ;;  %v725_v28 = vpop.xlane.xlu0 %724 }
 0x19e   : > { %v898_v29 = vpack.c.bf16 %v728_v27, %v728_v27  ;;  %v897_v30 = vpack.c.bf16 %v725_v28, %v725_v28  ;;  %v731_v31 = vpop.xlane.xlu2 %730 }
 0x19f   : > { %v899_v32 = vpack.c.bf16 %v731_v31, %v731_v31 }
 0x1a0   : > { %1027 = vst.msk [vmem:[%s1315_s21 + $0x1a8] sm:$0xf] %vm920_vm1, %v898_v29 }
 0x1a1   : > { %1026 = vst.msk [vmem:[%s1315_s21 + $0x1a4] sm:$0xf] %vm920_vm1, %v897_v30 }
 0x1a2   : > { %1028 = vst.msk [vmem:[%s1315_s21 + $0x1ac] sm:$0xf] %vm920_vm1, %v899_v32 }
 0x1a5   : > { %v737_v33 = vpop.xlane.xlu1 %736  ;;  %v734_v34 = vpop.xlane.xlu0 %733 }
 0x1a6   : > { %v901_v35 = vpack.c.bf16 %v737_v33, %v737_v33  ;;  %v900_v36 = vpack.c.bf16 %v734_v34, %v734_v34  ;;  %v740_v37 = vpop.xlane.xlu2 %739 }
 0x1a7   : > { %v902_v38 = vpack.c.bf16 %v740_v37, %v740_v37 }
 0x1a8   : > { %1030 = vst.msk [vmem:[%s1315_s21 + $0x1b4] sm:$0xf] %vm920_vm1, %v901_v35 }
 0x1a9   : > { %1029 = vst.msk [vmem:[%s1315_s21 + $0x1b0] sm:$0xf] %vm920_vm1, %v900_v36 }
 0x1aa   : > { %1031 = vst.msk [vmem:[%s1315_s21 + $0x1b8] sm:$0xf] %vm920_vm1, %v902_v38 }
 0x1ad   : > { %v746_v39 = vpop.xlane.xlu1 %745  ;;  %v743_v40 = vpop.xlane.xlu0 %742 }
 0x1ae   : > { %v904_v41 = vpack.c.bf16 %v746_v39, %v746_v39  ;;  %v903_v42 = vpack.c.bf16 %v743_v40, %v743_v40  ;;  %v749_v43 = vpop.xlane.xlu2 %748 }
 0x1af   : > { %v905_v44 = vpack.c.bf16 %v749_v43, %v749_v43 }
 0x1b0   : > { %1033 = vst.msk [vmem:[%s1315_s21 + $0x1c0] sm:$0xf] %vm920_vm1, %v904_v41 }
 0x1b1   : > { %1032 = vst.msk [vmem:[%s1315_s21 + $0x1bc] sm:$0xf] %vm920_vm1, %v903_v42 }
 0x1b2   : > { %1034 = vst.msk [vmem:[%s1315_s21 + $0x1c4] sm:$0xf] %vm920_vm1, %v905_v44 }
 0x1b5   : > { %v755_v45 = vpop.xlane.xlu1 %754  ;;  %v752_v46 = vpop.xlane.xlu0 %751 }
 0x1b6   : > { %v907_v47 = vpack.c.bf16 %v755_v45, %v755_v45  ;;  %v906_v48 = vpack.c.bf16 %v752_v46, %v752_v46  ;;  %v758_v63 = vpop.xlane.xlu2 %757 }
 0x1b7   : > { %v908_v49 = vpack.c.bf16 %v758_v63, %v758_v63 }
 0x1b8   : > { %1036 = vst.msk [vmem:[%s1315_s21 + $0x1cc] sm:$0xf] %vm920_vm1, %v907_v47 }
 0x1b9   : > { %1035 = vst.msk [vmem:[%s1315_s21 + $0x1c8] sm:$0xf] %vm920_vm1, %v906_v48 }
 0x1ba   : > { %1037 = vst.msk [vmem:[%s1315_s21 + $0x1d0] sm:$0xf] %vm920_vm1, %v908_v49 }
 0x1bd   : > { %v764_v50 = vpop.xlane.xlu1 %763  ;;  %v761_v51 = vpop.xlane.xlu0 %760 }
 0x1be   : > { %v910_v52 = vpack.c.bf16 %v764_v50, %v764_v50  ;;  %v909_v53 = vpack.c.bf16 %v761_v51, %v761_v51  ;;  %v767_v54 = vpop.xlane.xlu2 %766 }
 0x1bf   : > { %v911_v55 = vpack.c.bf16 %v767_v54, %v767_v54 }
 0x1c0   : > { %1039 = vst.msk [vmem:[%s1315_s21 + $0x1d8] sm:$0xf] %vm920_vm1, %v910_v52 }
 0x1c1   : > { %1038 = vst.msk [vmem:[%s1315_s21 + $0x1d4] sm:$0xf] %vm920_vm1, %v909_v53 }
 0x1c2   : > { %1040 = vst.msk [vmem:[%s1315_s21 + $0x1dc] sm:$0xf] %vm920_vm1, %v911_v55 }
 0x1c5   : > { %v773_v56 = vpop.xlane.xlu1 %772  ;;  %v770_v57 = vpop.xlane.xlu0 %769 }
 0x1c6   : > { %v913_v58 = vpack.c.bf16 %v773_v56, %v773_v56  ;;  %v912_v59 = vpack.c.bf16 %v770_v57, %v770_v57  ;;  %v776_v60 = vpop.xlane.xlu2 %775 }
 0x1c7   : > { %v914_v61 = vpack.c.bf16 %v776_v60, %v776_v60 }
 0x1c8   : > { %1042 = vst.msk [vmem:[%s1315_s21 + $0x1e4] sm:$0xf] %vm920_vm1, %v913_v58 }
 0x1c9   : > { %1041 = vst.msk [vmem:[%s1315_s21 + $0x1e0] sm:$0xf] %vm920_vm1, %v912_v59 }
 0x1ca   : > { %1043 = vst.msk [vmem:[%s1315_s21 + $0x1e8] sm:$0xf] %vm920_vm1, %v914_v61 }
 0x1cd   : > { %v782_v62 = vpop.xlane.xlu1 %781  ;;  %v779_v0 = vpop.xlane.xlu0 %778 }
 0x1ce   : > { %v916_v1 = vpack.c.bf16 %v782_v62, %v782_v62  ;;  %v915_v2 = vpack.c.bf16 %v779_v0, %v779_v0  ;;  %v785_v3 = vpop.xlane.xlu2 %784 }
 0x1cf   : > { %v917_v4 = vpack.c.bf16 %v785_v3, %v785_v3 }
 0x1d0   : > { %1045 = vst.msk [vmem:[%s1315_s21 + $0x1f0] sm:$0xf] %vm920_vm1, %v916_v1 }
 0x1d1   : > { %1044 = vst.msk [vmem:[%s1315_s21 + $0x1ec] sm:$0xf] %vm920_vm1, %v915_v2 }
 0x1d2   : > { %1046 = vst.msk [vmem:[%s1315_s21 + $0x1f4] sm:$0xf] %vm920_vm1, %v917_v4 }
 0x1d5   : > { %v791_v5 = vpop.xlane.xlu1 %790  ;;  %v788_v6 = vpop.xlane.xlu0 %787 }
 0x1d6   : > { %v919_v7 = vpack.c.bf16 %v791_v5, %v791_v5  ;;  %v918_v8 = vpack.c.bf16 %v788_v6, %v788_v6 }
 0x1d8   : > { %1048 = vst.msk [vmem:[%s1315_s21 + $0x1fc] sm:$0xf] %vm920_vm1, %v919_v7 }
 0x1d9   : > { %1047 = vst.msk [vmem:[%s1315_s21 + $0x1f8] sm:$0xf] %vm920_vm1, %v918_v8 }
 0x1da PF: > { %s12_s9 = sadd.s32 1, %s1132_s9  }
 0x1db   : > { %p9_p4 = scmp.ge.s32.totalorder %s12_s9, 6  }
 0x1dd   :  { %11 = sbr.rel (!%p9_p4) target bundleno = 1 (0x1), region = 58 }

// kernel: mp_relative_self_attn_forward.16
= control target key start
LH: loop header
LB: loop body
LE: loop exit
PB: predicated region body
PF: predicated region fallthrough
CT: control target
= control target key end

     0   :  { %vm31_vm0 = vcmask 64512   ;;  %vm56_vm1 = vcmask 7168   ;;  %s152_s0 = inlined_call_operand.vmem [shape: f32[64,8], index: 0, kind: input, shape index: {}]   ;;  %s153_s1 = inlined_call_operand.vmem [shape: f32[1,8], index: 1, kind: input, shape index: {}]   ;;  %s154_s2 = inlined_call_operand.vmem [shape: f32[64,1], index: 2, kind: output, shape index: {}]  }
   0x1   :  { %v13_v0 = vld [vmem:[%s152_s0 + $0x10] sm:$0xff]  ;;  %v69_v1 = vld [vmem:[%s153_s1] ss:$0 sm:$0xff]  ;;  %v14_v7 = vld [vmem:[%s152_s0 + $0x18] sm:$0xff] }
   0x2   :  { %v11_v2 = vld [vmem:[%s152_s0] sm:$0xff]  ;;  %v25_v4 = vmul.f32 %v69_v1, %v13_v0  ;;  %v12_v8 = vld [vmem:[%s152_s0 + $0x8] sm:$0xff]  ;;  %v26_v13 = vmul.f32 %v69_v1, %v14_v7  ;;  %v18_v19 = vld [vmem:[%s152_s0 + $0x38] sm:$0xff] }
   0x3   :  { %v15_v3 = vld [vmem:[%s152_s0 + $0x20] sm:$0xff]  ;;  %v23_v5 = vmul.f32 %v69_v1, %v11_v2  ;;  %v16_v12 = vld [vmem:[%s152_s0 + $0x28] sm:$0xff]  ;;  %v24_v14 = vmul.f32 %v69_v1, %v12_v8  ;;  %v17_v20 = vld [vmem:[%s152_s0 + $0x30] sm:$0xff]  ;;  %v30_v21 = vmul.f32 %v69_v1, %v18_v19 }
   0x4   :  { %v27_v6 = vmul.f32 %v69_v1, %v15_v3  ;;  %v38_v9 = vsel %vm31_vm0, %v25_v4, 0.0  ;;  %v28_v15 = vmul.f32 %v69_v1, %v16_v12  ;;  %v41_v16 = vsel %vm31_vm0, %v26_v13, 0.0 }
   0x5   :  { %v32_v10 = vsel %vm31_vm0, %v23_v5, 0.0  ;;  %39 = vadd.xlane.f32.xlu1 %v38_v9  ;;  %v35_v17 = vsel %vm31_vm0, %v24_v14, 0.0  ;;  %v29_v22 = vmul.f32 %v69_v1, %v17_v20  ;;  %v53_v23 = vsel %vm31_vm0, %v30_v21, 0.0 }
   0x6   :  { %v44_v11 = vsel %vm31_vm0, %v27_v6, 0.0  ;;  %33 = vadd.xlane.f32.xlu0 %v32_v10  ;;  %v47_v18 = vsel %vm31_vm0, %v28_v15, 0.0 }
   0x7   :  { %45 = vadd.xlane.f32.xlu2 %v44_v11  ;;  %v50_v24 = vsel %vm31_vm0, %v29_v22, 0.0 }
   0xd   :  { %42 = vadd.xlane.f32.xlu1 %v41_v16 }
   0xe   :  { %36 = vadd.xlane.f32.xlu0 %v35_v17 }
   0xf   :  { %48 = vadd.xlane.f32.xlu2 %v47_v18 }
  0x15   :  { %54 = vadd.xlane.f32.xlu1 %v53_v23 }
  0x16   :  { %51 = vadd.xlane.f32.xlu0 %v50_v24 }
  0x78   :  { %v40_v25 = vpop.xlane.xlu1 %39 }
  0x79   :  { %v34_v26 = vpop.xlane.xlu0 %33  ;;  %59 = vst.msk [vmem:[%s154_s2 + $0x10] sm:$0xff] %vm56_vm1, %v40_v25 }
  0x7a   :  { %v46_v27 = vpop.xlane.xlu2 %45  ;;  %57 = vst.msk [vmem:[%s154_s2] sm:$0xff] %vm56_vm1, %v34_v26 }
  0x7b   :  { %61 = vst.msk [vmem:[%s154_s2 + $0x20] sm:$0xff] %vm56_vm1, %v46_v27 }
  0x80   :  { %v43_v28 = vpop.xlane.xlu1 %42 }
  0x81   :  { %v37_v29 = vpop.xlane.xlu0 %36  ;;  %60 = vst.msk [vmem:[%s154_s2 + $0x18] sm:$0xff] %vm56_vm1, %v43_v28 }
  0x82   :  { %v49_v30 = vpop.xlane.xlu2 %48  ;;  %58 = vst.msk [vmem:[%s154_s2 + $0x8] sm:$0xff] %vm56_vm1, %v37_v29 }
  0x83   :  { %62 = vst.msk [vmem:[%s154_s2 + $0x28] sm:$0xff] %vm56_vm1, %v49_v30 }
  0x88   :  { %v55_v31 = vpop.xlane.xlu1 %54 }
  0x89   :  { %v52_v32 = vpop.xlane.xlu0 %51  ;;  %64 = vst.msk [vmem:[%s154_s2 + $0x38] sm:$0xff] %vm56_vm1, %v55_v31 }
  0x8a   :  { %63 = vst.msk [vmem:[%s154_s2 + $0x30] sm:$0xff] %vm56_vm1, %v52_v32 }

// kernel: mp_relative_self_attn_forward.21
= control target key start
LH: loop header
LB: loop body
LE: loop exit
PB: predicated region body
PF: predicated region fallthrough
CT: control target
= control target key end

     0   :  { %vm19_vm0 = vcmask 523264   ;;  %v156_v1 = vmov 0.0   ;;  %vm119_vm1 = vcmask 519168   ;;  %s226_s1 = inlined_call_operand.vmem [shape: bf16[64,64], index: 1, kind: input, shape index: {}]   ;;  %s227_s2 = inlined_call_operand.vmem [shape: f32[1,64], index: 2, kind: input, shape index: {}]   ;;  %s228_s0 = inlined_call_operand.vmem [shape: f32[32,64], index: 0, kind: input, shape index: {}]   ;;  %s229_s3 = inlined_call_operand.vmem [shape: bf16[32,64], index: 3, kind: output, shape index: {}]  }
   0x1   :  { %v149_v0 = vld [vmem:[%s226_s1 + $0x18] sm:$0xff]  ;;  %20 = vst.msk [vmem:[#allocation2] sm:$0xff] %vm19_vm0, %v156_v1  ;;  %v148_v2 = vld [vmem:[%s226_s1 + $0x10] sm:$0xff]  ;;  %v147_v3 = vld [vmem:[%s226_s1 + $0x8] sm:$0xff] }
   0x2   :  { %21 = vst.msk [vmem:[#allocation2 + $0x8] sm:$0xff] %vm19_vm0, %v156_v1  ;;  %77 = vmatpush.bf16.msra.mxu0 %v149_v0  ;;  %150 = vmatpush.bf16.msra.mxu1 %v149_v0  ;;  %v146_v4 = vld [vmem:[%s226_s1] sm:$0xff]  ;;  %v29_v6 = vld [vmem:[%s228_s0 + $0x8] sm:$0xff]  ;;  %v30_v7 = vld [vmem:[%s228_s0 + $0x10] sm:$0xff] }
   0x3   :  { %22 = vst.msk [vmem:[#allocation2 + $0x10] sm:$0xff] %vm19_vm0, %v156_v1  ;;  %v28_v5 = vld [vmem:[%s228_s0] sm:$0xff]  ;;  %v31_v8 = vld [vmem:[%s228_s0 + $0x18] sm:$0xff] }
   0x4   :  { %23 = vst.msk [vmem:[#allocation2 + $0x18] sm:$0xff] %vm19_vm0, %v156_v1  ;;  %v32_v9 = vpack.c.bf16 %v29_v6, %v28_v5  ;;  %v33_v10 = vpack.c.bf16 %v31_v8, %v30_v7  ;;  %v155_v19 = vld [vmem:[%s227_s2] ss:$0 sm:$0xff] }
   0x6   :  { %78 = vmatpush.bf16.msra.mxu0 %v148_v2  ;;  %151 = vmatpush.bf16.msra.mxu1 %v148_v2 }
   0x8   :  { %v24_v11 = vld [vmem:[#allocation2] sm:$0xff] }
   0x9   :  { %v25_v17 = vld [vmem:[#allocation2 + $0x8] sm:$0xff] }
   0xa   :  { %79 = vmatpush.bf16.msra.mxu0 %v147_v3  ;;  %152 = vmatpush.bf16.msra.mxu1 %v147_v3  ;;  %v26_v12 = vld [vmem:[#allocation2 + $0x10] sm:$0xff] }
   0xb   :  { %v27_v18 = vld [vmem:[#allocation2 + $0x18] sm:$0xff] }
   0xe   :  { %80 = vmatpush.bf16.msra.mxu0 %v146_v4  ;;  %153 = vmatpush.bf16.msra.mxu1 %v146_v4 }
  0x11   :  { %144 = vmatmul.msk.bf16.vlgmr.msra.gmra.mxu0 %vm19_vm0, %v32_v9  ;;  %145 = vmatmul.msk.bf16.vlgmr.msra.gmra.mxu1 %vm19_vm0, %v33_v10 }
  0x8e   :  { %v82_v13 = vpop.f32.mrf.mxu0  ;;  %v87_v14 = vpop.f32.mrf.mxu1 }
  0x8f   :  { %v92_v15 = vadd.f32 %v82_v13, %v24_v11  ;;  %v94_v16 = vadd.f32 %v87_v14, %v26_v12 }
  0x91   :  { %96 = vst.msk [vmem:[#allocation2] sm:$0xff] %vm19_vm0, %v92_v15 }
  0x92   :  { %98 = vst.msk [vmem:[#allocation2 + $0x10] sm:$0xff] %vm19_vm0, %v94_v16 }
  0x96   :  { %v84_v20 = vpop.f32.mrf.mxu0  ;;  %v89_v21 = vpop.f32.mrf.mxu1 }
  0x97   :  { %v93_v22 = vadd.f32 %v84_v20, %v25_v17  ;;  %v95_v23 = vadd.f32 %v89_v21, %v27_v18 }
  0x98   :  { %v103_v24 = vld [vmem:[#allocation2] sm:$0xff] }
  0x99   :  { %v111_v25 = vadd.f32 %v155_v19, %v103_v24  ;;  %v105_v26 = vld [vmem:[#allocation2 + $0x10] sm:$0xff]  ;;  %97 = vst.msk [vmem:[#allocation2 + $0x8] sm:$0xff] %vm19_vm0, %v93_v22 }
  0x9a   :  { %v113_v27 = vadd.f32 %v155_v19, %v105_v26  ;;  %99 = vst.msk [vmem:[#allocation2 + $0x18] sm:$0xff] %vm19_vm0, %v95_v23 }
  0x9b   :  { %v115_v28 = vpack.c.bf16 %v111_v25, %v111_v25 }
  0x9c   :  { %v117_v29 = vpack.c.bf16 %v113_v27, %v113_v27 }
  0x9d   :  { %120 = vst.msk [vmem:[%s229_s3] sm:$0xf] %vm119_vm1, %v115_v28 }
  0x9e   :  { %122 = vst.msk [vmem:[%s229_s3 + $0x8] sm:$0xf] %vm119_vm1, %v117_v29 }
  0xa0   :  { %v104_v30 = vld [vmem:[#allocation2 + $0x8] sm:$0xff] }
  0xa1   :  { %v112_v31 = vadd.f32 %v155_v19, %v104_v30  ;;  %v106_v32 = vld [vmem:[#allocation2 + $0x18] sm:$0xff] }
  0xa2   :  { %v114_v33 = vadd.f32 %v155_v19, %v106_v32 }
  0xa3   :  { %v116_v34 = vpack.c.bf16 %v112_v31, %v112_v31 }
  0xa4   :  { %v118_v35 = vpack.c.bf16 %v114_v33, %v114_v33 }
  0xa5   :  { %121 = vst.msk [vmem:[%s229_s3 + $0x4] sm:$0xf] %vm119_vm1, %v116_v34 }
  0xa6   :  { %123 = vst.msk [vmem:[%s229_s3 + $0xc] sm:$0xf] %vm119_vm1, %v118_v35 }

// kernel: mp_relative_self_attn_forward.23
= control target key start
LH: loop header
LB: loop body
LE: loop exit
PB: predicated region body
PF: predicated region fallthrough
CT: control target
= control target key end

     0   :  { %vm20_vm0 = vcmask 523264   ;;  %v213_v1 = vmov 0.0   ;;  %s275_s0 = inlined_call_operand.vmem [shape: bf16[32,64], index: 0, kind: input, shape index: {}]   ;;  %s276_s1 = inlined_call_operand.vmem [shape: bf16[64,64], index: 1, kind: input, shape index: {}]   ;;  %s277_s2 = inlined_call_operand.vmem [shape: f32[1,64], index: 2, kind: input, shape index: {}]   ;;  %s278_s3 = inlined_call_operand.hbm [shape: f32[32,64], index: 3, kind: output, shape index: {}]  }
   0x1   :  { %v177_v0 = vld [vmem:[%s276_s1 + $0x18] sm:$0xff]  ;;  %21 = vst.msk [vmem:[#allocation2] sm:$0xff] %vm20_vm0, %v213_v1  ;;  %v176_v2 = vld [vmem:[%s276_s1 + $0x10] sm:$0xff] }
   0x2   :  { %86 = vmatpush.bf16.msra.mxu0 %v177_v0  ;;  %178 = vmatpush.bf16.msra.mxu1 %v177_v0  ;;  %22 = vst.msk [vmem:[#allocation2 + $0x8] sm:$0xff] %vm20_vm0, %v213_v1 }
   0x3   :  { %8 = vsyncpa [#allocation4], 0  ;;  %23 = vst.msk [vmem:[#allocation2 + $0x10] sm:$0xff] %vm20_vm0, %v213_v1  ;;  %v175_v3 = vld [vmem:[%s276_s1 + $0x8] sm:$0xff]  ;;  %v174_v4 = vld [vmem:[%s276_s1] sm:$0xff]  ;;  %s214_s24 = smov [#allocation3]  }
   0x4   :  { %24 = vst.msk [vmem:[#allocation2 + $0x18] sm:$0xff] %vm20_vm0, %v213_v1  ;;  %v172_v5 = vld [vmem:[%s275_s0] sm:$0xff]  ;;  %v173_v6 = vld [vmem:[%s275_s0 + $0x8] sm:$0xff]  ;;  %s132_s25 = sshll.u32 %s214_s24, 4  ;;  %s134_s27 = sshll.u32 %s278_s3, 4  ;;  %s133_s25 = int_to_ptr.vmem [resolvable:$true] %s132_s25  ;;  %s135_s27 = int_to_ptr.hbm [resolvable:$true] %s134_s27 }
   0x5   :  { %v186_v15 = vld [vmem:[%s277_s2] ss:$0 sm:$0xff]  ;;  %s215_s28 = smov 128   ;;  %s216_s29 = smov 8  }
   0x6   :  { %87 = vmatpush.bf16.msra.mxu0 %v176_v2  ;;  %179 = vmatpush.bf16.msra.mxu1 %v176_v2 }
   0x8   :  { %v25_v7 = vld [vmem:[#allocation2] sm:$0xff] }
   0x9   :  { %v26_v13 = vld [vmem:[#allocation2 + $0x8] sm:$0xff] }
   0xa   :  { %88 = vmatpush.bf16.msra.mxu0 %v175_v3  ;;  %180 = vmatpush.bf16.msra.mxu1 %v175_v3  ;;  %v27_v8 = vld [vmem:[#allocation2 + $0x10] sm:$0xff] }
   0xb   :  { %v28_v14 = vld [vmem:[#allocation2 + $0x18] sm:$0xff] }
   0xe   :  { %89 = vmatpush.bf16.msra.mxu0 %v174_v4  ;;  %181 = vmatpush.bf16.msra.mxu1 %v174_v4 }
  0x11   :  { %170 = vmatmul.msk.bf16.vlgmr.msra.gmra.mxu0 %vm20_vm0, %v172_v5  ;;  %171 = vmatmul.msk.bf16.vlgmr.msra.gmra.mxu1 %vm20_vm0, %v173_v6 }
  0x8e   :  { %v91_v9 = vpop.f32.mrf.mxu0  ;;  %v96_v10 = vpop.f32.mrf.mxu1 }
  0x8f   :  { %v101_v11 = vadd.f32 %v91_v9, %v25_v7  ;;  %v103_v12 = vadd.f32 %v96_v10, %v27_v8 }
  0x91   :  { %105 = vst.msk [vmem:[#allocation2] sm:$0xff] %vm20_vm0, %v101_v11 }
  0x92   :  { %107 = vst.msk [vmem:[#allocation2 + $0x10] sm:$0xff] %vm20_vm0, %v103_v12 }
  0x96   :  { %v93_v16 = vpop.f32.mrf.mxu0  ;;  %v98_v17 = vpop.f32.mrf.mxu1 }
  0x97   :  { %v102_v18 = vadd.f32 %v93_v16, %v26_v13  ;;  %v104_v19 = vadd.f32 %v98_v17, %v28_v14 }
  0x98   :  { %v112_v20 = vld [vmem:[#allocation2] sm:$0xff] }
  0x99   :  { %106 = vst.msk [vmem:[#allocation2 + $0x8] sm:$0xff] %vm20_vm0, %v102_v18  ;;  %v114_v21 = vld [vmem:[#allocation2 + $0x10] sm:$0xff]  ;;  %v120_v22 = vadd.f32 %v186_v15, %v112_v20 }
  0x9a   :  { %108 = vst.msk [vmem:[#allocation2 + $0x18] sm:$0xff] %vm20_vm0, %v104_v19  ;;  %v122_v23 = vadd.f32 %v186_v15, %v114_v21 }
  0x9b   :  { %124 = vst.msk [vmem:[#allocation3] sm:$0xff] %vm20_vm0, %v120_v22 }
  0x9c   :  { %126 = vst.msk [vmem:[#allocation3 + $0x10] sm:$0xff] %vm20_vm0, %v122_v23 }
  0xa0   :  { %v113_v24 = vld [vmem:[#allocation2 + $0x8] sm:$0xff] }
  0xa1   :  { %v115_v25 = vld [vmem:[#allocation2 + $0x18] sm:$0xff]  ;;  %v121_v26 = vadd.f32 %v186_v15, %v113_v24 }
  0xa2   :  { %v123_v27 = vadd.f32 %v186_v15, %v115_v25 }
  0xa3   :  { %125 = vst.msk [vmem:[#allocation3 + $0x8] sm:$0xff] %vm20_vm0, %v121_v26 }
  0xa4   :  { %127 = vst.msk [vmem:[#allocation3 + $0x18] sm:$0xff] %vm20_vm0, %v123_v27 }
  0xa5   :  { %140 = dma.vmem_to_hbm [thread:$0]  %s133_s25, 512, %s135_s27, [#allocation4], %s215_s28, %s215_s28, %s216_s29  }
  0xa6   :  { %211 = dma.done.wait [#allocation4], 512  }
  0xa7   :  { %212 = vsyncadd [#allocation4], 4294966784 }
  0xa8   :  { %145 = vsyncpa [#allocation4], 1 }

// kernel: mp_relative_self_attn_forward.22
= control target key start
LH: loop header
LB: loop body
LE: loop exit
PB: predicated region body
PF: predicated region fallthrough
CT: control target
= control target key end

     0   :  { %s1424_s0 = inlined_call_operand.vmem [shape: bf16[8,16,16], index: 0, kind: input, shape index: {}]   ;;  %s1425_s1 = inlined_call_operand.vmem [shape: bf16[8,16,16], index: 1, kind: input, shape index: {}]   ;;  %s1426_s2 = inlined_call_operand.vmem [shape: bf16[8,16,16], index: 2, kind: input, shape index: {}]   ;;  %s1427_s3 = inlined_call_operand.vmem [shape: bf16[8,16,16], index: 3, kind: input, shape index: {}]   ;;  %s1428_s4 = inlined_call_operand.vmem [shape: bf16[4,1,16], index: 4, kind: input, shape index: {}]   ;;  %s1429_s5 = inlined_call_operand.vmem [shape: bf16[4,1,16], index: 5, kind: input, shape index: {}]   ;;  %s1430_s6 = inlined_call_operand.vmem [shape: bf16[8,16,16], index: 6, kind: output, shape index: {0}]   ;;  %s1431_s7 = inlined_call_operand.hbm [shape: f32[8,16,16], index: 7, kind: output, shape index: {1}]  }
   0x1   :  { %1434 = sst [smem:[#allocation6_spill]] %s1424_s0 }
   0x2   :  { %1435 = sst [smem:[#allocation7_spill]] %s1425_s1 }
   0x3   :  { %1436 = sst [smem:[#allocation8_spill]] %s1426_s2 }
   0x4   :  { %13 = vsyncpa [#allocation3], 0 }
   0x5   :  { %15 = vsyncpa [#allocation3 + $0x1], 0  ;;  %s1228_s24 = smov 0   ;;  %s1230_s25 = smov 0  }
   0x6   :  { %s1232_s26 = smov 0   ;;  %s1234_s27 = smov 0  }
   0x7   :  { %s1236_s28 = smov 0   ;;  %s1238_s29 = smov 0  }
   0x8   :  { %s1240_s30 = smov 0   ;;  %s1242_s8 = smov 0  }
   0x9 LB: > { %s928_s9 = sadd.s32 4294967295, %s1177_s8   ;;  %s30_s10 = sadd.s32 1, %s1169_s29  ;;  %s1177_s8 = sphi %s1242_s8, %s21_s8   ;;  %s1173_s30 = sphi %s1240_s30, %s1451_s30   ;;  %s1169_s29 = sphi %s1238_s29, %s1450_s29   ;;  %s1165_s28 = sphi %s1236_s28, %s1449_s28   ;;  %s1161_s27 = sphi %s1234_s27, %s1448_s27   ;;  %s1157_s26 = sphi %s1232_s26, %s1447_s26   ;;  %s1153_s25 = sphi %s1230_s25, %s1446_s25   ;;  %s1149_s24 = sphi %s1228_s24, %s1445_s24  }
   0xa   : > { %s33_s11 = sadd.s32 1, %s1173_s30  ;;  %p31_p0 = scmp.ge.s32.totalorder %s30_s10, 4 }
   0xb   : > { %s940_s12 = sshll.u32 %s1173_s30, 2  ;;  %s929_s13 = sadd.s32 4294967294, %s1177_s8  }
   0xc   : > { %s240_s14 = sadd.s32 %s1169_s29, %s940_s12  ;;  %s1453_s10 = smov (%p31_p0, %s30_s10), 0 }
   0xd   : > { %s1455_s11 = smov (!%p31_p0, %s33_s11), %s1173_s30  ;;  %p256_p1 = scmp.ne.s32.totalorder %s1157_s26, %s1153_s25 }
   0xe   : > { %p257_p2 = scmp.eq.s32.totalorder %s928_s9, 7  ;;  %p35_p3 = scmp.ge.s32.totalorder %s1455_s11, 2 }
   0xf   : > { %p262_p4 = scmp.ne.s32.totalorder %s1153_s25, %s1149_s24  ;;  %p263_p6 = scmp.eq.s32.totalorder %s929_s13, 7 }
  0x10   : > { %p1281_p5 = por %p257_p2, %p256_p1  ;;  %s1457_s11 = smov (%p35_p3, %s1455_s11), 0 }
  0x11   : > { %1438 = sst [smem:[#allocation5_spill]] %s1457_s11  ;;  %p1287_p7 = por %p263_p6, %p262_p4 }
  0x12   : > { %p944_p8 = scmp.ge.s32.totalorder %s1177_s8, 1  ;;  %s941_s17 = sshll.u32 %s1457_s11, 2 }
  0x13   : > { %p341_p9 = scmp.lt.s32.totalorder %s1177_s8, 9  ;;  %s242_s18 = sadd.s32 %s941_s17, %s1453_s10 }
  0x14   : > { %s246_s19 = sadd.s32 1, %s1157_s26  ;;  %s243_s20 = ssub.s32 %s240_s14, %s242_s18 }
  0x15   : > { %p342_p10 = pnand %p944_p8, %p341_p9  ;;  %p244_p11 = scmp.eq.s32.totalorder %s243_s20, 0 }
  0x16   : > { %s946_s22 = sshll.u32 (!%p342_p10), %s1165_s28, 2  ;;  %p445_p12 = scmp.lt.s32.totalorder (!%p342_p10), %s1161_s27, 3 }
  0x17   : > { %s1297_s21 = scalar_select %p244_p11, %s1157_s26, %s246_s19  }
  0x18   : > { %345 = sbr.rel (%p342_p10) target bundleno = 1047 (0x417), region = 44  ;;  %s1302_s23 = sadd.s32 (!%p342_p10), %s1161_s27, %s946_s22 }
  0x19   : > { %p411_p13 = scmp.lt.s32.totalorder (!%p342_p10), %s1302_s23, 7  ;;  %s1440_s0 = sld [smem:[#allocation6_spill]] (!%p342_p10) }
  0x1a   : > { %s1181_s12 = smov (!%p342_p10), 126   ;;  %s1182_s13 = smov (!%p342_p10), 14  }
  0x1b   : > { %s1441_s1 = sld [smem:[#allocation7_spill]] (!%p342_p10)  ;;  %s1184_s20 = smov (!%p342_p10), 12  }
  0x1c   : > { %s1442_s2 = sld [smem:[#allocation8_spill]] (!%p342_p10)  ;;  %s990_s22 = sshll.u32 (!%p342_p10), %s1302_s23, 4 }
  0x1d   : > { %s1459_s27 = smov (!%p445_p12, %s1161_s27), 3  ;;  %vm496_vm0 = vcmask 130048   ;;  %v517_v14 = vlaneseq  ;;  %vm538_vm1 = vcmask 121856   ;;  %vm561_vm4 = vcmask 113664  }
  0x1e   : > { %s412_s9 = scalar_select %p411_p13, %s1302_s23, 7  ;;  %vm584_vm7 = vcmask 97280   ;;  %vm607_vm10 = vcmask 64512   ;;  %vm618_vm11 = vcmask 1046528  }
  0x1f   : > { %s450_s14 = scalar_lea.vmem %s1429_s5, %s1459_s27  ;;  %v1334_v15 = vshrl.u32 %v517_v14, 7  ;;  %v521_v58 = vand.u32 127, %v517_v14  ;;  %s1103_s23 = scalar_lea.hbm %s1431_s7, 128 }
  0x20   : > { %s1313_s17 = sshll.u32 %s412_s9, 3  ;;  %v472_v0 = vld [vmem:[%s450_s14] sm:$0x1]  ;;  %s1180_s9 = smov 15  }
  0x21   : > { %s442_s19 = scalar_lea.vmem %s1427_s3, %s1313_s17  ;;  %s415_s11 = scalar_lea.vmem %s1440_s0, %s1313_s17  ;;  %v484_v1 = vpack.i.b16 %v472_v0, %v472_v0  ;;  %v522_v16 = vsub.s32 15, %v1334_v15  ;;  %v1338_v19 = vadd.s32 8, %v1334_v15  ;;  %v628_v60 = vadd.s32 1, %v1334_v15 }
  0x22   : > { %v989_v2 = vld [vmem:[%s442_s19] sm:$0xff]  ;;  %s424_s18 = scalar_lea.vmem %s1441_s1, %s1313_s17  ;;  %s1183_s19 = smov 124   ;;  %vm626_vm15 = vcmp.le.s32.totalorder %v521_v58, %v1334_v15 }
  0x23   : > { %v1323_v3 = vld [vmem:[%s415_s11] sm:$0xff]   ;;  %v486_v6 = vperm.slane %v484_v1, 0  ;;  %v501_v7 = vsel %vm496_vm0, %v989_v2, 0  ;;  %s1179_s11 = smov 127   ;;  %v541_v18 = vand.u32 1, %v522_v16  ;;  %v523_v20 = vsub.s32 15, %v1338_v19  ;;  %s433_s28 = scalar_lea.vmem %s1442_s2, %s1313_s17 }
  0x24   : > { %v993_v4 = vunpack.c.l.bf16 %v1323_v3  ;;  %v994_v5 = vunpack.c.h.bf16 %v1323_v3  ;;  %510 = vmatpush.bf16.xpose.msra.mxu0 %v501_v7  ;;  %v564_v30 = vand.u32 2, %v522_v16  ;;  %v987_v31 = vld [vmem:[%s424_s18] sm:$0xff]  ;;  %v587_v48 = vand.u32 4, %v522_v16  ;;  %s406_s18 = sand.u32 1, %s1153_s25  }
  0x25   : > { %v487_v8 = vunpack.c.l.bf16 %v486_v6  ;;  %vm543_vm2 = vcmp.ne.s32.totalorder %v541_v18, 0  ;;  %v542_v25 = vand.u32 1, %v523_v20  ;;  %v645_v32 = vsel %vm496_vm0, %v987_v31, 0 }
  0x26   : > { %vm566_vm5 = vcmp.ne.s32.totalorder %v564_v30, 0  ;;  %654 = vmatpush.bf16.xpose.msra.mxu1 %v645_v32  ;;  %v565_v36 = vand.u32 2, %v523_v20  ;;  %vm589_vm8 = vcmp.ne.s32.totalorder %v587_v48, 0  ;;  %v588_v53 = vand.u32 4, %v523_v20 }
  0x27   : > { %v488_v9 = vadd.f32 %v993_v4, %v487_v8  ;;  %v489_v10 = vadd.f32 %v994_v5, %v487_v8  ;;  %vm544_vm3 = vcmp.ne.s32.totalorder %v542_v25, 0  ;;  %v629_v59 = vadd.s32 1, %v1338_v19 }
  0x28   : > { %vm567_vm6 = vcmp.ne.s32.totalorder %v565_v36, 0  ;;  %vm590_vm9 = vcmp.ne.s32.totalorder %v588_v53, 0  ;;  %vm630_vm13 = vcmp.eq.s32.totalorder %v521_v58, %v628_v60  ;;  %vm627_vm14 = vcmp.le.s32.totalorder %v521_v58, %v1338_v19 }
  0x29   : > { %v490_v11 = vpack.c.bf16 %v489_v10, %v488_v9  ;;  %vm631_vm12 = vcmp.eq.s32.totalorder %v521_v58, %v629_v59 }
  0x2b   : > { %965 = vmatmul.msk.bf16.vlgmr.msra.gmra.mxu0 %vm496_vm0, %v490_v11 }
  0xa8   : > { %v512_v12 = vpop.f32.mrf.mxu0 }
  0xa9   : > { %526 = vrot.lane.b32.xlu0 %v512_v12, %s1179_s11 }
  0xb0   : > { %v514_v13 = vpop.f32.mrf.mxu0 }
  0xb1   : > { %532 = vrot.lane.b32.xlu0 %v512_v12, %s1180_s9  ;;  %528 = vrot.lane.b32.xlu1 %v514_v13, %s1179_s11 }
  0xb9   : > { %534 = vrot.lane.b32.xlu1 %v514_v13, %s1180_s9  ;;  %s447_s9 = scalar_lea.vmem %s1428_s4, %s1459_s27  ;;  %s1433_s27 = smov 8  }
  0xba   : > { %v471_v41 = vld [vmem:[%s447_s9] sm:$0x1] }
  0xbb   : > { %v474_v42 = vpack.i.b16 %v471_v41, %v471_v41 }
  0xbd   : > { %v476_v43 = vperm.slane %v474_v42, 0 }
  0xbf   : > { %v479_v44 = vunpack.c.l.bf16 %v476_v43 }
  0xc1   : > { %v480_v45 = vadd.f32 %v993_v4, %v479_v44  ;;  %v481_v46 = vadd.f32 %v994_v5, %v479_v44 }
  0xc3   : > { %v482_v47 = vpack.c.bf16 %v481_v46, %v480_v45 }
  0xc5   : > { %970 = vmatmul.msk.bf16.vlgmr.msra.gmra.mxu1 %vm496_vm0, %v482_v47 }
 0x11b   : > { %v527_v17 = vpop.permute.xlu0 %526 }
 0x123   : > { %v533_v21 = vpop.permute.xlu0 %532  ;;  %v529_v22 = vpop.permute.xlu1 %528 }
 0x124   : > { %v539_v23 = vsel %vm538_vm1, %v527_v17, %v533_v21 }
 0x125   : > { %v545_v24 = vsel %vm543_vm2, %v539_v23, %v512_v12 }
 0x126   : > { %549 = vrot.lane.b32.xlu2 %v545_v24, %s1181_s12 }
 0x12b   : > { %v535_v26 = vpop.permute.xlu1 %534 }
 0x12c   : > { %v540_v27 = vsel %vm538_vm1, %v529_v22, %v535_v26  ;;  %v988_v26 = vld [vmem:[%s433_s28] sm:$0xff]  ;;  %s750_s28 = scalar_lea.sflag [#allocation3], %s406_s18 }
 0x12d   : > { %v546_v28 = vsel %vm544_vm3, %v540_v27, %v514_v13  ;;  %730 = vmatpush.bf16.msra.mxu2 %v988_v26 }
 0x12e   : > { %555 = vrot.lane.b32.xlu2 %v545_v24, %s1182_s13  ;;  %557 = vrot.lane.b32.xlu1 %v546_v28, %s1182_s13 }
 0x12f   : > { %551 = vrot.lane.b32.xlu0 %v546_v28, %s1181_s12  ;;  %s1186_s12 = smov 120  }
 0x142   : > { %v656_v57 = vpop.f32.mrf.mxu1 }
 0x14a   : > { %v658_v7 = vpop.f32.mrf.mxu1 }
 0x180   : > { %v550_v29 = vpop.permute.xlu2 %549 }
 0x188   : > { %v556_v33 = vpop.permute.xlu2 %555 }
 0x189   : > { %v562_v34 = vsel %vm561_vm4, %v550_v29, %v556_v33 }
 0x18a   : > { %v568_v35 = vsel %vm566_vm5, %v562_v34, %v545_v24 }
 0x18b   : > { %572 = vrot.lane.b32.xlu2 %v568_v35, %s1183_s19  ;;  %578 = vrot.lane.b32.xlu0 %v568_v35, %s1184_s20 }
 0x1a0   : > { %v558_v37 = vpop.permute.xlu1 %557 }
 0x1a1   : > { %v552_v38 = vpop.permute.xlu0 %551 }
 0x1a2   : > { %v563_v39 = vsel %vm561_vm4, %v552_v38, %v558_v37 }
 0x1a3   : > { %v569_v40 = vsel %vm567_vm6, %v563_v39, %v546_v28 }
 0x1a4   : > { %580 = vrot.lane.b32.xlu2 %v569_v40, %s1184_s20  ;;  %574 = vrot.lane.b32.xlu1 %v569_v40, %s1183_s19  ;;  %s945_s19 = sshll.u32 %s406_s18, 4 }
 0x1a5   : > { %s408_s20 = scalar_lea.vmem [#allocation2], %s945_s19 }
 0x1a6   : > { %s769_s13 = sshll.u32 %s408_s20, 4  ;;  %s770_s13 = int_to_ptr.vmem [resolvable:$true] %s769_s13 }
 0x1e5   : > { %v573_v49 = vpop.permute.xlu2 %572 }
 0x1fd   : > { %v579_v50 = vpop.permute.xlu0 %578 }
 0x1fe   : > { %v585_v51 = vsel %vm584_vm7, %v573_v49, %v579_v50  ;;  %v581_v55 = vpop.permute.xlu2 %580 }
 0x1ff   : > { %v591_v52 = vsel %vm589_vm8, %v585_v51, %v568_v35 }
 0x200   : > { %601 = vrot.lane.b32.xlu1 %v591_v52, %s1433_s27  ;;  %595 = vrot.lane.b32.xlu0 %v591_v52, %s1186_s12  ;;  %s768_s12 = scalar_lea.hbm %s1431_s7, %s990_s22 }
 0x201   : > { %s771_s14 = sshll.u32 %s768_s12, 4  ;;  %s772_s14 = int_to_ptr.hbm [resolvable:$true] %s771_s14 }
 0x202   : > { %s1097_s19 = sshra.s32 %s772_s14, 4  ;;  %s1098_s19 = int_to_ptr.hbm [resolvable:$true] %s1097_s19 }
 0x203   : > { %s1099_s27 = scalar_lea.hbm %s1098_s19, 16  ;;  %p1104_p3 = scmp.lt.s32.totalorder %s1098_s19, %s1431_s7 }
 0x204   : > { %p1100_p0 = scmp.ne.s32.totalorder %s1098_s19, %s1099_s27  ;;  %p1105_p4 = scmp.lt.s32.totalorder %s1103_s23, %s1099_s27 }
 0x206   : > { %p1101_p1 = pnand %p1100_p0, %p1281_p5  ;;  %p1106_p6 = por %p1105_p4, %p1104_p3 }
 0x208   : > { %p1102_p2 = pneg %p1101_p1 }
 0x20a   : > { %p1107_p8 = pnand %p1106_p6, %p1102_p2 }
 0x216   : > { %v575_v54 = vpop.permute.xlu1 %574 }
 0x217   : > { %v586_v56 = vsel %vm584_vm7, %v575_v54, %v581_v55 }
 0x218   : > { %v592_v61 = vsel %vm590_vm9, %v586_v56, %v569_v40 }
 0x219   : > { %v620_v1 = vrot.slane %v592_v61, 1 }
 0x272   : > { %v602_v62 = vpop.permute.xlu1 %601  ;;  %v596_v63 = vpop.permute.xlu0 %595 }
 0x273   : > { %v608_v0 = vsel %vm607_vm10, %v596_v63, %v602_v62 }
 0x274   : > { %v619_v2 = vrot.slane %v608_v0, 1 }
 0x276   : > { %v625_v3 = vsel %vm618_vm11, %v620_v1, %v619_v2  ;;  %v621_v4 = vsel %vm618_vm11, %v619_v2, %v620_v1 }
 0x277   : > { %v633_v5 = vsel %vm631_vm12, 0.0, %v625_v3  ;;  %v632_v6 = vsel %vm630_vm13, 0.0, %v621_v4 }
 0x278   : > { %v635_v8 = vsel %vm627_vm14, %v592_v61, %v633_v5  ;;  %v634_v9 = vsel %vm626_vm15, %v608_v0, %v632_v6 }
 0x279   : > { %v659_v10 = vadd.f32 %v658_v7, %v635_v8  ;;  %v657_v11 = vadd.f32 %v656_v57, %v634_v9 }
 0x27b   : > { %v662_v12 = vmul.f32 0.25, %v659_v10  ;;  %v661_v13 = vmul.f32 0.25, %v657_v11 }
 0x27d   : > { %v666_v14 = vsel %vm496_vm0, %v662_v12, -inf  ;;  %v663_v16 = vsel %vm496_vm0, %v661_v13, -inf }
 0x27e   : > { %667 = vmax.xlane.f32.xlu0 %v666_v14  ;;  %664 = vmax.xlane.f32.xlu2 %v663_v16 }
 0x2f1   : > { %v668_v17 = vpop.xlane.xlu0 %667  ;;  %v665_v15 = vpop.xlane.xlu2 %664 }
 0x2f2   : > { %v670_v18 = vsub.f32 %v662_v12, %v668_v17  ;;  %v669_v19 = vsub.f32 %v661_v13, %v665_v15 }
 0x2f4   : > { %v673_v20 = vmul.f32 1.442695, %v670_v18  ;;  %v671_v21 = vmul.f32 1.442695, %v669_v19 }
 0x2f6   : > { %1075 = vpow2.f32 %v673_v20 }
 0x2f7   : > { %1077 = vpow2.f32 %v671_v21 }
 0x2fc   : > { %v1076_v22 = vpop.eup %1075 }
 0x2fd   : > { %v1078_v23 = vpop.eup %1077  ;;  %v678_v24 = vsel %vm496_vm0, %v1076_v22, 0.0 }
 0x2fe   : > { %679 = vadd.xlane.f32.xlu2 %v678_v24  ;;  %v675_v25 = vsel %vm496_vm0, %v1078_v23, 0.0 }
 0x2ff   : > { %676 = vadd.xlane.f32.xlu1 %v675_v25 }
 0x371   : > { %v680_v27 = vpop.xlane.xlu2 %679 }
 0x372   : > { %v677_v28 = vpop.xlane.xlu1 %676  ;;  %1079 = vrcp.f32 %v680_v27  ;;  %v707_v35 = vand.u32 2147483648, %v680_v27  ;;  %v705_v38 = vand.u32 2147483647, %v680_v27  ;;  %vm701_vm3 = vweird.f32 %v680_v27 }
 0x373   : > { %1081 = vrcp.f32 %v677_v28  ;;  %v692_v36 = vand.u32 2147483648, %v677_v28  ;;  %v690_v40 = vand.u32 2147483647, %v677_v28  ;;  %vm686_vm4 = vweird.f32 %v677_v28 }
 0x374   : > { %v708_v43 = vor.u32 1.1754944e-38, %v707_v35  ;;  %vm706_vm7 = vcmp.eq.f32.partialorder %v705_v38, 8.507059e+37 }
 0x375   : > { %v693_v44 = vor.u32 1.1754944e-38, %v692_v36  ;;  %vm691_vm8 = vcmp.eq.f32.partialorder %v690_v40, 8.507059e+37 }
 0x378   : > { %v1080_v29 = vpop.eup %1079 }
 0x379   : > { %v1082_v30 = vpop.eup %1081  ;;  %v697_v31 = vmul.f32 %v1080_v29, %v680_v27  ;;  %vm702_vm1 = vweird.f32 %v1080_v29 }
 0x37a   : > { %v682_v32 = vmul.f32 %v1082_v30, %v677_v28  ;;  %vm687_vm2 = vweird.f32 %v1082_v30  ;;  %vm703_vm5 = vmor %vm701_vm3, %vm702_vm1 }
 0x37b   : > { %v698_v33 = vsub.f32 1.0, %v697_v31  ;;  %vm688_vm6 = vmor %vm686_vm4, %vm687_vm2 }
 0x37c   : > { %v683_v34 = vsub.f32 1.0, %v682_v32 }
 0x37d   : > { %v699_v37 = vmul.f32 %v1080_v29, %v698_v33 }
 0x37e   : > { %v684_v39 = vmul.f32 %v1082_v30, %v683_v34 }
 0x37f   : > { %v700_v41 = vadd.f32 %v1080_v29, %v699_v37 }
 0x380   : > { %v685_v42 = vadd.f32 %v1082_v30, %v684_v39 }
 0x381   : > { %v704_v45 = vsel %vm703_vm5, %v1080_v29, %v700_v41 }
 0x382   : > { %v689_v46 = vsel %vm688_vm6, %v1082_v30, %v685_v42  ;;  %v709_v47 = vsel %vm706_vm7, %v708_v43, %v704_v45 }
 0x383   : > { %v694_v48 = vsel %vm691_vm8, %v693_v44, %v689_v46  ;;  %v710_v49 = vmul.f32 %v1076_v22, %v709_v47 }
 0x384   : > { %v695_v50 = vmul.f32 %v1078_v23, %v694_v48 }
 0x385   : > { %712 = vst.msk [vmem:[%s408_s20 + $0x8] sm:$0xff] %vm496_vm0, %v710_v49 }
 0x386   : > { %711 = vst.msk [vmem:[%s408_s20] sm:$0xff] %vm496_vm0, %v695_v50  ;;  %v713_v51 = vpack.c.bf16 %v710_v49, %v695_v50 }
 0x388   : > { %975 = vmatmul.msk.bf16.vlgmr.msra.gmra.mxu2 %vm496_vm0, %v713_v51 }
 0x389   : > { %1110 = shalt.err (!%p1107_p8)
}
 0x38a   : > { %s1187_s18 = smov 128   ;;  %s1443_s20 = smov 8   ;;  %vm739_vm0 = vcmask 125952  }
 0x38b   : > { %995 = dma.vmem_to_hbm [thread:$0]  (%p1281_p5), %s770_s13, 256, %s772_s14, %s750_s28, %s1187_s18, %s1187_s18, %s1443_s20  }
 0x38c   : > { %s457_s12 = scalar_lea.vmem %s1430_s6, %s1313_s17 }
 0x40b   : > { %v732_v52 = vpop.f32.mrf.mxu2 }
 0x40c   : > { %v737_v53 = vpack.c.bf16 %v732_v52, %v732_v52 }
 0x40e   : > { %740 = vst.msk [vmem:[%s457_s12] sm:$0xf] %vm739_vm0, %v737_v53 }
 0x413   : > { %v734_v54 = vpop.f32.mrf.mxu2 }
 0x414   : > { %v738_v55 = vpack.c.bf16 %v734_v54, %v734_v54 }
 0x416   : > { %741 = vst.msk [vmem:[%s457_s12 + $0x4] sm:$0xf] %vm739_vm0, %v738_v55 }
 0x417 PF: > { %p1001_p9 = scmp.ge.s32.totalorder %s1177_s8, 2  ;;  %s796_s0 = sand.u32 1, %s1149_s24  }
 0x418   : > { %s797_s1 = scalar_lea.sflag [#allocation3], %s796_s0 }
 0x419   : > { %p998_p10 = pnand %p1001_p9, %p1287_p7 }
 0x41b   : > { %p999_p5 = pneg %p998_p10 }
 0x41d   : > { %1144 = dma.done.wait (%p999_p5), %s797_s1, 256  }
 0x41e   : > { %1146 = vsyncadd (%p999_p5), %s797_s1, 4294967040  ;;  %s21_s8 = sadd.s32 1, %s1177_s8   ;;  %s1444_s2 = sld [smem:[#allocation5_spill]] }
 0x41f   : > { %p18_p11 = scmp.ge.s32.totalorder %s21_s8, 10   ;;  %s1445_s24 = smov %s1153_s25 }
 0x420   : > { %s1446_s25 = smov %s1157_s26  ;;  %s1447_s26 = smov %s1297_s21 }
 0x421   : > { %s1448_s27 = smov %s1169_s29  ;;  %s1449_s28 = smov %s1173_s30 }
 0x422   : > { %s1450_s29 = smov %s1453_s10  ;;  %20 = sbr.rel (!%p18_p11) target bundleno = 9 (0x9), region = 106 }
 0x424   : > { %s1451_s30 = smov %s1444_s2 }
 0x427   :  { %803 = vsyncpa [#allocation3], 1 }
 0x428   :  { %805 = vsyncpa [#allocation3 + $0x1], 1 }

</bundles_post_ra>
